<compile_context>
chip_gen: v6e
topology: v6e:2x2x1
jax: 0.10.0
libtpu: 0.0.40
codegen_flags: <defaults>
</compile_context>

<pallas_src>
import math

import jax
import jax.numpy as jnp
from jax import lax
from jax.experimental import pallas as pl
from jax.experimental.pallas import tpu as pltpu

# Conservative scoped-VMEM cap: safe on v5e/v6e (128 MiB) and v7x (64 MiB).
_VMEM_LIMIT = 32 * 1024 * 1024


def _pick_tile_m(m, target):
    """Largest row tile <= target that is a multiple of 8 and divides m.

    Falls back to a single full-M block (full-dim blocks always satisfy the
    (8,128) BlockSpec rule) when no such divisor exists or m is small.
    """
    if m <= target:
        return m
    t = (target // 8) * 8
    while t >= 8:
        if m % t == 0:
            return t
        t -= 8
    return m


# ---------------------------------------------------------------------------
# Pallas kernels
# ---------------------------------------------------------------------------
def _conv_relu_pool_kernel(x00_ref, x01_ref, x10_ref, x11_ref,
                           w_ref, b_ref, o_ref):
    """Fused im2col-matmul + bias + ReLU + MaxPool2d(2,2).

    Each x?? ref holds the im2col rows of one pooling quadrant (conv output
    positions (2p+di, 2q+dj)), so the pool is a 4-way elementwise max of the
    four matmul results — no in-kernel reshapes/relayouts, and the pre-pool
    activation never leaves VMEM.  max/ReLU commute with the shared bias add.
    """
    w = w_ref[...]
    a = jnp.dot(x00_ref[...], w, preferred_element_type=jnp.float32)
    a = jnp.maximum(a, jnp.dot(x01_ref[...], w, preferred_element_type=jnp.float32))
    a = jnp.maximum(a, jnp.dot(x10_ref[...], w, preferred_element_type=jnp.float32))
    a = jnp.maximum(a, jnp.dot(x11_ref[...], w, preferred_element_type=jnp.float32))
    o_ref[...] = jnp.maximum(a + b_ref[...], 0.0)


def _fc_head_kernel(x_ref, w1_ref, b1_ref, w2_ref, b2_ref, w3_ref, b3_ref,
                    o_ref):
    """fc1+ReLU -> fc2+ReLU -> fc3 on one VMEM-resident batch tile."""
    h = jnp.dot(x_ref[...], w1_ref[...], preferred_element_type=jnp.float32)
    h = jnp.maximum(h + b1_ref[...], 0.0)
    h = jnp.dot(h, w2_ref[...], preferred_element_type=jnp.float32)
    h = jnp.maximum(h + b2_ref[...], 0.0)
    o_ref[...] = (jnp.dot(h, w3_ref[...], preferred_element_type=jnp.float32)
                  + b3_ref[...])


# ---------------------------------------------------------------------------
# Wrappers
# ---------------------------------------------------------------------------
def conv_relu_pool(x, w_mat, b_row, *, dim_nums, ksize=5, tile_m=512):
    """conv(k, VALID) + ReLU + MaxPool2d(2,2) as one gridded Pallas call.

    x      : input in the layout named by dim_nums[0] ("NCHW" or "NHWC").
    w_mat  : (C_in*k*k, C_out), K ordered (c_in, kh, kw) (PyTorch OIHW flatten
             — matches conv_general_dilated_patches' channel-major ordering).
    b_row  : (1, C_out).
    Returns the pooled activation in NHWC: (B, OH//2, OW//2, C_out).
    """
    # TODO(synk): move patch extraction into the kernel (DMA an input slab and
    # build the k*k shifted views with static ref slices) to drop the im2col
    # inflation from HBM entirely; for now it is a single XLA patches op per
    # pooling quadrant (stride-2, offset (di, dj)).
    lhs_layout = dim_nums[0]
    quads = []
    for di in (0, 1):
        for dj in (0, 1):
            xs = x[:, :, di:, dj:] if lhs_layout == "NCHW" else x[:, di:, dj:, :]
            p = lax.conv_general_dilated_patches(
                xs, (ksize, ksize), (2, 2), "VALID",
                dimension_numbers=dim_nums,
                precision=lax.Precision.HIGHEST)   # exact f32 extraction
            quads.append(p)

    B, ohp, owp, K = quads[0].shape
    M = B * ohp * owp
    N = w_mat.shape[1]
    quads = [q.reshape(M, K) for q in quads]       # contiguous reshape, free

    tm = _pick_tile_m(M, tile_m)
    out = pl.pallas_call(
        _conv_relu_pool_kernel,
        out_shape=jax.ShapeDtypeStruct((M, N), jnp.float32),
        grid=(M // tm,),
        in_specs=[pl.BlockSpec((tm, K), lambda i: (i, 0)) for _ in range(4)]
                + [pl.BlockSpec((K, N), lambda i: (0, 0)),   # VMEM-resident W
                   pl.BlockSpec((1, N), lambda i: (0, 0))],  # VMEM-resident b
        out_specs=pl.BlockSpec((tm, N), lambda i: (i, 0)),
        compiler_params=pltpu.CompilerParams(
            dimension_semantics=("parallel",),
            vmem_limit_bytes=_VMEM_LIMIT),
    )(*quads, w_mat, b_row)
    return out.reshape(B, ohp, owp, N)


def fc_head(x, prep, *, tile_m=1024):
    """Fused fc1(+ReLU) -> fc2(+ReLU) -> fc3 in one Pallas call."""
    B = x.shape[0]
    tm = _pick_tile_m(B, tile_m)
    return pl.pallas_call(
        _fc_head_kernel,
        out_shape=jax.ShapeDtypeStruct((B, 10), jnp.float32),
        grid=(B // tm,),
        in_specs=[pl.BlockSpec((tm, 400), lambda i: (i, 0)),
                  pl.BlockSpec((400, 120), lambda i: (0, 0)),
                  pl.BlockSpec((1, 120), lambda i: (0, 0)),
                  pl.BlockSpec((120, 84), lambda i: (0, 0)),
                  pl.BlockSpec((1, 84), lambda i: (0, 0)),
                  pl.BlockSpec((84, 10), lambda i: (0, 0)),
                  pl.BlockSpec((1, 10), lambda i: (0, 0))],
        out_specs=pl.BlockSpec((tm, 10), lambda i: (i, 0)),
        compiler_params=pltpu.CompilerParams(
            dimension_semantics=("parallel",),
            vmem_limit_bytes=_VMEM_LIMIT),
    )(x, prep["f1_w"], prep["f1_b"], prep["f2_w"], prep["f2_b"],
      prep["f3_w"], prep["f3_b"])


# ---------------------------------------------------------------------------
# Parameters & forward pass
# ---------------------------------------------------------------------------
def init_params(key):
    ks = jax.random.split(key, 10)

    def uni(k, shape, fan_in):
        bound = 1.0 / math.sqrt(fan_in)
        return jax.random.uniform(k, shape, jnp.float32, -bound, bound)

    return {
        "conv1_w": uni(ks[0], (6, 3, 5, 5), 3 * 5 * 5),
        "conv1_b": uni(ks[1], (6,), 3 * 5 * 5),
        "conv2_w": uni(ks[2], (16, 6, 5, 5), 6 * 5 * 5),
        "conv2_b": uni(ks[3], (16,), 6 * 5 * 5),
        "fc1_w": uni(ks[4], (120, 400), 400),
        "fc1_b": uni(ks[5], (120,), 400),
        "fc2_w": uni(ks[6], (84, 120), 120),
        "fc2_b": uni(ks[7], (84,), 120),
        "fc3_w": uni(ks[8], (10, 84), 84),
        "fc3_b": uni(ks[9], (10,), 84),
    }


def prepare_params(params):
    """One-time weight reshapes/permutations (done outside the forward pass).

    fc1's weight is permuted so that it consumes the NHWC-flattened (h, w, c)
    activation directly, i.e. the PyTorch x.view(-1, 16*5*5) (c, h, w) order
    is absorbed into the weight — no per-forward transpose of the activation.
    """
    f1 = params["fc1_w"].reshape(120, 16, 5, 5)         # [o, c, h, w]
    f1 = jnp.transpose(f1, (2, 3, 1, 0)).reshape(400, 120)  # row = h*80+w*16+c
    return {
        "c1_w": params["conv1_w"].reshape(6, 75).T,      # (75, 6),  K=(c,kh,kw)
        "c1_b": params["conv1_b"].reshape(1, 6),
        "c2_w": params["conv2_w"].reshape(16, 150).T,    # (150, 16)
        "c2_b": params["conv2_b"].reshape(1, 16),
        "f1_w": f1,
        "f1_b": params["fc1_b"].reshape(1, 120),
        "f2_w": params["fc2_w"].T,                       # (120, 84)
        "f2_b": params["fc2_b"].reshape(1, 84),
        "f3_w": params["fc3_w"].T,                       # (84, 10)
        "f3_b": params["fc3_b"].reshape(1, 10),
    }


def net_forward(x, prep):
    """x: (B, 3, 32, 32) NCHW (PyTorch convention)."""
    y = conv_relu_pool(x, prep["c1_w"], prep["c1_b"],
                       dim_nums=("NCHW", "OIHW", "NHWC"))   # (B, 14, 14, 6)
    y = conv_relu_pool(y, prep["c2_w"], prep["c2_b"],
                       dim_nums=("NHWC", "OIHW", "NHWC"))   # (B, 5, 5, 16)
    y = y.reshape(y.shape[0], 5 * 5 * 16)   # NHWC flatten; fc1_w pre-permuted
    return fc_head(y, prep)


def net_forward_ref(x, params):
    """Pure-JAX reference (matches PyTorch forward semantics)."""
    def conv(x, w, b):
        y = lax.conv_general_dilated(
            x, w, (1, 1), "VALID",
            dimension_numbers=("NCHW", "OIHW", "NCHW"))
        return y + b[None, :, None, None]

    def pool(x):
        return lax.reduce_window(x, -jnp.inf, lax.max,
                                 (1, 1, 2, 2), (1, 1, 2, 2), "VALID")

    y = pool(jax.nn.relu(conv(x, params["conv1_w"], params["conv1_b"])))
    y = pool(jax.nn.relu(conv(y, params["conv2_w"], params["conv2_b"])))
    y = y.reshape(x.shape[0], -1)
    y = jax.nn.relu(y @ params["fc1_w"].T + params["fc1_b"])
    y = jax.nn.relu(y @ params["fc2_w"].T + params["fc2_b"])
    return y @ params["fc3_w"].T + params["fc3_b"]


if __name__ == "__main__":
    key = jax.random.PRNGKey(0)
    k_x, k_p = jax.random.split(key)
    # fc1 expects 16*5*5 features -> input must be (B, 3, 32, 32).
    x = jax.random.normal(k_x, (2, 3, 32, 32), jnp.float32)
    params = init_params(k_p)
    prep = prepare_params(params)

    fwd = jax.jit(net_forward)
    out = jax.block_until_ready(fwd(x, prep))
    ref = jax.block_until_ready(net_forward_ref(x, params))

    assert out.shape == (2, 10), out.shape
    assert jnp.allclose(out, ref, atol=1e-4, rtol=1e-4), (
        f"max abs err = {jnp.max(jnp.abs(out - ref))}")
    print("KERNEL_OK")
</pallas_src>

<mosaic_0001>
module attributes {stable_mosaic.version = 11 : i64} {
  func.func @_conv_relu_pool_kernel(%arg0: i32, %arg1: memref<392x75xf32, #tpu.memory_space<vmem>>, %arg2: memref<392x75xf32, #tpu.memory_space<vmem>>, %arg3: memref<392x75xf32, #tpu.memory_space<vmem>>, %arg4: memref<392x75xf32, #tpu.memory_space<vmem>>, %arg5: memref<75x6xf32, #tpu.memory_space<vmem>>, %arg6: memref<1x6xf32, #tpu.memory_space<vmem>>, %arg7: memref<392x6xf32, #tpu.memory_space<vmem>>) attributes {dimension_semantics = [#tpu.dimension_semantics<parallel>], iteration_bounds = array<i64: 1>, scalar_prefetch = 0 : i64, scratch_operands = 0 : i64, tpu.core_type = #tpu.core_type<tc>, window_params = [{transform_indices = @transform_0, window_bounds = array<i64: 392, 75>}, {transform_indices = @transform_1, window_bounds = array<i64: 392, 75>}, {transform_indices = @transform_2, window_bounds = array<i64: 392, 75>}, {transform_indices = @transform_3, window_bounds = array<i64: 392, 75>}, {pipeline_mode = #tpu.pipeline_mode<synchronous>, transform_indices = @transform_4, window_bounds = array<i64: 75, 6>}, {pipeline_mode = #tpu.pipeline_mode<synchronous>, transform_indices = @transform_5, window_bounds = array<i64: 1, 6>}, {transform_indices = @transform_6, window_bounds = array<i64: 392, 6>}]} {
    %c0 = arith.constant 0 : index
    %c0_0 = arith.constant 0 : index
    %0 = vector.load %arg5[%c0, %c0_0] : memref<75x6xf32, #tpu.memory_space<vmem>>, vector<75x6xf32>
    %c0_1 = arith.constant 0 : index
    %c0_2 = arith.constant 0 : index
    %1 = vector.load %arg1[%c0_1, %c0_2] : memref<392x75xf32, #tpu.memory_space<vmem>>, vector<392x75xf32>
    %cst = arith.constant dense<0.000000e+00> : vector<392x6xf32>
    %2 = tpu.matmul %1, %0, %cst {dimension_numbers = #tpu.dot_dimension_numbers<[1], [0], [0], [1], [0, 0, 1, 1], [], []>} : vector<392x75xf32>, vector<75x6xf32>, vector<392x6xf32> -> vector<392x6xf32>
    %c0_3 = arith.constant 0 : index
    %c0_4 = arith.constant 0 : index
    %3 = vector.load %arg2[%c0_3, %c0_4] : memref<392x75xf32, #tpu.memory_space<vmem>>, vector<392x75xf32>
    %cst_5 = arith.constant dense<0.000000e+00> : vector<392x6xf32>
    %4 = tpu.matmul %3, %0, %cst_5 {dimension_numbers = #tpu.dot_dimension_numbers<[1], [0], [0], [1], [0, 0, 1, 1], [], []>} : vector<392x75xf32>, vector<75x6xf32>, vector<392x6xf32> -> vector<392x6xf32>
    %5 = arith.maximumf %2, %4 : vector<392x6xf32>
    %c0_6 = arith.constant 0 : index
    %c0_7 = arith.constant 0 : index
    %6 = vector.load %arg3[%c0_6, %c0_7] : memref<392x75xf32, #tpu.memory_space<vmem>>, vector<392x75xf32>
    %cst_8 = arith.constant dense<0.000000e+00> : vector<392x6xf32>
    %7 = tpu.matmul %6, %0, %cst_8 {dimension_numbers = #tpu.dot_dimension_numbers<[1], [0], [0], [1], [0, 0, 1, 1], [], []>} : vector<392x75xf32>, vector<75x6xf32>, vector<392x6xf32> -> vector<392x6xf32>
    %8 = arith.maximumf %5, %7 : vector<392x6xf32>
    %c0_9 = arith.constant 0 : index
    %c0_10 = arith.constant 0 : index
    %9 = vector.load %arg4[%c0_9, %c0_10] : memref<392x75xf32, #tpu.memory_space<vmem>>, vector<392x75xf32>
    %cst_11 = arith.constant dense<0.000000e+00> : vector<392x6xf32>
    %10 = tpu.matmul %9, %0, %cst_11 {dimension_numbers = #tpu.dot_dimension_numbers<[1], [0], [0], [1], [0, 0, 1, 1], [], []>} : vector<392x75xf32>, vector<75x6xf32>, vector<392x6xf32> -> vector<392x6xf32>
    %11 = arith.maximumf %8, %10 : vector<392x6xf32>
    %c0_12 = arith.constant 0 : index
    %c0_13 = arith.constant 0 : index
    %12 = vector.load %arg6[%c0_12, %c0_13] : memref<1x6xf32, #tpu.memory_space<vmem>>, vector<1x6xf32>
    %13 = vector.broadcast %12 : vector<1x6xf32> to vector<392x6xf32>
    %14 = arith.addf %11, %13 : vector<392x6xf32>
    %cst_14 = arith.constant 0.000000e+00 : f32
    %15 = vector.broadcast %cst_14 : f32 to vector<392x6xf32>
    %16 = arith.maximumf %14, %15 : vector<392x6xf32>
    %c0_15 = arith.constant 0 : index
    %c0_16 = arith.constant 0 : index
    %17 = vector.load %arg7[%c0_15, %c0_16] : memref<392x6xf32, #tpu.memory_space<vmem>>, vector<392x6xf32>
    tpu.vector_store %arg7[%c0_15, %c0_16], %16 {strides = array<i32>} : memref<392x6xf32, #tpu.memory_space<vmem>>, vector<392x6xf32>,
    return
  }
  func.func @transform_0(%arg0: i32) -> (i32, i32) {
    %c0_i32 = arith.constant 0 : i32
    %c0_i32_0 = arith.constant 0 : i32
    return %arg0, %c0_i32 : i32, i32
  }
  func.func @transform_1(%arg0: i32) -> (i32, i32) {
    %c0_i32 = arith.constant 0 : i32
    %c0_i32_0 = arith.constant 0 : i32
    return %arg0, %c0_i32 : i32, i32
  }
  func.func @transform_2(%arg0: i32) -> (i32, i32) {
    %c0_i32 = arith.constant 0 : i32
    %c0_i32_0 = arith.constant 0 : i32
    return %arg0, %c0_i32 : i32, i32
  }
  func.func @transform_3(%arg0: i32) -> (i32, i32) {
    %c0_i32 = arith.constant 0 : i32
    %c0_i32_0 = arith.constant 0 : i32
    return %arg0, %c0_i32 : i32, i32
  }
  func.func @transform_4(%arg0: i32) -> (i32, i32) {
    %c0_i32 = arith.constant 0 : i32
    %c0_i32_0 = arith.constant 0 : i32
    %c0_i32_1 = arith.constant 0 : i32
    return %c0_i32, %c0_i32_0 : i32, i32
  }
  func.func @transform_5(%arg0: i32) -> (i32, i32) {
    %c0_i32 = arith.constant 0 : i32
    %c0_i32_0 = arith.constant 0 : i32
    %c0_i32_1 = arith.constant 0 : i32
    return %c0_i32, %c0_i32_0 : i32, i32
  }
  func.func @transform_6(%arg0: i32) -> (i32, i32) {
    %c0_i32 = arith.constant 0 : i32
    %c0_i32_0 = arith.constant 0 : i32
    return %arg0, %c0_i32 : i32, i32
  }
}

module attributes {stable_mosaic.version = 11 : i64} {
  func.func @_conv_relu_pool_kernel(%arg0: i32, %arg1: memref<50x150xf32, #tpu.memory_space<vmem>>, %arg2: memref<50x150xf32, #tpu.memory_space<vmem>>, %arg3: memref<50x150xf32, #tpu.memory_space<vmem>>, %arg4: memref<50x150xf32, #tpu.memory_space<vmem>>, %arg5: memref<150x16xf32, #tpu.memory_space<vmem>>, %arg6: memref<1x16xf32, #tpu.memory_space<vmem>>, %arg7: memref<50x16xf32, #tpu.memory_space<vmem>>) attributes {dimension_semantics = [#tpu.dimension_semantics<parallel>], iteration_bounds = array<i64: 1>, scalar_prefetch = 0 : i64, scratch_operands = 0 : i64, tpu.core_type = #tpu.core_type<tc>, window_params = [{transform_indices = @transform_0, window_bounds = array<i64: 50, 150>}, {transform_indices = @transform_1, window_bounds = array<i64: 50, 150>}, {transform_indices = @transform_2, window_bounds = array<i64: 50, 150>}, {transform_indices = @transform_3, window_bounds = array<i64: 50, 150>}, {pipeline_mode = #tpu.pipeline_mode<synchronous>, transform_indices = @transform_4, window_bounds = array<i64: 150, 16>}, {pipeline_mode = #tpu.pipeline_mode<synchronous>, transform_indices = @transform_5, window_bounds = array<i64: 1, 16>}, {transform_indices = @transform_6, window_bounds = array<i64: 50, 16>}]} {
    %c0 = arith.constant 0 : index
    %c0_0 = arith.constant 0 : index
    %0 = vector.load %arg5[%c0, %c0_0] : memref<150x16xf32, #tpu.memory_space<vmem>>, vector<150x16xf32>
    %c0_1 = arith.constant 0 : index
    %c0_2 = arith.constant 0 : index
    %1 = vector.load %arg1[%c0_1, %c0_2] : memref<50x150xf32, #tpu.memory_space<vmem>>, vector<50x150xf32>
    %cst = arith.constant dense<0.000000e+00> : vector<50x16xf32>
    %2 = tpu.matmul %1, %0, %cst {dimension_numbers = #tpu.dot_dimension_numbers<[1], [0], [0], [1], [0, 0, 1, 1], [], []>} : vector<50x150xf32>, vector<150x16xf32>, vector<50x16xf32> -> vector<50x16xf32>
    %c0_3 = arith.constant 0 : index
    %c0_4 = arith.constant 0 : index
    %3 = vector.load %arg2[%c0_3, %c0_4] : memref<50x150xf32, #tpu.memory_space<vmem>>, vector<50x150xf32>
    %cst_5 = arith.constant dense<0.000000e+00> : vector<50x16xf32>
    %4 = tpu.matmul %3, %0, %cst_5 {dimension_numbers = #tpu.dot_dimension_numbers<[1], [0], [0], [1], [0, 0, 1, 1], [], []>} : vector<50x150xf32>, vector<150x16xf32>, vector<50x16xf32> -> vector<50x16xf32>
    %5 = arith.maximumf %2, %4 : vector<50x16xf32>
    %c0_6 = arith.constant 0 : index
    %c0_7 = arith.constant 0 : index
    %6 = vector.load %arg3[%c0_6, %c0_7] : memref<50x150xf32, #tpu.memory_space<vmem>>, vector<50x150xf32>
    %cst_8 = arith.constant dense<0.000000e+00> : vector<50x16xf32>
    %7 = tpu.matmul %6, %0, %cst_8 {dimension_numbers = #tpu.dot_dimension_numbers<[1], [0], [0], [1], [0, 0, 1, 1], [], []>} : vector<50x150xf32>, vector<150x16xf32>, vector<50x16xf32> -> vector<50x16xf32>
    %8 = arith.maximumf %5, %7 : vector<50x16xf32>
    %c0_9 = arith.constant 0 : index
    %c0_10 = arith.constant 0 : index
    %9 = vector.load %arg4[%c0_9, %c0_10] : memref<50x150xf32, #tpu.memory_space<vmem>>, vector<50x150xf32>
    %cst_11 = arith.constant dense<0.000000e+00> : vector<50x16xf32>
    %10 = tpu.matmul %9, %0, %cst_11 {dimension_numbers = #tpu.dot_dimension_numbers<[1], [0], [0], [1], [0, 0, 1, 1], [], []>} : vector<50x150xf32>, vector<150x16xf32>, vector<50x16xf32> -> vector<50x16xf32>
    %11 = arith.maximumf %8, %10 : vector<50x16xf32>
    %c0_12 = arith.constant 0 : index
    %c0_13 = arith.constant 0 : index
    %12 = vector.load %arg6[%c0_12, %c0_13] : memref<1x16xf32, #tpu.memory_space<vmem>>, vector<1x16xf32>
    %13 = vector.broadcast %12 : vector<1x16xf32> to vector<50x16xf32>
    %14 = arith.addf %11, %13 : vector<50x16xf32>
    %cst_14 = arith.constant 0.000000e+00 : f32
    %15 = vector.broadcast %cst_14 : f32 to vector<50x16xf32>
    %16 = arith.maximumf %14, %15 : vector<50x16xf32>
    %c0_15 = arith.constant 0 : index
    %c0_16 = arith.constant 0 : index
    %17 = vector.load %arg7[%c0_15, %c0_16] : memref<50x16xf32, #tpu.memory_space<vmem>>, vector<50x16xf32>
    tpu.vector_store %arg7[%c0_15, %c0_16], %16 {strides = array<i32>} : memref<50x16xf32, #tpu.memory_space<vmem>>, vector<50x16xf32>,
    return
  }
  func.func @transform_0(%arg0: i32) -> (i32, i32) {
    %c0_i32 = arith.constant 0 : i32
    %c0_i32_0 = arith.constant 0 : i32
    return %arg0, %c0_i32 : i32, i32
  }
  func.func @transform_1(%arg0: i32) -> (i32, i32) {
    %c0_i32 = arith.constant 0 : i32
    %c0_i32_0 = arith.constant 0 : i32
    return %arg0, %c0_i32 : i32, i32
  }
  func.func @transform_2(%arg0: i32) -> (i32, i32) {
    %c0_i32 = arith.constant 0 : i32
    %c0_i32_0 = arith.constant 0 : i32
    return %arg0, %c0_i32 : i32, i32
  }
  func.func @transform_3(%arg0: i32) -> (i32, i32) {
    %c0_i32 = arith.constant 0 : i32
    %c0_i32_0 = arith.constant 0 : i32
    return %arg0, %c0_i32 : i32, i32
  }
  func.func @transform_4(%arg0: i32) -> (i32, i32) {
    %c0_i32 = arith.constant 0 : i32
    %c0_i32_0 = arith.constant 0 : i32
    %c0_i32_1 = arith.constant 0 : i32
    return %c0_i32, %c0_i32_0 : i32, i32
  }
  func.func @transform_5(%arg0: i32) -> (i32, i32) {
    %c0_i32 = arith.constant 0 : i32
    %c0_i32_0 = arith.constant 0 : i32
    %c0_i32_1 = arith.constant 0 : i32
    return %c0_i32, %c0_i32_0 : i32, i32
  }
  func.func @transform_6(%arg0: i32) -> (i32, i32) {
    %c0_i32 = arith.constant 0 : i32
    %c0_i32_0 = arith.constant 0 : i32
    return %arg0, %c0_i32 : i32, i32
  }
}

module attributes {stable_mosaic.version = 11 : i64} {
  func.func @_fc_head_kernel(%arg0: i32, %arg1: memref<2x400xf32, #tpu.memory_space<vmem>>, %arg2: memref<400x120xf32, #tpu.memory_space<vmem>>, %arg3: memref<1x120xf32, #tpu.memory_space<vmem>>, %arg4: memref<120x84xf32, #tpu.memory_space<vmem>>, %arg5: memref<1x84xf32, #tpu.memory_space<vmem>>, %arg6: memref<84x10xf32, #tpu.memory_space<vmem>>, %arg7: memref<1x10xf32, #tpu.memory_space<vmem>>, %arg8: memref<2x10xf32, #tpu.memory_space<vmem>>) attributes {dimension_semantics = [#tpu.dimension_semantics<parallel>], iteration_bounds = array<i64: 1>, scalar_prefetch = 0 : i64, scratch_operands = 0 : i64, tpu.core_type = #tpu.core_type<tc>, window_params = [{transform_indices = @transform_0, window_bounds = array<i64: 2, 400>}, {pipeline_mode = #tpu.pipeline_mode<synchronous>, transform_indices = @transform_1, window_bounds = array<i64: 400, 120>}, {pipeline_mode = #tpu.pipeline_mode<synchronous>, transform_indices = @transform_2, window_bounds = array<i64: 1, 120>}, {pipeline_mode = #tpu.pipeline_mode<synchronous>, transform_indices = @transform_3, window_bounds = array<i64: 120, 84>}, {pipeline_mode = #tpu.pipeline_mode<synchronous>, transform_indices = @transform_4, window_bounds = array<i64: 1, 84>}, {pipeline_mode = #tpu.pipeline_mode<synchronous>, transform_indices = @transform_5, window_bounds = array<i64: 84, 10>}, {pipeline_mode = #tpu.pipeline_mode<synchronous>, transform_indices = @transform_6, window_bounds = array<i64: 1, 10>}, {transform_indices = @transform_7, window_bounds = array<i64: 2, 10>}]} {
    %c0 = arith.constant 0 : index
    %c0_0 = arith.constant 0 : index
    %0 = vector.load %arg1[%c0, %c0_0] : memref<2x400xf32, #tpu.memory_space<vmem>>, vector<2x400xf32>
    %c0_1 = arith.constant 0 : index
    %c0_2 = arith.constant 0 : index
    %1 = vector.load %arg2[%c0_1, %c0_2] : memref<400x120xf32, #tpu.memory_space<vmem>>, vector<400x120xf32>
    %cst = arith.constant dense<0.000000e+00> : vector<2x120xf32>
    %2 = tpu.matmul %0, %1, %cst {dimension_numbers = #tpu.dot_dimension_numbers<[1], [0], [0], [1], [0, 0, 1, 1], [], []>} : vector<2x400xf32>, vector<400x120xf32>, vector<2x120xf32> -> vector<2x120xf32>
    %c0_3 = arith.constant 0 : index
    %c0_4 = arith.constant 0 : index
    %3 = vector.load %arg3[%c0_3, %c0_4] : memref<1x120xf32, #tpu.memory_space<vmem>>, vector<1x120xf32>
    %4 = vector.broadcast %3 : vector<1x120xf32> to vector<2x120xf32>
    %5 = arith.addf %2, %4 : vector<2x120xf32>
    %cst_5 = arith.constant 0.000000e+00 : f32
    %6 = vector.broadcast %cst_5 : f32 to vector<2x120xf32>
    %7 = arith.maximumf %5, %6 : vector<2x120xf32>
    %c0_6 = arith.constant 0 : index
    %c0_7 = arith.constant 0 : index
    %8 = vector.load %arg4[%c0_6, %c0_7] : memref<120x84xf32, #tpu.memory_space<vmem>>, vector<120x84xf32>
    %cst_8 = arith.constant dense<0.000000e+00> : vector<2x84xf32>
    %9 = tpu.matmul %7, %8, %cst_8 {dimension_numbers = #tpu.dot_dimension_numbers<[1], [0], [0], [1], [0, 0, 1, 1], [], []>} : vector<2x120xf32>, vector<120x84xf32>, vector<2x84xf32> -> vector<2x84xf32>
    %c0_9 = arith.constant 0 : index
    %c0_10 = arith.constant 0 : index
    %10 = vector.load %arg5[%c0_9, %c0_10] : memref<1x84xf32, #tpu.memory_space<vmem>>, vector<1x84xf32>
    %11 = vector.broadcast %10 : vector<1x84xf32> to vector<2x84xf32>
    %12 = arith.addf %9, %11 : vector<2x84xf32>
    %cst_11 = arith.constant 0.000000e+00 : f32
    %13 = vector.broadcast %cst_11 : f32 to vector<2x84xf32>
    %14 = arith.maximumf %12, %13 : vector<2x84xf32>
    %c0_12 = arith.constant 0 : index
    %c0_13 = arith.constant 0 : index
    %15 = vector.load %arg6[%c0_12, %c0_13] : memref<84x10xf32, #tpu.memory_space<vmem>>, vector<84x10xf32>
    %cst_14 = arith.constant dense<0.000000e+00> : vector<2x10xf32>
    %16 = tpu.matmul %14, %15, %cst_14 {dimension_numbers = #tpu.dot_dimension_numbers<[1], [0], [0], [1], [0, 0, 1, 1], [], []>} : vector<2x84xf32>, vector<84x10xf32>, vector<2x10xf32> -> vector<2x10xf32>
    %c0_15 = arith.constant 0 : index
    %c0_16 = arith.constant 0 : index
    %17 = vector.load %arg7[%c0_15, %c0_16] : memref<1x10xf32, #tpu.memory_space<vmem>>, vector<1x10xf32>
    %18 = vector.broadcast %17 : vector<1x10xf32> to vector<2x10xf32>
    %19 = arith.addf %16, %18 : vector<2x10xf32>
    %c0_17 = arith.constant 0 : index
    %c0_18 = arith.constant 0 : index
    %20 = vector.load %arg8[%c0_17, %c0_18] : memref<2x10xf32, #tpu.memory_space<vmem>>, vector<2x10xf32>
    tpu.vector_store %arg8[%c0_17, %c0_18], %19 {strides = array<i32>} : memref<2x10xf32, #tpu.memory_space<vmem>>, vector<2x10xf32>,
    return
  }
  func.func @transform_0(%arg0: i32) -> (i32, i32) {
    %c0_i32 = arith.constant 0 : i32
    %c0_i32_0 = arith.constant 0 : i32
    return %arg0, %c0_i32 : i32, i32
  }
  func.func @transform_1(%arg0: i32) -> (i32, i32) {
    %c0_i32 = arith.constant 0 : i32
    %c0_i32_0 = arith.constant 0 : i32
    %c0_i32_1 = arith.constant 0 : i32
    return %c0_i32, %c0_i32_0 : i32, i32
  }
  func.func @transform_2(%arg0: i32) -> (i32, i32) {
    %c0_i32 = arith.constant 0 : i32
    %c0_i32_0 = arith.constant 0 : i32
    %c0_i32_1 = arith.constant 0 : i32
    return %c0_i32, %c0_i32_0 : i32, i32
  }
  func.func @transform_3(%arg0: i32) -> (i32, i32) {
    %c0_i32 = arith.constant 0 : i32
    %c0_i32_0 = arith.constant 0 : i32
    %c0_i32_1 = arith.constant 0 : i32
    return %c0_i32, %c0_i32_0 : i32, i32
  }
  func.func @transform_4(%arg0: i32) -> (i32, i32) {
    %c0_i32 = arith.constant 0 : i32
    %c0_i32_0 = arith.constant 0 : i32
    %c0_i32_1 = arith.constant 0 : i32
    return %c0_i32, %c0_i32_0 : i32, i32
  }
  func.func @transform_5(%arg0: i32) -> (i32, i32) {
    %c0_i32 = arith.constant 0 : i32
    %c0_i32_0 = arith.constant 0 : i32
    %c0_i32_1 = arith.constant 0 : i32
    return %c0_i32, %c0_i32_0 : i32, i32
  }
  func.func @transform_6(%arg0: i32) -> (i32, i32) {
    %c0_i32 = arith.constant 0 : i32
    %c0_i32_0 = arith.constant 0 : i32
    %c0_i32_1 = arith.constant 0 : i32
    return %c0_i32, %c0_i32_0 : i32, i32
  }
  func.func @transform_7(%arg0: i32) -> (i32, i32) {
    %c0_i32 = arith.constant 0 : i32
    %c0_i32_0 = arith.constant 0 : i32
    return %arg0, %c0_i32 : i32, i32
  }
}

</mosaic_0001>

<bundles_post_ra>
// kernel: net_forward.3
= control target key start
LH: loop header
LB: loop body
LE: loop exit
PB: predicated region body
PF: predicated region fallthrough
CT: control target
= control target key end

     0   :  { %vm230_vm0 = vcmask 1042432   ;;  %v3475_v0 = vmov 0.0   ;;  %vm82_vm1 = vcmask 613376   ;;  %vm3476_vm2 = vmmov 0   ;;  %s5513_s4 = inlined_call_operand.vmem [shape: f32[75,6], index: 4, kind: input, shape index: {}]   ;;  %s5514_s0 = inlined_call_operand.vmem [shape: f32[392,75], index: 0, kind: input, shape index: {}]   ;;  %s5515_s1 = inlined_call_operand.vmem [shape: f32[392,75], index: 1, kind: input, shape index: {}]   ;;  %s5516_s2 = inlined_call_operand.vmem [shape: f32[392,75], index: 2, kind: input, shape index: {}]   ;;  %s5517_s3 = inlined_call_operand.vmem [shape: f32[392,75], index: 3, kind: input, shape index: {}]   ;;  %s5518_s5 = inlined_call_operand.vmem [shape: f32[1,6], index: 5, kind: input, shape index: {}]   ;;  %s5519_s6 = inlined_call_operand.vmem [shape: f32[392,6], index: 6, kind: output, shape index: {}]  }
   0x1   :  { %2805 = vmatprep.subr.mxu0 %v3475_v0  ;;  %v3516_v1 = vld [vmem:[%s5513_s4 + $0x48] sm:$0x7]  ;;  %2972 = vmatprep.subr.mxu1 %v3475_v0  ;;  %v3522_v2 = vld [vmem:[%s5513_s4 + $0x40] sm:$0xff]  ;;  %v3533_v3 = vld [vmem:[%s5513_s4 + $0x38] sm:$0xff]  ;;  %vm2314_vm3 = vcmask 48128  }
   0x2   :  { %2806 = vmatpush3.msk.msra.mxu0 %vm230_vm0, %v3516_v1  ;;  %2973 = vmatpush3.msk.msra.mxu1 %vm230_vm0, %v3516_v1  ;;  %v3542_v4 = vld [vmem:[%s5513_s4 + $0x30] sm:$0xff]  ;;  %v3551_v5 = vld [vmem:[%s5513_s4 + $0x28] sm:$0xff]  ;;  %v3560_v6 = vld [vmem:[%s5513_s4 + $0x20] sm:$0xff] }
   0x3   :  { %2807 = vmatprep.subr.mxu0 %v3475_v0  ;;  %2974 = vmatprep.subr.mxu1 %v3475_v0  ;;  %v3569_v7 = vld [vmem:[%s5513_s4 + $0x18] sm:$0xff]  ;;  %v3578_v8 = vld [vmem:[%s5513_s4 + $0x10] sm:$0xff]  ;;  %v3587_v9 = vld [vmem:[%s5513_s4 + $0x8] sm:$0xff] }
   0x4   :  { %2808 = vmatpush3.msra.mxu0 %v3522_v2  ;;  %2975 = vmatpush3.msra.mxu1 %v3522_v2  ;;  %v3596_v10 = vld [vmem:[%s5513_s4] sm:$0xff]  ;;  %v34_v13 = vld [vmem:[%s5514_s0 + $0x8] sm:$0xff]  ;;  %v35_v15 = vld [vmem:[%s5514_s0 + $0x10] sm:$0xff] }
   0x5   :  { %2809 = vmatprep.subr.mxu0 %v3475_v0  ;;  %2976 = vmatprep.subr.mxu1 %v3475_v0  ;;  %v33_v11 = vld [vmem:[%s5514_s0] sm:$0xff]  ;;  %v545_v14 = vld [vmem:[%s5515_s1 + $0x8] sm:$0xff]  ;;  %v546_v16 = vld [vmem:[%s5515_s1 + $0x10] sm:$0xff] }
   0x6   :  { %2810 = vmatpush3.msra.mxu0 %v3533_v3  ;;  %2977 = vmatpush3.msra.mxu1 %v3533_v3  ;;  %v544_v12 = vld [vmem:[%s5515_s1] sm:$0xff]  ;;  %v36_v17 = vld [vmem:[%s5514_s0 + $0x18] sm:$0xff]  ;;  %v38_v21 = vld [vmem:[%s5514_s0 + $0x28] sm:$0xff] }
   0x7   :  { %2811 = vmatprep.subr.mxu0 %v3475_v0  ;;  %2978 = vmatprep.subr.mxu1 %v3475_v0  ;;  %v547_v18 = vld [vmem:[%s5515_s1 + $0x18] sm:$0xff]  ;;  %v37_v19 = vld [vmem:[%s5514_s0 + $0x20] sm:$0xff]  ;;  %v549_v22 = vld [vmem:[%s5515_s1 + $0x28] sm:$0xff] }
   0x8   :  { %2812 = vmatpush3.msra.mxu0 %v3542_v4  ;;  %2979 = vmatpush3.msra.mxu1 %v3542_v4  ;;  %v548_v20 = vld [vmem:[%s5515_s1 + $0x20] sm:$0xff]  ;;  %v39_v23 = vld [vmem:[%s5514_s0 + $0x30] sm:$0xff]  ;;  %v40_v25 = vld [vmem:[%s5514_s0 + $0x38] sm:$0xff] }
   0x9   :  { %2813 = vmatprep.subr.mxu0 %v3475_v0  ;;  %2980 = vmatprep.subr.mxu1 %v3475_v0  ;;  %v550_v24 = vld [vmem:[%s5515_s1 + $0x30] sm:$0xff]  ;;  %v551_v26 = vld [vmem:[%s5515_s1 + $0x38] sm:$0xff]  ;;  %v41_v27 = vld [vmem:[%s5514_s0 + $0x40] sm:$0xff] }
   0xa   :  { %2814 = vmatpush3.msra.mxu0 %v3551_v5  ;;  %2981 = vmatpush3.msra.mxu1 %v3551_v5  ;;  %v552_v28 = vld [vmem:[%s5515_s1 + $0x40] sm:$0xff]  ;;  %v42_v29 = vld [vmem:[%s5514_s0 + $0x48] sm:$0xff]  ;;  %v43_v31 = vld [vmem:[%s5514_s0 + $0x50] sm:$0xff] }
   0xb   :  { %2815 = vmatprep.subr.mxu0 %v3475_v0  ;;  %2982 = vmatprep.subr.mxu1 %v3475_v0  ;;  %v553_v30 = vld [vmem:[%s5515_s1 + $0x48] sm:$0xff]  ;;  %v554_v32 = vld [vmem:[%s5515_s1 + $0x50] sm:$0xff]  ;;  %v44_v33 = vld [vmem:[%s5514_s0 + $0x58] sm:$0xff] }
   0xc   :  { %2816 = vmatpush3.msra.mxu0 %v3560_v6  ;;  %2983 = vmatpush3.msra.mxu1 %v3560_v6  ;;  %v555_v34 = vld [vmem:[%s5515_s1 + $0x58] sm:$0xff]  ;;  %v45_v35 = vld [vmem:[%s5514_s0 + $0x60] sm:$0xff]  ;;  %v46_v37 = vld [vmem:[%s5514_s0 + $0x68] sm:$0xff] }
   0xd   :  { %2817 = vmatprep.subr.mxu0 %v3475_v0  ;;  %2984 = vmatprep.subr.mxu1 %v3475_v0  ;;  %v556_v36 = vld [vmem:[%s5515_s1 + $0x60] sm:$0xff]  ;;  %v557_v38 = vld [vmem:[%s5515_s1 + $0x68] sm:$0xff]  ;;  %v47_v39 = vld [vmem:[%s5514_s0 + $0x70] sm:$0xff] }
   0xe   :  { %2818 = vmatpush3.msra.mxu0 %v3569_v7  ;;  %2985 = vmatpush3.msra.mxu1 %v3569_v7  ;;  %v558_v40 = vld [vmem:[%s5515_s1 + $0x70] sm:$0xff]  ;;  %v48_v41 = vld [vmem:[%s5514_s0 + $0x78] sm:$0xff]  ;;  %v49_v43 = vld [vmem:[%s5514_s0 + $0x80] sm:$0xff] }
   0xf   :  { %2819 = vmatprep.subr.mxu0 %v3475_v0  ;;  %2986 = vmatprep.subr.mxu1 %v3475_v0  ;;  %v559_v42 = vld [vmem:[%s5515_s1 + $0x78] sm:$0xff]  ;;  %v560_v44 = vld [vmem:[%s5515_s1 + $0x80] sm:$0xff]  ;;  %v50_v45 = vld [vmem:[%s5514_s0 + $0x88] sm:$0xff] }
  0x10   :  { %2820 = vmatpush3.msra.mxu0 %v3578_v8  ;;  %2987 = vmatpush3.msra.mxu1 %v3578_v8  ;;  %v561_v46 = vld [vmem:[%s5515_s1 + $0x88] sm:$0xff]  ;;  %v51_v47 = vld [vmem:[%s5514_s0 + $0x90] sm:$0xff]  ;;  %v52_v49 = vld [vmem:[%s5514_s0 + $0x98] sm:$0xff] }
  0x11   :  { %2821 = vmatprep.subr.mxu0 %v3475_v0  ;;  %2988 = vmatprep.subr.mxu1 %v3475_v0  ;;  %v562_v48 = vld [vmem:[%s5515_s1 + $0x90] sm:$0xff]  ;;  %v563_v50 = vld [vmem:[%s5515_s1 + $0x98] sm:$0xff]  ;;  %v53_v51 = vld [vmem:[%s5514_s0 + $0xa0] sm:$0xff] }
  0x12   :  { %2822 = vmatpush3.msra.mxu0 %v3587_v9  ;;  %2989 = vmatpush3.msra.mxu1 %v3587_v9  ;;  %v564_v52 = vld [vmem:[%s5515_s1 + $0xa0] sm:$0xff]  ;;  %v54_v53 = vld [vmem:[%s5514_s0 + $0xa8] sm:$0xff]  ;;  %v55_v55 = vld [vmem:[%s5514_s0 + $0xb0] sm:$0xff] }
  0x13   :  { %2823 = vmatprep.subr.mxu0 %v3475_v0  ;;  %2825 = vmatprep.mubr.msk.f32.mxu0 %vm3476_vm2, %v3475_v0  ;;  %v565_v54 = vld [vmem:[%s5515_s1 + $0xa8] sm:$0xff]  ;;  %v566_v56 = vld [vmem:[%s5515_s1 + $0xb0] sm:$0xff]  ;;  %v56_v57 = vld [vmem:[%s5514_s0 + $0xb8] sm:$0xff] }
  0x14   :  { %2824 = vmatpush3.msra.mxu0 %v3596_v10  ;;  %2990 = vmatprep.subr.mxu1 %v3475_v0  ;;  %v567_v58 = vld [vmem:[%s5515_s1 + $0xb8] sm:$0xff]  ;;  %v57_v59 = vld [vmem:[%s5514_s0 + $0xc0] sm:$0xff]  ;;  %v58_v61 = vld [vmem:[%s5514_s0 + $0xc8] sm:$0xff] }
  0x15   :  { %2826 = vmatmul.mubr.msk.f32.vlgmr.msra.gmra.mxu0 %vm82_vm1, %v33_v11  ;;  %2991 = vmatpush3.msra.mxu1 %v3596_v10  ;;  %v568_v60 = vld [vmem:[%s5515_s1 + $0xc0] sm:$0xff]  ;;  %v569_v62 = vld [vmem:[%s5515_s1 + $0xc8] sm:$0xff]  ;;  %v59_v63 = vld [vmem:[%s5514_s0 + $0xd0] sm:$0xff] }
  0x16   :  { %2992 = vmatprep.mubr.msk.f32.mxu1 %vm3476_vm2, %v3475_v0  ;;  %3139 = vmatprep.subr.mxu0 %v3475_v0  ;;  %v575_v11 = vld [vmem:[%s5515_s1 + $0xf8] sm:$0xff] }
  0x17   :  { %2993 = vmatmul.mubr.msk.f32.vlgmr.msra.gmra.mxu1 %vm82_vm1, %v544_v12  ;;  %3140 = vmatpush3.msk.msra.mxu0 %vm230_vm0, %v3516_v1  ;;  %v65_v12 = vld [vmem:[%s5514_s0 + $0x100] sm:$0xff] }
  0x18   :  { %3306 = vmatprep.subr.mxu1 %v3475_v0  ;;  %2828 = vmatprep.mubr.msk.f32.mxu0 %vm3476_vm2, %v3475_v0 }
  0x19   :  { %3307 = vmatpush3.msk.msra.mxu1 %vm230_vm0, %v3516_v1  ;;  %2829 = vmatmul.mubr.msk.f32.gmra.mxu0 %vm82_vm1, %v34_v13  ;;  %v570_v1 = vld [vmem:[%s5515_s1 + $0xd0] sm:$0xff]  ;;  %v576_v13 = vld [vmem:[%s5515_s1 + $0x100] sm:$0xff] }
  0x1a   :  { %2995 = vmatprep.mubr.msk.f32.mxu1 %vm3476_vm2, %v3475_v0  ;;  %2831 = vmatprep.mubr.msk.f32.mxu0 %vm3476_vm2, %v3475_v0 }
  0x1b   :  { %2996 = vmatmul.mubr.msk.f32.gmra.mxu1 %vm82_vm1, %v545_v14  ;;  %3141 = vmatprep.subr.mxu0 %v3475_v0  ;;  %v66_v14 = vld [vmem:[%s5514_s0 + $0x108] sm:$0xff] }
  0x1c   :  { %2998 = vmatprep.mubr.msk.f32.mxu1 %vm3476_vm2, %v3475_v0  ;;  %3142 = vmatpush3.msra.mxu0 %v3522_v2 }
  0x1d   :  { %2832 = vmatmul.mubr.msk.f32.gmra.mxu0 %vm82_vm1, %v35_v15  ;;  %3308 = vmatprep.subr.mxu1 %v3475_v0  ;;  %v577_v15 = vld [vmem:[%s5515_s1 + $0x108] sm:$0xff] }
  0x1e   :  { %2834 = vmatprep.mubr.msk.f32.mxu0 %vm3476_vm2, %v3475_v0  ;;  %3309 = vmatpush3.msra.mxu1 %v3522_v2  ;;  %v60_v2 = vld [vmem:[%s5514_s0 + $0xd8] sm:$0xff] }
  0x1f   :  { %2999 = vmatmul.mubr.msk.f32.gmra.mxu1 %vm82_vm1, %v546_v16  ;;  %3143 = vmatprep.subr.mxu0 %v3475_v0  ;;  %v67_v16 = vld [vmem:[%s5514_s0 + $0x110] sm:$0xff] }
  0x20   :  { %3001 = vmatprep.mubr.msk.f32.mxu1 %vm3476_vm2, %v3475_v0  ;;  %3144 = vmatpush3.msra.mxu0 %v3533_v3 }
  0x21   :  { %2835 = vmatmul.mubr.msk.f32.gmra.mxu0 %vm82_vm1, %v36_v17  ;;  %3310 = vmatprep.subr.mxu1 %v3475_v0  ;;  %v578_v17 = vld [vmem:[%s5515_s1 + $0x110] sm:$0xff] }
  0x22   :  { %2837 = vmatprep.mubr.msk.f32.mxu0 %vm3476_vm2, %v3475_v0  ;;  %3311 = vmatpush3.msra.mxu1 %v3533_v3  ;;  %v571_v3 = vld [vmem:[%s5515_s1 + $0xd8] sm:$0xff] }
  0x23   :  { %3002 = vmatmul.mubr.msk.f32.gmra.mxu1 %vm82_vm1, %v547_v18  ;;  %3145 = vmatprep.subr.mxu0 %v3475_v0  ;;  %v68_v18 = vld [vmem:[%s5514_s0 + $0x118] sm:$0xff] }
  0x24   :  { %3004 = vmatprep.mubr.msk.f32.mxu1 %vm3476_vm2, %v3475_v0  ;;  %3146 = vmatpush3.msra.mxu0 %v3542_v4 }
  0x25   :  { %2838 = vmatmul.mubr.msk.f32.gmra.mxu0 %vm82_vm1, %v37_v19  ;;  %3312 = vmatprep.subr.mxu1 %v3475_v0  ;;  %v579_v19 = vld [vmem:[%s5515_s1 + $0x118] sm:$0xff] }
  0x26   :  { %2840 = vmatprep.mubr.msk.f32.mxu0 %vm3476_vm2, %v3475_v0  ;;  %3313 = vmatpush3.msra.mxu1 %v3542_v4  ;;  %v61_v4 = vld [vmem:[%s5514_s0 + $0xe0] sm:$0xff] }
  0x27   :  { %3005 = vmatmul.mubr.msk.f32.gmra.mxu1 %vm82_vm1, %v548_v20  ;;  %3147 = vmatprep.subr.mxu0 %v3475_v0  ;;  %v69_v20 = vld [vmem:[%s5514_s0 + $0x120] sm:$0xff] }
  0x28   :  { %3007 = vmatprep.mubr.msk.f32.mxu1 %vm3476_vm2, %v3475_v0  ;;  %3148 = vmatpush3.msra.mxu0 %v3551_v5 }
  0x29   :  { %2841 = vmatmul.mubr.msk.f32.gmra.mxu0 %vm82_vm1, %v38_v21  ;;  %3314 = vmatprep.subr.mxu1 %v3475_v0  ;;  %v580_v21 = vld [vmem:[%s5515_s1 + $0x120] sm:$0xff] }
  0x2a   :  { %2843 = vmatprep.mubr.msk.f32.mxu0 %vm3476_vm2, %v3475_v0  ;;  %3315 = vmatpush3.msra.mxu1 %v3551_v5  ;;  %v572_v5 = vld [vmem:[%s5515_s1 + $0xe0] sm:$0xff] }
  0x2b   :  { %3008 = vmatmul.mubr.msk.f32.gmra.mxu1 %vm82_vm1, %v549_v22  ;;  %3149 = vmatprep.subr.mxu0 %v3475_v0  ;;  %v70_v22 = vld [vmem:[%s5514_s0 + $0x128] sm:$0xff] }
  0x2c   :  { %3010 = vmatprep.mubr.msk.f32.mxu1 %vm3476_vm2, %v3475_v0  ;;  %3150 = vmatpush3.msra.mxu0 %v3560_v6 }
  0x2d   :  { %2844 = vmatmul.mubr.msk.f32.gmra.mxu0 %vm82_vm1, %v39_v23  ;;  %3316 = vmatprep.subr.mxu1 %v3475_v0  ;;  %v581_v23 = vld [vmem:[%s5515_s1 + $0x128] sm:$0xff] }
  0x2e   :  { %2846 = vmatprep.mubr.msk.f32.mxu0 %vm3476_vm2, %v3475_v0  ;;  %3317 = vmatpush3.msra.mxu1 %v3560_v6  ;;  %v62_v6 = vld [vmem:[%s5514_s0 + $0xe8] sm:$0xff] }
  0x2f   :  { %3011 = vmatmul.mubr.msk.f32.gmra.mxu1 %vm82_vm1, %v550_v24  ;;  %3151 = vmatprep.subr.mxu0 %v3475_v0  ;;  %v71_v24 = vld [vmem:[%s5514_s0 + $0x130] sm:$0xff] }
  0x30   :  { %3013 = vmatprep.mubr.msk.f32.mxu1 %vm3476_vm2, %v3475_v0  ;;  %3152 = vmatpush3.msra.mxu0 %v3569_v7 }
  0x31   :  { %2847 = vmatmul.mubr.msk.f32.gmra.mxu0 %vm82_vm1, %v40_v25  ;;  %3318 = vmatprep.subr.mxu1 %v3475_v0  ;;  %v582_v25 = vld [vmem:[%s5515_s1 + $0x130] sm:$0xff] }
  0x32   :  { %2849 = vmatprep.mubr.msk.f32.mxu0 %vm3476_vm2, %v3475_v0  ;;  %3319 = vmatpush3.msra.mxu1 %v3569_v7  ;;  %v573_v7 = vld [vmem:[%s5515_s1 + $0xe8] sm:$0xff] }
  0x33   :  { %3014 = vmatmul.mubr.msk.f32.gmra.mxu1 %vm82_vm1, %v551_v26  ;;  %3153 = vmatprep.subr.mxu0 %v3475_v0  ;;  %v72_v26 = vld [vmem:[%s5514_s0 + $0x138] sm:$0xff] }
  0x34   :  { %3016 = vmatprep.mubr.msk.f32.mxu1 %vm3476_vm2, %v3475_v0  ;;  %3154 = vmatpush3.msra.mxu0 %v3578_v8 }
  0x35   :  { %2850 = vmatmul.mubr.msk.f32.gmra.mxu0 %vm82_vm1, %v41_v27  ;;  %3320 = vmatprep.subr.mxu1 %v3475_v0  ;;  %v583_v27 = vld [vmem:[%s5515_s1 + $0x138] sm:$0xff] }
  0x36   :  { %2852 = vmatprep.mubr.msk.f32.mxu0 %vm3476_vm2, %v3475_v0  ;;  %3321 = vmatpush3.msra.mxu1 %v3578_v8  ;;  %v63_v8 = vld [vmem:[%s5514_s0 + $0xf0] sm:$0xff] }
  0x37   :  { %3017 = vmatmul.mubr.msk.f32.gmra.mxu1 %vm82_vm1, %v552_v28  ;;  %3155 = vmatprep.subr.mxu0 %v3475_v0  ;;  %v73_v28 = vld [vmem:[%s5514_s0 + $0x140] sm:$0xff] }
  0x38   :  { %3019 = vmatprep.mubr.msk.f32.mxu1 %vm3476_vm2, %v3475_v0  ;;  %3156 = vmatpush3.msra.mxu0 %v3587_v9 }
  0x39   :  { %2853 = vmatmul.mubr.msk.f32.gmra.mxu0 %vm82_vm1, %v42_v29  ;;  %3322 = vmatprep.subr.mxu1 %v3475_v0  ;;  %v584_v29 = vld [vmem:[%s5515_s1 + $0x140] sm:$0xff] }
  0x3a   :  { %2855 = vmatprep.mubr.msk.f32.mxu0 %vm3476_vm2, %v3475_v0  ;;  %3323 = vmatpush3.msra.mxu1 %v3587_v9  ;;  %v574_v9 = vld [vmem:[%s5515_s1 + $0xf0] sm:$0xff] }
  0x3b   :  { %3020 = vmatmul.mubr.msk.f32.gmra.mxu1 %vm82_vm1, %v553_v30  ;;  %3157 = vmatprep.subr.mxu0 %v3475_v0  ;;  %v74_v30 = vld [vmem:[%s5514_s0 + $0x148] sm:$0xff] }
  0x3c   :  { %3022 = vmatprep.mubr.msk.f32.mxu1 %vm3476_vm2, %v3475_v0  ;;  %3158 = vmatpush3.msra.mxu0 %v3596_v10 }
  0x3d   :  { %2856 = vmatmul.mubr.msk.f32.gmra.mxu0 %vm82_vm1, %v43_v31  ;;  %3324 = vmatprep.subr.mxu1 %v3475_v0  ;;  %v585_v31 = vld [vmem:[%s5515_s1 + $0x148] sm:$0xff] }
  0x3e   :  { %2858 = vmatprep.mubr.msk.f32.mxu0 %vm3476_vm2, %v3475_v0  ;;  %3325 = vmatpush3.msra.mxu1 %v3596_v10  ;;  %v64_v10 = vld [vmem:[%s5514_s0 + $0xf8] sm:$0xff] }
  0x3f   :  { %3023 = vmatmul.mubr.msk.f32.gmra.mxu1 %vm82_vm1, %v554_v32  ;;  %v75_v32 = vld [vmem:[%s5514_s0 + $0x150] sm:$0xff] }
  0x40   :  { %3025 = vmatprep.mubr.msk.f32.mxu1 %vm3476_vm2, %v3475_v0 }
  0x41   :  { %2859 = vmatmul.mubr.msk.f32.gmra.mxu0 %vm82_vm1, %v44_v33  ;;  %v586_v33 = vld [vmem:[%s5515_s1 + $0x150] sm:$0xff] }
  0x42   :  { %2861 = vmatprep.mubr.msk.f32.mxu0 %vm3476_vm2, %v3475_v0 }
  0x43   :  { %3026 = vmatmul.mubr.msk.f32.gmra.mxu1 %vm82_vm1, %v555_v34  ;;  %v76_v34 = vld [vmem:[%s5514_s0 + $0x158] sm:$0xff] }
  0x44   :  { %3028 = vmatprep.mubr.msk.f32.mxu1 %vm3476_vm2, %v3475_v0 }
  0x45   :  { %2862 = vmatmul.mubr.msk.f32.gmra.mxu0 %vm82_vm1, %v45_v35  ;;  %v587_v35 = vld [vmem:[%s5515_s1 + $0x158] sm:$0xff] }
  0x46   :  { %2864 = vmatprep.mubr.msk.f32.mxu0 %vm3476_vm2, %v3475_v0 }
  0x47   :  { %3029 = vmatmul.mubr.msk.f32.gmra.mxu1 %vm82_vm1, %v556_v36  ;;  %v77_v36 = vld [vmem:[%s5514_s0 + $0x160] sm:$0xff] }
  0x48   :  { %3031 = vmatprep.mubr.msk.f32.mxu1 %vm3476_vm2, %v3475_v0 }
  0x49   :  { %2865 = vmatmul.mubr.msk.f32.gmra.mxu0 %vm82_vm1, %v46_v37  ;;  %v588_v37 = vld [vmem:[%s5515_s1 + $0x160] sm:$0xff] }
  0x4a   :  { %2867 = vmatprep.mubr.msk.f32.mxu0 %vm3476_vm2, %v3475_v0 }
  0x4b   :  { %3032 = vmatmul.mubr.msk.f32.gmra.mxu1 %vm82_vm1, %v557_v38  ;;  %v78_v38 = vld [vmem:[%s5514_s0 + $0x168] sm:$0xff] }
  0x4c   :  { %3034 = vmatprep.mubr.msk.f32.mxu1 %vm3476_vm2, %v3475_v0 }
  0x4d   :  { %2868 = vmatmul.mubr.msk.f32.gmra.mxu0 %vm82_vm1, %v47_v39  ;;  %v589_v39 = vld [vmem:[%s5515_s1 + $0x168] sm:$0xff] }
  0x4e   :  { %2870 = vmatprep.mubr.msk.f32.mxu0 %vm3476_vm2, %v3475_v0 }
  0x4f   :  { %3035 = vmatmul.mubr.msk.f32.gmra.mxu1 %vm82_vm1, %v558_v40  ;;  %v79_v40 = vld [vmem:[%s5514_s0 + $0x170] sm:$0xff] }
  0x50   :  { %3037 = vmatprep.mubr.msk.f32.mxu1 %vm3476_vm2, %v3475_v0 }
  0x51   :  { %2871 = vmatmul.mubr.msk.f32.gmra.mxu0 %vm82_vm1, %v48_v41  ;;  %v590_v41 = vld [vmem:[%s5515_s1 + $0x170] sm:$0xff] }
  0x52   :  { %2873 = vmatprep.mubr.msk.f32.mxu0 %vm3476_vm2, %v3475_v0 }
  0x53   :  { %3038 = vmatmul.mubr.msk.f32.gmra.mxu1 %vm82_vm1, %v559_v42  ;;  %v80_v42 = vld [vmem:[%s5514_s0 + $0x178] sm:$0xff] }
  0x54   :  { %3040 = vmatprep.mubr.msk.f32.mxu1 %vm3476_vm2, %v3475_v0 }
  0x55   :  { %2874 = vmatmul.mubr.msk.f32.gmra.mxu0 %vm82_vm1, %v49_v43  ;;  %v591_v43 = vld [vmem:[%s5515_s1 + $0x178] sm:$0xff] }
  0x56   :  { %2876 = vmatprep.mubr.msk.f32.mxu0 %vm3476_vm2, %v3475_v0 }
  0x57   :  { %3041 = vmatmul.mubr.msk.f32.gmra.mxu1 %vm82_vm1, %v560_v44  ;;  %v81_v44 = vld [vmem:[%s5514_s0 + $0x180] sm:$0xff] }
  0x58   :  { %3043 = vmatprep.mubr.msk.f32.mxu1 %vm3476_vm2, %v3475_v0 }
  0x59   :  { %2877 = vmatmul.mubr.msk.f32.gmra.mxu0 %vm82_vm1, %v50_v45  ;;  %v592_v45 = vld [vmem:[%s5515_s1 + $0x180] sm:$0xff] }
  0x5a   :  { %2879 = vmatprep.mubr.msk.f32.mxu0 %vm3476_vm2, %v3475_v0 }
  0x5b   :  { %3044 = vmatmul.mubr.msk.f32.gmra.mxu1 %vm82_vm1, %v561_v46 }
  0x5c   :  { %3046 = vmatprep.mubr.msk.f32.mxu1 %vm3476_vm2, %v3475_v0 }
  0x5d   :  { %2880 = vmatmul.mubr.msk.f32.gmra.mxu0 %vm82_vm1, %v51_v47  ;;  %v1099_v47 = vld [vmem:[%s5516_s2] sm:$0xff] }
  0x5e   :  { %2882 = vmatprep.mubr.msk.f32.mxu0 %vm3476_vm2, %v3475_v0 }
  0x5f   :  { %3047 = vmatmul.mubr.msk.f32.gmra.mxu1 %vm82_vm1, %v562_v48 }
  0x60   :  { %3049 = vmatprep.mubr.msk.f32.mxu1 %vm3476_vm2, %v3475_v0 }
  0x61   :  { %2883 = vmatmul.mubr.msk.f32.gmra.mxu0 %vm82_vm1, %v52_v49 }
  0x62   :  { %2885 = vmatprep.mubr.msk.f32.mxu0 %vm3476_vm2, %v3475_v0 }
  0x63   :  { %3050 = vmatmul.mubr.msk.f32.gmra.mxu1 %vm82_vm1, %v563_v50 }
  0x64   :  { %3052 = vmatprep.mubr.msk.f32.mxu1 %vm3476_vm2, %v3475_v0 }
  0x65   :  { %2886 = vmatmul.mubr.msk.f32.gmra.mxu0 %vm82_vm1, %v53_v51  ;;  %v1654_v51 = vld [vmem:[%s5517_s3] sm:$0xff] }
  0x66   :  { %2888 = vmatprep.mubr.msk.f32.mxu0 %vm3476_vm2, %v3475_v0 }
  0x67   :  { %3053 = vmatmul.mubr.msk.f32.gmra.mxu1 %vm82_vm1, %v564_v52 }
  0x68   :  { %3055 = vmatprep.mubr.msk.f32.mxu1 %vm3476_vm2, %v3475_v0 }
  0x69   :  { %2889 = vmatmul.mubr.msk.f32.gmra.mxu0 %vm82_vm1, %v54_v53 }
  0x6a   :  { %2891 = vmatprep.mubr.msk.f32.mxu0 %vm3476_vm2, %v3475_v0 }
  0x6b   :  { %3056 = vmatmul.mubr.msk.f32.gmra.mxu1 %vm82_vm1, %v565_v54  ;;  %v1100_v54 = vld [vmem:[%s5516_s2 + $0x8] sm:$0xff] }
  0x6c   :  { %3058 = vmatprep.mubr.msk.f32.mxu1 %vm3476_vm2, %v3475_v0 }
  0x6d   :  { %2892 = vmatmul.mubr.msk.f32.gmra.mxu0 %vm82_vm1, %v55_v55 }
  0x6e   :  { %2894 = vmatprep.mubr.msk.f32.mxu0 %vm3476_vm2, %v3475_v0 }
  0x6f   :  { %3059 = vmatmul.mubr.msk.f32.gmra.mxu1 %vm82_vm1, %v566_v56 }
  0x70   :  { %3061 = vmatprep.mubr.msk.f32.mxu1 %vm3476_vm2, %v3475_v0 }
  0x71   :  { %2895 = vmatmul.mubr.msk.f32.gmra.mxu0 %vm82_vm1, %v56_v57 }
  0x72   :  { %2897 = vmatprep.mubr.msk.f32.mxu0 %vm3476_vm2, %v3475_v0 }
  0x73   :  { %3062 = vmatmul.mubr.msk.f32.gmra.mxu1 %vm82_vm1, %v567_v58  ;;  %v1655_v58 = vld [vmem:[%s5517_s3 + $0x8] sm:$0xff] }
  0x74   :  { %3064 = vmatprep.mubr.msk.f32.mxu1 %vm3476_vm2, %v3475_v0 }
  0x75   :  { %2898 = vmatmul.mubr.msk.f32.gmra.mxu0 %vm82_vm1, %v57_v59 }
  0x76   :  { %2900 = vmatprep.mubr.msk.f32.mxu0 %vm3476_vm2, %v3475_v0 }
  0x77   :  { %3065 = vmatmul.mubr.msk.f32.gmra.mxu1 %vm82_vm1, %v568_v60 }
  0x78   :  { %3067 = vmatprep.mubr.msk.f32.mxu1 %vm3476_vm2, %v3475_v0 }
  0x79   :  { %2901 = vmatmul.mubr.msk.f32.gmra.mxu0 %vm82_vm1, %v58_v61  ;;  %v1101_v61 = vld [vmem:[%s5516_s2 + $0x10] sm:$0xff] }
  0x7a   :  { %2903 = vmatprep.mubr.msk.f32.mxu0 %vm3476_vm2, %v3475_v0 }
  0x7b   :  { %3068 = vmatmul.mubr.msk.f32.gmra.mxu1 %vm82_vm1, %v569_v62 }
  0x7c   :  { %3070 = vmatprep.mubr.msk.f32.mxu1 %vm3476_vm2, %v3475_v0 }
  0x7d   :  { %2904 = vmatmul.mubr.msk.f32.gmra.mxu0 %vm82_vm1, %v59_v63 }
  0x7e   :  { %2906 = vmatprep.mubr.msk.f32.mxu0 %vm3476_vm2, %v3475_v0 }
  0x7f   :  { %3071 = vmatmul.mubr.msk.f32.gmra.mxu1 %vm82_vm1, %v570_v1 }
  0x80   :  { %3073 = vmatprep.mubr.msk.f32.mxu1 %vm3476_vm2, %v3475_v0 }
  0x81   :  { %2907 = vmatmul.mubr.msk.f32.gmra.mxu0 %vm82_vm1, %v60_v2  ;;  %v1656_v2 = vld [vmem:[%s5517_s3 + $0x10] sm:$0xff] }
  0x82   :  { %2909 = vmatprep.mubr.msk.f32.mxu0 %vm3476_vm2, %v3475_v0 }
  0x83   :  { %3074 = vmatmul.mubr.msk.f32.gmra.mxu1 %vm82_vm1, %v571_v3 }
  0x84   :  { %3076 = vmatprep.mubr.msk.f32.mxu1 %vm3476_vm2, %v3475_v0 }
  0x85   :  { %2910 = vmatmul.mubr.msk.f32.gmra.mxu0 %vm82_vm1, %v61_v4 }
  0x86   :  { %2912 = vmatprep.mubr.msk.f32.mxu0 %vm3476_vm2, %v3475_v0 }
  0x87   :  { %3077 = vmatmul.mubr.msk.f32.gmra.mxu1 %vm82_vm1, %v572_v5  ;;  %v1102_v5 = vld [vmem:[%s5516_s2 + $0x18] sm:$0xff] }
  0x88   :  { %3079 = vmatprep.mubr.msk.f32.mxu1 %vm3476_vm2, %v3475_v0 }
  0x89   :  { %2913 = vmatmul.mubr.msk.f32.gmra.mxu0 %vm82_vm1, %v62_v6 }
  0x8a   :  { %2915 = vmatprep.mubr.msk.f32.mxu0 %vm3476_vm2, %v3475_v0 }
  0x8b   :  { %3080 = vmatmul.mubr.msk.f32.gmra.mxu1 %vm82_vm1, %v573_v7 }
  0x8c   :  { %3082 = vmatprep.mubr.msk.f32.mxu1 %vm3476_vm2, %v3475_v0 }
  0x8d   :  { %2916 = vmatmul.mubr.msk.f32.gmra.mxu0 %vm82_vm1, %v63_v8 }
  0x8e   :  { %2918 = vmatprep.mubr.msk.f32.mxu0 %vm3476_vm2, %v3475_v0 }
  0x8f   :  { %3083 = vmatmul.mubr.msk.f32.gmra.mxu1 %vm82_vm1, %v574_v9  ;;  %v1657_v9 = vld [vmem:[%s5517_s3 + $0x18] sm:$0xff] }
  0x90   :  { %3085 = vmatprep.mubr.msk.f32.mxu1 %vm3476_vm2, %v3475_v0 }
  0x91   :  { %2919 = vmatmul.mubr.msk.f32.gmra.mxu0 %vm82_vm1, %v64_v10 }
  0x92   :  { %2921 = vmatprep.mubr.msk.f32.mxu0 %vm3476_vm2, %v3475_v0 }
  0x93   :  { %3086 = vmatmul.mubr.msk.f32.gmra.mxu1 %vm82_vm1, %v575_v11 }
  0x94   :  { %3088 = vmatprep.mubr.msk.f32.mxu1 %vm3476_vm2, %v3475_v0 }
  0x95   :  { %2922 = vmatmul.mubr.msk.f32.gmra.mxu0 %vm82_vm1, %v65_v12  ;;  %v1103_v12 = vld [vmem:[%s5516_s2 + $0x20] sm:$0xff] }
  0x96   :  { %2924 = vmatprep.mubr.msk.f32.mxu0 %vm3476_vm2, %v3475_v0 }
  0x97   :  { %3089 = vmatmul.mubr.msk.f32.gmra.mxu1 %vm82_vm1, %v576_v13 }
  0x98   :  { %3091 = vmatprep.mubr.msk.f32.mxu1 %vm3476_vm2, %v3475_v0 }
  0x99   :  { %2925 = vmatmul.mubr.msk.f32.gmra.mxu0 %vm82_vm1, %v66_v14 }
  0x9a   :  { %2927 = vmatprep.mubr.msk.f32.mxu0 %vm3476_vm2, %v3475_v0 }
  0x9b   :  { %3092 = vmatmul.mubr.msk.f32.gmra.mxu1 %vm82_vm1, %v577_v15 }
  0x9c   :  { %3094 = vmatprep.mubr.msk.f32.mxu1 %vm3476_vm2, %v3475_v0 }
  0x9d   :  { %2928 = vmatmul.mubr.msk.f32.gmra.mxu0 %vm82_vm1, %v67_v16  ;;  %v1658_v16 = vld [vmem:[%s5517_s3 + $0x20] sm:$0xff] }
  0x9e   :  { %2930 = vmatprep.mubr.msk.f32.mxu0 %vm3476_vm2, %v3475_v0 }
  0x9f   :  { %3095 = vmatmul.mubr.msk.f32.gmra.mxu1 %vm82_vm1, %v578_v17 }
  0xa0   :  { %3097 = vmatprep.mubr.msk.f32.mxu1 %vm3476_vm2, %v3475_v0 }
  0xa1   :  { %2931 = vmatmul.mubr.msk.f32.gmra.mxu0 %vm82_vm1, %v68_v18 }
  0xa2   :  { %2933 = vmatprep.mubr.msk.f32.mxu0 %vm3476_vm2, %v3475_v0 }
  0xa3   :  { %3098 = vmatmul.mubr.msk.f32.gmra.mxu1 %vm82_vm1, %v579_v19  ;;  %v1104_v19 = vld [vmem:[%s5516_s2 + $0x28] sm:$0xff] }
  0xa4   :  { %3100 = vmatprep.mubr.msk.f32.mxu1 %vm3476_vm2, %v3475_v0 }
  0xa5   :  { %2934 = vmatmul.mubr.msk.f32.gmra.mxu0 %vm82_vm1, %v69_v20 }
  0xa6   :  { %2936 = vmatprep.mubr.msk.f32.mxu0 %vm3476_vm2, %v3475_v0 }
  0xa7   :  { %3101 = vmatmul.mubr.msk.f32.gmra.mxu1 %vm82_vm1, %v580_v21 }
  0xa8   :  { %3103 = vmatprep.mubr.msk.f32.mxu1 %vm3476_vm2, %v3475_v0 }
  0xa9   :  { %2937 = vmatmul.mubr.msk.f32.gmra.mxu0 %vm82_vm1, %v70_v22 }
  0xaa   :  { %2939 = vmatprep.mubr.msk.f32.mxu0 %vm3476_vm2, %v3475_v0 }
  0xab   :  { %3104 = vmatmul.mubr.msk.f32.gmra.mxu1 %vm82_vm1, %v581_v23  ;;  %v1659_v23 = vld [vmem:[%s5517_s3 + $0x28] sm:$0xff] }
  0xac   :  { %3106 = vmatprep.mubr.msk.f32.mxu1 %vm3476_vm2, %v3475_v0 }
  0xad   :  { %2940 = vmatmul.mubr.msk.f32.gmra.mxu0 %vm82_vm1, %v71_v24 }
  0xae   :  { %2942 = vmatprep.mubr.msk.f32.mxu0 %vm3476_vm2, %v3475_v0 }
  0xaf   :  { %3107 = vmatmul.mubr.msk.f32.gmra.mxu1 %vm82_vm1, %v582_v25 }
  0xb0   :  { %3109 = vmatprep.mubr.msk.f32.mxu1 %vm3476_vm2, %v3475_v0 }
  0xb1   :  { %2943 = vmatmul.mubr.msk.f32.gmra.mxu0 %vm82_vm1, %v72_v26  ;;  %v1105_v26 = vld [vmem:[%s5516_s2 + $0x30] sm:$0xff] }
  0xb2   :  { %2945 = vmatprep.mubr.msk.f32.mxu0 %vm3476_vm2, %v3475_v0 }
  0xb3   :  { %3110 = vmatmul.mubr.msk.f32.gmra.mxu1 %vm82_vm1, %v583_v27 }
  0xb4   :  { %3112 = vmatprep.mubr.msk.f32.mxu1 %vm3476_vm2, %v3475_v0 }
  0xb5   :  { %2946 = vmatmul.mubr.msk.f32.gmra.mxu0 %vm82_vm1, %v73_v28 }
  0xb6   :  { %2948 = vmatprep.mubr.msk.f32.mxu0 %vm3476_vm2, %v3475_v0 }
  0xb7   :  { %3113 = vmatmul.mubr.msk.f32.gmra.mxu1 %vm82_vm1, %v584_v29 }
  0xb8   :  { %3115 = vmatprep.mubr.msk.f32.mxu1 %vm3476_vm2, %v3475_v0 }
  0xb9   :  { %2949 = vmatmul.mubr.msk.f32.gmra.mxu0 %vm82_vm1, %v74_v30  ;;  %v1660_v30 = vld [vmem:[%s5517_s3 + $0x30] sm:$0xff] }
  0xba   :  { %2951 = vmatprep.mubr.msk.f32.mxu0 %vm3476_vm2, %v3475_v0 }
  0xbb   :  { %3116 = vmatmul.mubr.msk.f32.gmra.mxu1 %vm82_vm1, %v585_v31 }
  0xbc   :  { %3118 = vmatprep.mubr.msk.f32.mxu1 %vm3476_vm2, %v3475_v0 }
  0xbd   :  { %2952 = vmatmul.mubr.msk.f32.gmra.mxu0 %vm82_vm1, %v75_v32 }
  0xbe   :  { %2954 = vmatprep.mubr.msk.f32.mxu0 %vm3476_vm2, %v3475_v0 }
  0xbf   :  { %3119 = vmatmul.mubr.msk.f32.gmra.mxu1 %vm82_vm1, %v586_v33  ;;  %v1106_v33 = vld [vmem:[%s5516_s2 + $0x38] sm:$0xff] }
  0xc0   :  { %3121 = vmatprep.mubr.msk.f32.mxu1 %vm3476_vm2, %v3475_v0 }
  0xc1   :  { %2955 = vmatmul.mubr.msk.f32.gmra.mxu0 %vm82_vm1, %v76_v34 }
  0xc2   :  { %2957 = vmatprep.mubr.msk.f32.mxu0 %vm3476_vm2, %v3475_v0 }
  0xc3   :  { %3122 = vmatmul.mubr.msk.f32.gmra.mxu1 %vm82_vm1, %v587_v35 }
  0xc4   :  { %3124 = vmatprep.mubr.msk.f32.mxu1 %vm3476_vm2, %v3475_v0 }
  0xc5   :  { %2958 = vmatmul.mubr.msk.f32.gmra.mxu0 %vm82_vm1, %v77_v36 }
  0xc6   :  { %2960 = vmatprep.mubr.msk.f32.mxu0 %vm3476_vm2, %v3475_v0 }
  0xc7   :  { %3125 = vmatmul.mubr.msk.f32.gmra.mxu1 %vm82_vm1, %v588_v37  ;;  %v1661_v37 = vld [vmem:[%s5517_s3 + $0x38] sm:$0xff] }
  0xc8   :  { %3127 = vmatprep.mubr.msk.f32.mxu1 %vm3476_vm2, %v3475_v0 }
  0xc9   :  { %2961 = vmatmul.mubr.msk.f32.gmra.mxu0 %vm82_vm1, %v78_v38 }
  0xca   :  { %2963 = vmatprep.mubr.msk.f32.mxu0 %vm3476_vm2, %v3475_v0 }
  0xcb   :  { %3128 = vmatmul.mubr.msk.f32.gmra.mxu1 %vm82_vm1, %v589_v39 }
  0xcc   :  { %3130 = vmatprep.mubr.msk.f32.mxu1 %vm3476_vm2, %v3475_v0 }
  0xcd   :  { %2964 = vmatmul.mubr.msk.f32.gmra.mxu0 %vm82_vm1, %v79_v40  ;;  %v1107_v40 = vld [vmem:[%s5516_s2 + $0x40] sm:$0xff] }
  0xce   :  { %2966 = vmatprep.mubr.msk.f32.mxu0 %vm3476_vm2, %v3475_v0 }
  0xcf   :  { %3131 = vmatmul.mubr.msk.f32.gmra.mxu1 %vm82_vm1, %v590_v41 }
  0xd0   :  { %3133 = vmatprep.mubr.msk.f32.mxu1 %vm3476_vm2, %v3475_v0 }
  0xd1   :  { %2967 = vmatmul.mubr.msk.f32.gmra.mxu0 %vm82_vm1, %v80_v42 }
  0xd2   :  { %2969 = vmatprep.mubr.msk.f32.mxu0 %vm3476_vm2, %v3475_v0 }
  0xd3   :  { %3134 = vmatmul.mubr.msk.f32.gmra.mxu1 %vm82_vm1, %v591_v43 }
  0xd4   :  { %3136 = vmatprep.mubr.msk.f32.mxu1 %vm3476_vm2, %v3475_v0 }
  0xd5   :  { %v4232_v46 = vpop.f32.mrf.mxu0  ;;  %2970 = vmatmul.mubr.msk.f32.gmra.mxu0 %vm82_vm1, %v81_v44  ;;  %v1662_v44 = vld [vmem:[%s5517_s3 + $0x40] sm:$0xff] }
  0xd6   :  { %3159 = vmatprep.mubr.msk.f32.mxu0 %vm3476_vm2, %v3475_v0 }
  0xd7   :  { %v4240_v48 = vpop.f32.mrf.mxu1  ;;  %3137 = vmatmul.mubr.msk.f32.gmra.mxu1 %vm82_vm1, %v592_v45  ;;  %v2827_v49 = vpop.f32.mrf.mxu0 }
  0xd8   :  { %3326 = vmatprep.mubr.msk.f32.mxu1 %vm3476_vm2, %v3475_v0  ;;  %v1108_v49 = vld [vmem:[%s5516_s2 + $0x48] sm:$0xff] }
  0xd9   :  { %v2994_v52 = vpop.f32.mrf.mxu1  ;;  %v4250_v53 = vpop.f32.mrf.mxu0  ;;  %3160 = vmatmul.mubr.msk.f32.vlgmr.msra.gmra.mxu0 %vm82_vm1, %v1099_v47 }
  0xda   :  { %3162 = vmatprep.mubr.msk.f32.mxu0 %vm3476_vm2, %v3475_v0 }
  0xdb   :  { %v4258_v55 = vpop.f32.mrf.mxu1  ;;  %3327 = vmatmul.mubr.msk.f32.vlgmr.msra.gmra.mxu1 %vm82_vm1, %v1654_v51  ;;  %v2830_v56 = vpop.f32.mrf.mxu0 }
  0xdc   :  { %3329 = vmatprep.mubr.msk.f32.mxu1 %vm3476_vm2, %v3475_v0  ;;  %v1663_v56 = vld [vmem:[%s5517_s3 + $0x48] sm:$0xff] }
  0xdd   :  { %v2997_v59 = vpop.f32.mrf.mxu1  ;;  %v4268_v60 = vpop.f32.mrf.mxu0  ;;  %3163 = vmatmul.mubr.msk.f32.gmra.mxu0 %vm82_vm1, %v1100_v54 }
  0xde   :  { %3165 = vmatprep.mubr.msk.f32.mxu0 %vm3476_vm2, %v3475_v0 }
  0xdf   :  { %v4276_v62 = vpop.f32.mrf.mxu1  ;;  %3330 = vmatmul.mubr.msk.f32.gmra.mxu1 %vm82_vm1, %v1655_v58  ;;  %v2833_v63 = vpop.f32.mrf.mxu0 }
  0xe0   :  { %3332 = vmatprep.mubr.msk.f32.mxu1 %vm3476_vm2, %v3475_v0 }
  0xe1   :  { %v3000_v3 = vpop.f32.mrf.mxu1  ;;  %v4286_v4 = vpop.f32.mrf.mxu0  ;;  %3166 = vmatmul.mubr.msk.f32.gmra.mxu0 %vm82_vm1, %v1101_v61  ;;  %v1109_v61 = vld [vmem:[%s5516_s2 + $0x50] sm:$0xff] }
  0xe2   :  { %3168 = vmatprep.mubr.msk.f32.mxu0 %vm3476_vm2, %v3475_v0 }
  0xe3   :  { %v4294_v6 = vpop.f32.mrf.mxu1  ;;  %3333 = vmatmul.mubr.msk.f32.gmra.mxu1 %vm82_vm1, %v1656_v2  ;;  %v2836_v7 = vpop.f32.mrf.mxu0 }
  0xe4   :  { %3335 = vmatprep.mubr.msk.f32.mxu1 %vm3476_vm2, %v3475_v0 }
  0xe5   :  { %v3003_v10 = vpop.f32.mrf.mxu1  ;;  %v4304_v11 = vpop.f32.mrf.mxu0  ;;  %3169 = vmatmul.mubr.msk.f32.gmra.mxu0 %vm82_vm1, %v1102_v5  ;;  %v1664_v5 = vld [vmem:[%s5517_s3 + $0x50] sm:$0xff] }
  0xe6   :  { %3171 = vmatprep.mubr.msk.f32.mxu0 %vm3476_vm2, %v3475_v0  ;;  %v1110_v10 = vld [vmem:[%s5516_s2 + $0x58] sm:$0xff] }
  0xe7   :  { %v4312_v13 = vpop.f32.mrf.mxu1  ;;  %3336 = vmatmul.mubr.msk.f32.gmra.mxu1 %vm82_vm1, %v1657_v9  ;;  %v2839_v14 = vpop.f32.mrf.mxu0 }
  0xe8   :  { %3338 = vmatprep.mubr.msk.f32.mxu1 %vm3476_vm2, %v3475_v0 }
  0xe9   :  { %v3006_v17 = vpop.f32.mrf.mxu1  ;;  %v4322_v18 = vpop.f32.mrf.mxu0  ;;  %3172 = vmatmul.mubr.msk.f32.gmra.mxu0 %vm82_vm1, %v1103_v12 }
  0xea   :  { %3174 = vmatprep.mubr.msk.f32.mxu0 %vm3476_vm2, %v3475_v0  ;;  %v1665_v17 = vld [vmem:[%s5517_s3 + $0x58] sm:$0xff] }
  0xeb   :  { %v4330_v20 = vpop.f32.mrf.mxu1  ;;  %3339 = vmatmul.mubr.msk.f32.gmra.mxu1 %vm82_vm1, %v1658_v16  ;;  %v2842_v21 = vpop.f32.mrf.mxu0 }
  0xec   :  { %3341 = vmatprep.mubr.msk.f32.mxu1 %vm3476_vm2, %v3475_v0 }
  0xed   :  { %v3009_v24 = vpop.f32.mrf.mxu1  ;;  %v4340_v25 = vpop.f32.mrf.mxu0  ;;  %3175 = vmatmul.mubr.msk.f32.gmra.mxu0 %vm82_vm1, %v1104_v19 }
  0xee   :  { %3177 = vmatprep.mubr.msk.f32.mxu0 %vm3476_vm2, %v3475_v0 }
  0xef   :  { %v4348_v27 = vpop.f32.mrf.mxu1  ;;  %3342 = vmatmul.mubr.msk.f32.gmra.mxu1 %vm82_vm1, %v1659_v23  ;;  %v2845_v28 = vpop.f32.mrf.mxu0  ;;  %v1111_v23 = vld [vmem:[%s5516_s2 + $0x60] sm:$0xff] }
  0xf0   :  { %3344 = vmatprep.mubr.msk.f32.mxu1 %vm3476_vm2, %v3475_v0 }
  0xf1   :  { %v3012_v31 = vpop.f32.mrf.mxu1  ;;  %v4358_v32 = vpop.f32.mrf.mxu0  ;;  %3178 = vmatmul.mubr.msk.f32.gmra.mxu0 %vm82_vm1, %v1105_v26 }
  0xf2   :  { %3180 = vmatprep.mubr.msk.f32.mxu0 %vm3476_vm2, %v3475_v0 }
  0xf3   :  { %v4366_v34 = vpop.f32.mrf.mxu1  ;;  %3345 = vmatmul.mubr.msk.f32.gmra.mxu1 %vm82_vm1, %v1660_v30  ;;  %v2848_v35 = vpop.f32.mrf.mxu0  ;;  %v1666_v30 = vld [vmem:[%s5517_s3 + $0x60] sm:$0xff] }
  0xf4   :  { %3347 = vmatprep.mubr.msk.f32.mxu1 %vm3476_vm2, %v3475_v0  ;;  %v1112_v35 = vld [vmem:[%s5516_s2 + $0x68] sm:$0xff] }
  0xf5   :  { %v3015_v38 = vpop.f32.mrf.mxu1  ;;  %v4376_v39 = vpop.f32.mrf.mxu0  ;;  %3181 = vmatmul.mubr.msk.f32.gmra.mxu0 %vm82_vm1, %v1106_v33 }
  0xf6   :  { %3183 = vmatprep.mubr.msk.f32.mxu0 %vm3476_vm2, %v3475_v0 }
  0xf7   :  { %v4384_v41 = vpop.f32.mrf.mxu1  ;;  %3348 = vmatmul.mubr.msk.f32.gmra.mxu1 %vm82_vm1, %v1661_v37  ;;  %v2851_v42 = vpop.f32.mrf.mxu0 }
  0xf8   :  { %3350 = vmatprep.mubr.msk.f32.mxu1 %vm3476_vm2, %v3475_v0  ;;  %v1667_v42 = vld [vmem:[%s5517_s3 + $0x68] sm:$0xff] }
  0xf9   :  { %v3018_v45 = vpop.f32.mrf.mxu1  ;;  %v4394_v47 = vpop.f32.mrf.mxu0  ;;  %3184 = vmatmul.mubr.msk.f32.gmra.mxu0 %vm82_vm1, %v1107_v40 }
  0xfa   :  { %3186 = vmatprep.mubr.msk.f32.mxu0 %vm3476_vm2, %v3475_v0 }
  0xfb   :  { %v4402_v51 = vpop.f32.mrf.mxu1  ;;  %3351 = vmatmul.mubr.msk.f32.gmra.mxu1 %vm82_vm1, %v1662_v44  ;;  %v2854_v52 = vpop.f32.mrf.mxu0 }
  0xfc   :  { %3353 = vmatprep.mubr.msk.f32.mxu1 %vm3476_vm2, %v3475_v0 }
  0xfd   :  { %v3021_v58 = vpop.f32.mrf.mxu1  ;;  %v4412_v59 = vpop.f32.mrf.mxu0  ;;  %3187 = vmatmul.mubr.msk.f32.gmra.mxu0 %vm82_vm1, %v1108_v49  ;;  %v1113_v49 = vld [vmem:[%s5516_s2 + $0x70] sm:$0xff] }
  0xfe   :  { %3189 = vmatprep.mubr.msk.f32.mxu0 %vm3476_vm2, %v3475_v0 }
  0xff   :  { %v4420_v63 = vpop.f32.mrf.mxu1  ;;  %3354 = vmatmul.mubr.msk.f32.gmra.mxu1 %vm82_vm1, %v1663_v56  ;;  %v2857_v2 = vpop.f32.mrf.mxu0 }
 0x100   :  { %3356 = vmatprep.mubr.msk.f32.mxu1 %vm3476_vm2, %v3475_v0 }
 0x101   :  { %v3024_v7 = vpop.f32.mrf.mxu1  ;;  %v4430_v9 = vpop.f32.mrf.mxu0  ;;  %3190 = vmatmul.mubr.msk.f32.gmra.mxu0 %vm82_vm1, %v1109_v61  ;;  %v1668_v61 = vld [vmem:[%s5517_s3 + $0x70] sm:$0xff] }
 0x102   :  { %3192 = vmatprep.mubr.msk.f32.mxu0 %vm3476_vm2, %v3475_v0  ;;  %v1114_v7 = vld [vmem:[%s5516_s2 + $0x78] sm:$0xff] }
 0x103   :  { %v4438_v12 = vpop.f32.mrf.mxu1  ;;  %3357 = vmatmul.mubr.msk.f32.gmra.mxu1 %vm82_vm1, %v1664_v5  ;;  %v2860_v14 = vpop.f32.mrf.mxu0 }
 0x104   :  { %3359 = vmatprep.mubr.msk.f32.mxu1 %vm3476_vm2, %v3475_v0 }
 0x105   :  { %v3027_v19 = vpop.f32.mrf.mxu1  ;;  %v4448_v21 = vpop.f32.mrf.mxu0  ;;  %3193 = vmatmul.mubr.msk.f32.gmra.mxu0 %vm82_vm1, %v1110_v10 }
 0x106   :  { %3195 = vmatprep.mubr.msk.f32.mxu0 %vm3476_vm2, %v3475_v0  ;;  %v1669_v19 = vld [vmem:[%s5517_s3 + $0x78] sm:$0xff] }
 0x107   :  { %v4456_v24 = vpop.f32.mrf.mxu1  ;;  %3360 = vmatmul.mubr.msk.f32.gmra.mxu1 %vm82_vm1, %v1665_v17  ;;  %v2863_v26 = vpop.f32.mrf.mxu0 }
 0x108   :  { %3362 = vmatprep.mubr.msk.f32.mxu1 %vm3476_vm2, %v3475_v0 }
 0x109   :  { %v3030_v31 = vpop.f32.mrf.mxu1  ;;  %v4466_v33 = vpop.f32.mrf.mxu0  ;;  %3196 = vmatmul.mubr.msk.f32.gmra.mxu0 %vm82_vm1, %v1111_v23 }
 0x10a   :  { %3198 = vmatprep.mubr.msk.f32.mxu0 %vm3476_vm2, %v3475_v0 }
 0x10b   :  { %v4474_v37 = vpop.f32.mrf.mxu1  ;;  %3363 = vmatmul.mubr.msk.f32.gmra.mxu1 %vm82_vm1, %v1666_v30  ;;  %v2866_v38 = vpop.f32.mrf.mxu0  ;;  %v1115_v30 = vld [vmem:[%s5516_s2 + $0x80] sm:$0xff] }
 0x10c   :  { %3365 = vmatprep.mubr.msk.f32.mxu1 %vm3476_vm2, %v3475_v0 }
 0x10d   :  { %v3033_v44 = vpop.f32.mrf.mxu1  ;;  %v4484_v45 = vpop.f32.mrf.mxu0  ;;  %3199 = vmatmul.mubr.msk.f32.gmra.mxu0 %vm82_vm1, %v1112_v35 }
 0x10e   :  { %3201 = vmatprep.mubr.msk.f32.mxu0 %vm3476_vm2, %v3475_v0 }
 0x10f   :  { %v4492_v52 = vpop.f32.mrf.mxu1  ;;  %3366 = vmatmul.mubr.msk.f32.gmra.mxu1 %vm82_vm1, %v1667_v42  ;;  %v2869_v56 = vpop.f32.mrf.mxu0  ;;  %v1670_v42 = vld [vmem:[%s5517_s3 + $0x80] sm:$0xff] }
 0x110   :  { %3368 = vmatprep.mubr.msk.f32.mxu1 %vm3476_vm2, %v3475_v0  ;;  %v1116_v56 = vld [vmem:[%s5516_s2 + $0x88] sm:$0xff] }
 0x111   :  { %v3036_v2 = vpop.f32.mrf.mxu1  ;;  %v4502_v5 = vpop.f32.mrf.mxu0  ;;  %3202 = vmatmul.mubr.msk.f32.gmra.mxu0 %vm82_vm1, %v1113_v49 }
 0x112   :  { %3204 = vmatprep.mubr.msk.f32.mxu0 %vm3476_vm2, %v3475_v0 }
 0x113   :  { %v4510_v10 = vpop.f32.mrf.mxu1  ;;  %3369 = vmatmul.mubr.msk.f32.gmra.mxu1 %vm82_vm1, %v1668_v61  ;;  %v2872_v14 = vpop.f32.mrf.mxu0 }
 0x114   :  { %3371 = vmatprep.mubr.msk.f32.mxu1 %vm3476_vm2, %v3475_v0  ;;  %v1671_v14 = vld [vmem:[%s5517_s3 + $0x88] sm:$0xff] }
 0x115   :  { %v3039_v23 = vpop.f32.mrf.mxu1  ;;  %v4520_v26 = vpop.f32.mrf.mxu0  ;;  %3205 = vmatmul.mubr.msk.f32.gmra.mxu0 %vm82_vm1, %v1114_v7 }
 0x116   :  { %3207 = vmatprep.mubr.msk.f32.mxu0 %vm3476_vm2, %v3475_v0 }
 0x117   :  { %v4528_v31 = vpop.f32.mrf.mxu1  ;;  %3372 = vmatmul.mubr.msk.f32.gmra.mxu1 %vm82_vm1, %v1669_v19  ;;  %v2875_v35 = vpop.f32.mrf.mxu0 }
 0x118   :  { %3374 = vmatprep.mubr.msk.f32.mxu1 %vm3476_vm2, %v3475_v0 }
 0x119   :  { %v3042_v44 = vpop.f32.mrf.mxu1  ;;  %v4538_v49 = vpop.f32.mrf.mxu0  ;;  %3208 = vmatmul.mubr.msk.f32.gmra.mxu0 %vm82_vm1, %v1115_v30  ;;  %v1117_v30 = vld [vmem:[%s5516_s2 + $0x90] sm:$0xff] }
 0x11a   :  { %3210 = vmatprep.mubr.msk.f32.mxu0 %vm3476_vm2, %v3475_v0 }
 0x11b   :  { %v4546_v61 = vpop.f32.mrf.mxu1  ;;  %3375 = vmatmul.mubr.msk.f32.gmra.mxu1 %vm82_vm1, %v1670_v42  ;;  %v2878_v2 = vpop.f32.mrf.mxu0 }
 0x11c   :  { %3377 = vmatprep.mubr.msk.f32.mxu1 %vm3476_vm2, %v3475_v0 }
 0x11d   :  { %v3045_v19 = vpop.f32.mrf.mxu1  ;;  %v4556_v23 = vpop.f32.mrf.mxu0  ;;  %3211 = vmatmul.mubr.msk.f32.gmra.mxu0 %vm82_vm1, %v1116_v56  ;;  %v1672_v56 = vld [vmem:[%s5517_s3 + $0x90] sm:$0xff] }
 0x11e   :  { %3213 = vmatprep.mubr.msk.f32.mxu0 %vm3476_vm2, %v3475_v0 }
 0x11f   :  { %v4564_v35 = vpop.f32.mrf.mxu1  ;;  %3378 = vmatmul.mubr.msk.f32.gmra.mxu1 %vm82_vm1, %v1671_v14  ;;  %v2881_v42 = vpop.f32.mrf.mxu0  ;;  %v1118_v14 = vld [vmem:[%s5516_s2 + $0x98] sm:$0xff] }
 0x120   :  { %3380 = vmatprep.mubr.msk.f32.mxu1 %vm3476_vm2, %v3475_v0 }
 0x121   :  { %v3048_v2 = vpop.f32.mrf.mxu1  ;;  %v4574_v19 = vpop.f32.mrf.mxu0  ;;  %3214 = vmatmul.mubr.msk.f32.gmra.mxu0 %vm82_vm1, %v1117_v30  ;;  %v1673_v30 = vld [vmem:[%s5517_s3 + $0x98] sm:$0xff] }
 0x122   :  { %3216 = vmatprep.mubr.msk.f32.mxu0 %vm3476_vm2, %v3475_v0 }
 0x123   :  { %v4582_v42 = vpop.f32.mrf.mxu1  ;;  %3381 = vmatmul.mubr.msk.f32.gmra.mxu1 %vm82_vm1, %v1672_v56  ;;  %v2884_v44 = vpop.f32.mrf.mxu0 }
 0x124   :  { %3383 = vmatprep.mubr.msk.f32.mxu1 %vm3476_vm2, %v3475_v0  ;;  %v1119_v44 = vld [vmem:[%s5516_s2 + $0xa0] sm:$0xff] }
 0x125   :  { %v3051_v2 = vpop.f32.mrf.mxu1  ;;  %v4592_v38 = vpop.f32.mrf.mxu0  ;;  %3217 = vmatmul.mubr.msk.f32.gmra.mxu0 %vm82_vm1, %v1118_v14  ;;  %v1674_v14 = vld [vmem:[%s5517_s3 + $0xa0] sm:$0xff] }
 0x126   :  { %3219 = vmatprep.mubr.msk.f32.mxu0 %vm3476_vm2, %v3475_v0 }
 0x127   :  { %v4600_v56 = vpop.f32.mrf.mxu1  ;;  %3384 = vmatmul.mubr.msk.f32.gmra.mxu1 %vm82_vm1, %v1673_v30  ;;  %v2887_v7 = vpop.f32.mrf.mxu0 }
 0x128   :  { %3386 = vmatprep.mubr.msk.f32.mxu1 %vm3476_vm2, %v3475_v0  ;;  %v1120_v7 = vld [vmem:[%s5516_s2 + $0xa8] sm:$0xff] }
 0x129   :  { %v3054_v2 = vpop.f32.mrf.mxu1  ;;  %v4610_v58 = vpop.f32.mrf.mxu0  ;;  %3220 = vmatmul.mubr.msk.f32.gmra.mxu0 %vm82_vm1, %v1119_v44  ;;  %v1675_v44 = vld [vmem:[%s5517_s3 + $0xa8] sm:$0xff] }
 0x12a   :  { %3222 = vmatprep.mubr.msk.f32.mxu0 %vm3476_vm2, %v3475_v0 }
 0x12b   :  { %v4618_v30 = vpop.f32.mrf.mxu1  ;;  %3387 = vmatmul.mubr.msk.f32.gmra.mxu1 %vm82_vm1, %v1674_v14  ;;  %v2890_v17 = vpop.f32.mrf.mxu0 }
 0x12c   :  { %3389 = vmatprep.mubr.msk.f32.mxu1 %vm3476_vm2, %v3475_v0  ;;  %v1121_v17 = vld [vmem:[%s5516_s2 + $0xb0] sm:$0xff] }
 0x12d   :  { %v3057_v2 = vpop.f32.mrf.mxu1  ;;  %v4628_v28 = vpop.f32.mrf.mxu0  ;;  %3223 = vmatmul.mubr.msk.f32.gmra.mxu0 %vm82_vm1, %v1120_v7  ;;  %v1676_v7 = vld [vmem:[%s5517_s3 + $0xb0] sm:$0xff] }
 0x12e   :  { %3225 = vmatprep.mubr.msk.f32.mxu0 %vm3476_vm2, %v3475_v0 }
 0x12f   :  { %v4636_v14 = vpop.f32.mrf.mxu1  ;;  %3390 = vmatmul.mubr.msk.f32.gmra.mxu1 %vm82_vm1, %v1675_v44  ;;  %v2893_v40 = vpop.f32.mrf.mxu0 }
 0x130   :  { %3392 = vmatprep.mubr.msk.f32.mxu1 %vm3476_vm2, %v3475_v0  ;;  %v1122_v40 = vld [vmem:[%s5516_s2 + $0xb8] sm:$0xff] }
 0x131   :  { %v3060_v2 = vpop.f32.mrf.mxu1  ;;  %v4646_v3 = vpop.f32.mrf.mxu0  ;;  %3226 = vmatmul.mubr.msk.f32.gmra.mxu0 %vm82_vm1, %v1121_v17  ;;  %v1677_v17 = vld [vmem:[%s5517_s3 + $0xb8] sm:$0xff] }
 0x132   :  { %3228 = vmatprep.mubr.msk.f32.mxu0 %vm3476_vm2, %v3475_v0 }
 0x133   :  { %v4654_v44 = vpop.f32.mrf.mxu1  ;;  %3393 = vmatmul.mubr.msk.f32.gmra.mxu1 %vm82_vm1, %v1676_v7  ;;  %v2896_v16 = vpop.f32.mrf.mxu0 }
 0x134   :  { %3395 = vmatprep.mubr.msk.f32.mxu1 %vm3476_vm2, %v3475_v0  ;;  %v1123_v16 = vld [vmem:[%s5516_s2 + $0xc0] sm:$0xff] }
 0x135   :  { %v3063_v2 = vpop.f32.mrf.mxu1  ;;  %v4664_v43 = vpop.f32.mrf.mxu0  ;;  %3229 = vmatmul.mubr.msk.f32.gmra.mxu0 %vm82_vm1, %v1122_v40  ;;  %v1678_v40 = vld [vmem:[%s5517_s3 + $0xc0] sm:$0xff] }
 0x136   :  { %3231 = vmatprep.mubr.msk.f32.mxu0 %vm3476_vm2, %v3475_v0 }
 0x137   :  { %v4672_v7 = vpop.f32.mrf.mxu1  ;;  %3396 = vmatmul.mubr.msk.f32.gmra.mxu1 %vm82_vm1, %v1677_v17  ;;  %v2899_v54 = vpop.f32.mrf.mxu0 }
 0x138   :  { %5569 = vst [vmem:[#allocation2_spill] sm:$0xff] %v4672_v7  ;;  %3398 = vmatprep.mubr.msk.f32.mxu1 %vm3476_vm2, %v3475_v0  ;;  %v1124_v54 = vld [vmem:[%s5516_s2 + $0xc8] sm:$0xff] }
 0x139   :  { %v3066_v2 = vpop.f32.mrf.mxu1  ;;  %v4682_v29 = vpop.f32.mrf.mxu0  ;;  %3232 = vmatmul.mubr.msk.f32.gmra.mxu0 %vm82_vm1, %v1123_v16  ;;  %v1679_v16 = vld [vmem:[%s5517_s3 + $0xc8] sm:$0xff] }
 0x13a   :  { %5570 = vst [vmem:[#allocation3_spill] sm:$0xff] %v4682_v29  ;;  %3234 = vmatprep.mubr.msk.f32.mxu0 %vm3476_vm2, %v3475_v0 }
 0x13b   :  { %v4690_v17 = vpop.f32.mrf.mxu1  ;;  %3399 = vmatmul.mubr.msk.f32.gmra.mxu1 %vm82_vm1, %v1678_v40  ;;  %v2902_v36 = vpop.f32.mrf.mxu0 }
 0x13c   :  { %5571 = vst [vmem:[#allocation4_spill] sm:$0xff] %v4690_v17  ;;  %3401 = vmatprep.mubr.msk.f32.mxu1 %vm3476_vm2, %v3475_v0  ;;  %v1125_v36 = vld [vmem:[%s5516_s2 + $0xd0] sm:$0xff] }
 0x13d   :  { %v3069_v2 = vpop.f32.mrf.mxu1  ;;  %v4700_v15 = vpop.f32.mrf.mxu0  ;;  %3235 = vmatmul.mubr.msk.f32.gmra.mxu0 %vm82_vm1, %v1124_v54  ;;  %v1680_v54 = vld [vmem:[%s5517_s3 + $0xd0] sm:$0xff] }
 0x13e   :  { %5572 = vst [vmem:[#allocation5_spill] sm:$0xff] %v4700_v15  ;;  %3237 = vmatprep.mubr.msk.f32.mxu0 %vm3476_vm2, %v3475_v0 }
 0x13f   :  { %v4708_v40 = vpop.f32.mrf.mxu1  ;;  %3402 = vmatmul.mubr.msk.f32.gmra.mxu1 %vm82_vm1, %v1679_v16  ;;  %v2905_v22 = vpop.f32.mrf.mxu0 }
 0x140   :  { %5573 = vst [vmem:[#allocation6_spill] sm:$0xff] %v4708_v40  ;;  %3404 = vmatprep.mubr.msk.f32.mxu1 %vm3476_vm2, %v3475_v0  ;;  %v1126_v22 = vld [vmem:[%s5516_s2 + $0xd8] sm:$0xff]  ;;  %v5618_v40 = vmax.f32 %v4232_v46, %v4240_v48 }
 0x141   :  { %v3072_v2 = vpop.f32.mrf.mxu1  ;;  %v4718_v1 = vpop.f32.mrf.mxu0  ;;  %3238 = vmatmul.mubr.msk.f32.gmra.mxu0 %vm82_vm1, %v1125_v36  ;;  %v1681_v36 = vld [vmem:[%s5517_s3 + $0xd8] sm:$0xff] }
 0x142   :  { %5574 = vst [vmem:[#allocation7_spill] sm:$0xff] %v4718_v1  ;;  %3240 = vmatprep.mubr.msk.f32.mxu0 %vm3476_vm2, %v3475_v0 }
 0x143   :  { %v4726_v16 = vpop.f32.mrf.mxu1  ;;  %3405 = vmatmul.mubr.msk.f32.gmra.mxu1 %vm82_vm1, %v1680_v54  ;;  %v2908_v8 = vpop.f32.mrf.mxu0 }
 0x144   :  { %5575 = vst [vmem:[#allocation8_spill] sm:$0xff] %v4726_v16  ;;  %3407 = vmatprep.mubr.msk.f32.mxu1 %vm3476_vm2, %v3475_v0  ;;  %v1127_v8 = vld [vmem:[%s5516_s2 + $0xe0] sm:$0xff] }
 0x145   :  { %v3075_v2 = vpop.f32.mrf.mxu1  ;;  %v4736_v50 = vpop.f32.mrf.mxu0  ;;  %3241 = vmatmul.mubr.msk.f32.gmra.mxu0 %vm82_vm1, %v1126_v22  ;;  %v1682_v22 = vld [vmem:[%s5517_s3 + $0xe0] sm:$0xff] }
 0x146   :  { %5576 = vst [vmem:[#allocation9_spill] sm:$0xff] %v4736_v50  ;;  %3243 = vmatprep.mubr.msk.f32.mxu0 %vm3476_vm2, %v3475_v0 }
 0x147   :  { %v4744_v54 = vpop.f32.mrf.mxu1  ;;  %3408 = vmatmul.mubr.msk.f32.gmra.mxu1 %vm82_vm1, %v1681_v36  ;;  %v2911_v57 = vpop.f32.mrf.mxu0 }
 0x148   :  { %5577 = vst [vmem:[#allocation10_spill] sm:$0xff] %v4744_v54  ;;  %3410 = vmatprep.mubr.msk.f32.mxu1 %vm3476_vm2, %v3475_v0  ;;  %v1128_v57 = vld [vmem:[%s5516_s2 + $0xe8] sm:$0xff] }
 0x149   :  { %v3078_v2 = vpop.f32.mrf.mxu1  ;;  %v4754_v1 = vpop.f32.mrf.mxu0  ;;  %3244 = vmatmul.mubr.msk.f32.gmra.mxu0 %vm82_vm1, %v1127_v8  ;;  %v1683_v8 = vld [vmem:[%s5517_s3 + $0xe8] sm:$0xff] }
 0x14a   :  { %5578 = vst [vmem:[#allocation11_spill] sm:$0xff] %v4754_v1  ;;  %3246 = vmatprep.mubr.msk.f32.mxu0 %vm3476_vm2, %v3475_v0 }
 0x14b   :  { %v4762_v36 = vpop.f32.mrf.mxu1  ;;  %3411 = vmatmul.mubr.msk.f32.gmra.mxu1 %vm82_vm1, %v1682_v22  ;;  %v2914_v16 = vpop.f32.mrf.mxu0 }
 0x14c   :  { %5579 = vst [vmem:[#allocation12_spill] sm:$0xff] %v4762_v36  ;;  %3413 = vmatprep.mubr.msk.f32.mxu1 %vm3476_vm2, %v3475_v0  ;;  %v1129_v16 = vld [vmem:[%s5516_s2 + $0xf0] sm:$0xff] }
 0x14d   :  { %v3081_v2 = vpop.f32.mrf.mxu1  ;;  %v4772_v50 = vpop.f32.mrf.mxu0  ;;  %3247 = vmatmul.mubr.msk.f32.gmra.mxu0 %vm82_vm1, %v1128_v57  ;;  %v1684_v57 = vld [vmem:[%s5517_s3 + $0xf0] sm:$0xff] }
 0x14e   :  { %5580 = vst [vmem:[#allocation13_spill] sm:$0xff] %v4772_v50  ;;  %3249 = vmatprep.mubr.msk.f32.mxu0 %vm3476_vm2, %v3475_v0 }
 0x14f   :  { %v4780_v22 = vpop.f32.mrf.mxu1  ;;  %3414 = vmatmul.mubr.msk.f32.gmra.mxu1 %vm82_vm1, %v1683_v8  ;;  %v2917_v54 = vpop.f32.mrf.mxu0 }
 0x150   :  { %5581 = vst [vmem:[#allocation14_spill] sm:$0xff] %v4780_v22  ;;  %3416 = vmatprep.mubr.msk.f32.mxu1 %vm3476_vm2, %v3475_v0  ;;  %v1130_v54 = vld [vmem:[%s5516_s2 + $0xf8] sm:$0xff] }
 0x151   :  { %v3084_v2 = vpop.f32.mrf.mxu1  ;;  %v4790_v1 = vpop.f32.mrf.mxu0  ;;  %3250 = vmatmul.mubr.msk.f32.gmra.mxu0 %vm82_vm1, %v1129_v16  ;;  %v1685_v16 = vld [vmem:[%s5517_s3 + $0xf8] sm:$0xff] }
 0x152   :  { %5582 = vst [vmem:[#allocation15_spill] sm:$0xff] %v4790_v1  ;;  %3252 = vmatprep.mubr.msk.f32.mxu0 %vm3476_vm2, %v3475_v0 }
 0x153   :  { %v4798_v8 = vpop.f32.mrf.mxu1  ;;  %3417 = vmatmul.mubr.msk.f32.gmra.mxu1 %vm82_vm1, %v1684_v57  ;;  %v2920_v36 = vpop.f32.mrf.mxu0 }
 0x154   :  { %5583 = vst [vmem:[#allocation16_spill] sm:$0xff] %v4798_v8  ;;  %3419 = vmatprep.mubr.msk.f32.mxu1 %vm3476_vm2, %v3475_v0  ;;  %v1131_v36 = vld [vmem:[%s5516_s2 + $0x100] sm:$0xff] }
 0x155   :  { %v3087_v2 = vpop.f32.mrf.mxu1  ;;  %v4808_v50 = vpop.f32.mrf.mxu0  ;;  %3253 = vmatmul.mubr.msk.f32.gmra.mxu0 %vm82_vm1, %v1130_v54  ;;  %v1686_v54 = vld [vmem:[%s5517_s3 + $0x100] sm:$0xff] }
 0x156   :  { %5584 = vst [vmem:[#allocation17_spill] sm:$0xff] %v4808_v50  ;;  %3255 = vmatprep.mubr.msk.f32.mxu0 %vm3476_vm2, %v3475_v0 }
 0x157   :  { %v4816_v57 = vpop.f32.mrf.mxu1  ;;  %3420 = vmatmul.mubr.msk.f32.gmra.mxu1 %vm82_vm1, %v1685_v16  ;;  %v2923_v22 = vpop.f32.mrf.mxu0 }
 0x158   :  { %5585 = vst [vmem:[#allocation18_spill] sm:$0xff] %v4816_v57  ;;  %3422 = vmatprep.mubr.msk.f32.mxu1 %vm3476_vm2, %v3475_v0  ;;  %v1132_v22 = vld [vmem:[%s5516_s2 + $0x108] sm:$0xff] }
 0x159   :  { %v3090_v2 = vpop.f32.mrf.mxu1  ;;  %v4826_v1 = vpop.f32.mrf.mxu0  ;;  %3256 = vmatmul.mubr.msk.f32.gmra.mxu0 %vm82_vm1, %v1131_v36  ;;  %v1687_v36 = vld [vmem:[%s5517_s3 + $0x108] sm:$0xff] }
 0x15a   :  { %5586 = vst [vmem:[#allocation19_spill] sm:$0xff] %v4826_v1  ;;  %3258 = vmatprep.mubr.msk.f32.mxu0 %vm3476_vm2, %v3475_v0 }
 0x15b   :  { %v4834_v16 = vpop.f32.mrf.mxu1  ;;  %3423 = vmatmul.mubr.msk.f32.gmra.mxu1 %vm82_vm1, %v1686_v54  ;;  %v2926_v8 = vpop.f32.mrf.mxu0 }
 0x15c   :  { %5587 = vst [vmem:[#allocation20_spill] sm:$0xff] %v4834_v16  ;;  %3425 = vmatprep.mubr.msk.f32.mxu1 %vm3476_vm2, %v3475_v0  ;;  %v1133_v8 = vld [vmem:[%s5516_s2 + $0x110] sm:$0xff] }
 0x15d   :  { %v3093_v2 = vpop.f32.mrf.mxu1  ;;  %v4844_v50 = vpop.f32.mrf.mxu0  ;;  %3259 = vmatmul.mubr.msk.f32.gmra.mxu0 %vm82_vm1, %v1132_v22  ;;  %v1688_v22 = vld [vmem:[%s5517_s3 + $0x110] sm:$0xff] }
 0x15e   :  { %5588 = vst [vmem:[#allocation21_spill] sm:$0xff] %v4844_v50  ;;  %3261 = vmatprep.mubr.msk.f32.mxu0 %vm3476_vm2, %v3475_v0 }
 0x15f   :  { %v4852_v54 = vpop.f32.mrf.mxu1  ;;  %3426 = vmatmul.mubr.msk.f32.gmra.mxu1 %vm82_vm1, %v1687_v36  ;;  %v2929_v57 = vpop.f32.mrf.mxu0 }
 0x160   :  { %5589 = vst [vmem:[#allocation22_spill] sm:$0xff] %v4852_v54  ;;  %3428 = vmatprep.mubr.msk.f32.mxu1 %vm3476_vm2, %v3475_v0  ;;  %v1134_v57 = vld [vmem:[%s5516_s2 + $0x118] sm:$0xff] }
 0x161   :  { %v3096_v2 = vpop.f32.mrf.mxu1  ;;  %v4862_v1 = vpop.f32.mrf.mxu0  ;;  %3262 = vmatmul.mubr.msk.f32.gmra.mxu0 %vm82_vm1, %v1133_v8  ;;  %v1689_v8 = vld [vmem:[%s5517_s3 + $0x118] sm:$0xff] }
 0x162   :  { %5590 = vst [vmem:[#allocation23_spill] sm:$0xff] %v4862_v1  ;;  %3264 = vmatprep.mubr.msk.f32.mxu0 %vm3476_vm2, %v3475_v0 }
 0x163   :  { %v4870_v36 = vpop.f32.mrf.mxu1  ;;  %3429 = vmatmul.mubr.msk.f32.gmra.mxu1 %vm82_vm1, %v1688_v22  ;;  %v2932_v16 = vpop.f32.mrf.mxu0 }
 0x164   :  { %5591 = vst [vmem:[#allocation24_spill] sm:$0xff] %v4870_v36  ;;  %3431 = vmatprep.mubr.msk.f32.mxu1 %vm3476_vm2, %v3475_v0  ;;  %v1135_v16 = vld [vmem:[%s5516_s2 + $0x120] sm:$0xff] }
 0x165   :  { %v3099_v2 = vpop.f32.mrf.mxu1  ;;  %v4880_v50 = vpop.f32.mrf.mxu0  ;;  %3265 = vmatmul.mubr.msk.f32.gmra.mxu0 %vm82_vm1, %v1134_v57  ;;  %v1690_v57 = vld [vmem:[%s5517_s3 + $0x120] sm:$0xff] }
 0x166   :  { %5592 = vst [vmem:[#allocation25_spill] sm:$0xff] %v4880_v50  ;;  %3267 = vmatprep.mubr.msk.f32.mxu0 %vm3476_vm2, %v3475_v0 }
 0x167   :  { %v4888_v22 = vpop.f32.mrf.mxu1  ;;  %3432 = vmatmul.mubr.msk.f32.gmra.mxu1 %vm82_vm1, %v1689_v8  ;;  %v2935_v54 = vpop.f32.mrf.mxu0 }
 0x168   :  { %5593 = vst [vmem:[#allocation26_spill] sm:$0xff] %v4888_v22  ;;  %3434 = vmatprep.mubr.msk.f32.mxu1 %vm3476_vm2, %v3475_v0  ;;  %v1136_v54 = vld [vmem:[%s5516_s2 + $0x128] sm:$0xff] }
 0x169   :  { %v3102_v2 = vpop.f32.mrf.mxu1  ;;  %v4898_v1 = vpop.f32.mrf.mxu0  ;;  %3268 = vmatmul.mubr.msk.f32.gmra.mxu0 %vm82_vm1, %v1135_v16  ;;  %v1691_v16 = vld [vmem:[%s5517_s3 + $0x128] sm:$0xff] }
 0x16a   :  { %5594 = vst [vmem:[#allocation27_spill] sm:$0xff] %v4898_v1  ;;  %3270 = vmatprep.mubr.msk.f32.mxu0 %vm3476_vm2, %v3475_v0 }
 0x16b   :  { %v4906_v8 = vpop.f32.mrf.mxu1  ;;  %3435 = vmatmul.mubr.msk.f32.gmra.mxu1 %vm82_vm1, %v1690_v57  ;;  %v2938_v36 = vpop.f32.mrf.mxu0 }
 0x16c   :  { %5595 = vst [vmem:[#allocation28_spill] sm:$0xff] %v4906_v8  ;;  %3437 = vmatprep.mubr.msk.f32.mxu1 %vm3476_vm2, %v3475_v0  ;;  %v1137_v36 = vld [vmem:[%s5516_s2 + $0x130] sm:$0xff] }
 0x16d   :  { %v3105_v2 = vpop.f32.mrf.mxu1  ;;  %v4916_v50 = vpop.f32.mrf.mxu0  ;;  %3271 = vmatmul.mubr.msk.f32.gmra.mxu0 %vm82_vm1, %v1136_v54  ;;  %v1692_v54 = vld [vmem:[%s5517_s3 + $0x130] sm:$0xff] }
 0x16e   :  { %5596 = vst [vmem:[#allocation29_spill] sm:$0xff] %v4916_v50  ;;  %3273 = vmatprep.mubr.msk.f32.mxu0 %vm3476_vm2, %v3475_v0 }
 0x16f   :  { %v4924_v57 = vpop.f32.mrf.mxu1  ;;  %3438 = vmatmul.mubr.msk.f32.gmra.mxu1 %vm82_vm1, %v1691_v16  ;;  %v2941_v22 = vpop.f32.mrf.mxu0 }
 0x170   :  { %5597 = vst [vmem:[#allocation30_spill] sm:$0xff] %v4924_v57  ;;  %3440 = vmatprep.mubr.msk.f32.mxu1 %vm3476_vm2, %v3475_v0  ;;  %v1138_v22 = vld [vmem:[%s5516_s2 + $0x138] sm:$0xff] }
 0x171   :  { %v3108_v2 = vpop.f32.mrf.mxu1  ;;  %v4934_v1 = vpop.f32.mrf.mxu0  ;;  %3274 = vmatmul.mubr.msk.f32.gmra.mxu0 %vm82_vm1, %v1137_v36  ;;  %v1693_v36 = vld [vmem:[%s5517_s3 + $0x138] sm:$0xff] }
 0x172   :  { %5598 = vst [vmem:[#allocation31_spill] sm:$0xff] %v4934_v1  ;;  %3276 = vmatprep.mubr.msk.f32.mxu0 %vm3476_vm2, %v3475_v0 }
 0x173   :  { %v4942_v16 = vpop.f32.mrf.mxu1  ;;  %3441 = vmatmul.mubr.msk.f32.gmra.mxu1 %vm82_vm1, %v1692_v54  ;;  %v2944_v8 = vpop.f32.mrf.mxu0 }
 0x174   :  { %5599 = vst [vmem:[#allocation32_spill] sm:$0xff] %v4942_v16  ;;  %3443 = vmatprep.mubr.msk.f32.mxu1 %vm3476_vm2, %v3475_v0  ;;  %v1139_v8 = vld [vmem:[%s5516_s2 + $0x140] sm:$0xff] }
 0x175   :  { %v3111_v2 = vpop.f32.mrf.mxu1  ;;  %v4952_v50 = vpop.f32.mrf.mxu0  ;;  %3277 = vmatmul.mubr.msk.f32.gmra.mxu0 %vm82_vm1, %v1138_v22  ;;  %v1694_v22 = vld [vmem:[%s5517_s3 + $0x140] sm:$0xff] }
 0x176   :  { %5600 = vst [vmem:[#allocation33_spill] sm:$0xff] %v4952_v50  ;;  %3279 = vmatprep.mubr.msk.f32.mxu0 %vm3476_vm2, %v3475_v0 }
 0x177   :  { %v4960_v54 = vpop.f32.mrf.mxu1  ;;  %3444 = vmatmul.mubr.msk.f32.gmra.mxu1 %vm82_vm1, %v1693_v36  ;;  %v2947_v57 = vpop.f32.mrf.mxu0 }
 0x178   :  { %5601 = vst [vmem:[#allocation34_spill] sm:$0xff] %v4960_v54  ;;  %3446 = vmatprep.mubr.msk.f32.mxu1 %vm3476_vm2, %v3475_v0  ;;  %v1140_v57 = vld [vmem:[%s5516_s2 + $0x148] sm:$0xff] }
 0x179   :  { %v3114_v2 = vpop.f32.mrf.mxu1  ;;  %v4970_v1 = vpop.f32.mrf.mxu0  ;;  %3280 = vmatmul.mubr.msk.f32.gmra.mxu0 %vm82_vm1, %v1139_v8  ;;  %v1695_v8 = vld [vmem:[%s5517_s3 + $0x148] sm:$0xff] }
 0x17a   :  { %5602 = vst [vmem:[#allocation35_spill] sm:$0xff] %v4970_v1  ;;  %3282 = vmatprep.mubr.msk.f32.mxu0 %vm3476_vm2, %v3475_v0 }
 0x17b   :  { %v4978_v36 = vpop.f32.mrf.mxu1  ;;  %3447 = vmatmul.mubr.msk.f32.gmra.mxu1 %vm82_vm1, %v1694_v22  ;;  %v2950_v16 = vpop.f32.mrf.mxu0 }
 0x17c   :  { %5603 = vst [vmem:[#allocation36_spill] sm:$0xff] %v4978_v36  ;;  %3449 = vmatprep.mubr.msk.f32.mxu1 %vm3476_vm2, %v3475_v0  ;;  %v1141_v16 = vld [vmem:[%s5516_s2 + $0x150] sm:$0xff] }
 0x17d   :  { %v3117_v2 = vpop.f32.mrf.mxu1  ;;  %v4988_v50 = vpop.f32.mrf.mxu0  ;;  %3283 = vmatmul.mubr.msk.f32.gmra.mxu0 %vm82_vm1, %v1140_v57  ;;  %v1696_v57 = vld [vmem:[%s5517_s3 + $0x150] sm:$0xff] }
 0x17e   :  { %5604 = vst [vmem:[#allocation37_spill] sm:$0xff] %v4988_v50  ;;  %3285 = vmatprep.mubr.msk.f32.mxu0 %vm3476_vm2, %v3475_v0 }
 0x17f   :  { %v4996_v22 = vpop.f32.mrf.mxu1  ;;  %3450 = vmatmul.mubr.msk.f32.gmra.mxu1 %vm82_vm1, %v1695_v8  ;;  %v2953_v54 = vpop.f32.mrf.mxu0 }
 0x180   :  { %5605 = vst [vmem:[#allocation38_spill] sm:$0xff] %v4996_v22  ;;  %3452 = vmatprep.mubr.msk.f32.mxu1 %vm3476_vm2, %v3475_v0  ;;  %v1142_v54 = vld [vmem:[%s5516_s2 + $0x158] sm:$0xff] }
 0x181   :  { %v3120_v2 = vpop.f32.mrf.mxu1  ;;  %v5006_v1 = vpop.f32.mrf.mxu0  ;;  %3286 = vmatmul.mubr.msk.f32.gmra.mxu0 %vm82_vm1, %v1141_v16  ;;  %v1697_v16 = vld [vmem:[%s5517_s3 + $0x158] sm:$0xff] }
 0x182   :  { %5606 = vst [vmem:[#allocation39_spill] sm:$0xff] %v5006_v1  ;;  %3288 = vmatprep.mubr.msk.f32.mxu0 %vm3476_vm2, %v3475_v0 }
 0x183   :  { %v5014_v8 = vpop.f32.mrf.mxu1  ;;  %3453 = vmatmul.mubr.msk.f32.gmra.mxu1 %vm82_vm1, %v1696_v57  ;;  %v2956_v36 = vpop.f32.mrf.mxu0 }
 0x184   :  { %5607 = vst [vmem:[#allocation40_spill] sm:$0xff] %v5014_v8  ;;  %3455 = vmatprep.mubr.msk.f32.mxu1 %vm3476_vm2, %v3475_v0  ;;  %v1143_v36 = vld [vmem:[%s5516_s2 + $0x160] sm:$0xff] }
 0x185   :  { %v3123_v2 = vpop.f32.mrf.mxu1  ;;  %v5024_v50 = vpop.f32.mrf.mxu0  ;;  %3289 = vmatmul.mubr.msk.f32.gmra.mxu0 %vm82_vm1, %v1142_v54  ;;  %v1698_v54 = vld [vmem:[%s5517_s3 + $0x160] sm:$0xff] }
 0x186   :  { %5608 = vst [vmem:[#allocation41_spill] sm:$0xff] %v5024_v50  ;;  %3291 = vmatprep.mubr.msk.f32.mxu0 %vm3476_vm2, %v3475_v0 }
 0x187   :  { %v5032_v57 = vpop.f32.mrf.mxu1  ;;  %3456 = vmatmul.mubr.msk.f32.gmra.mxu1 %vm82_vm1, %v1697_v16  ;;  %v2959_v22 = vpop.f32.mrf.mxu0 }
 0x188   :  { %5609 = vst [vmem:[#allocation42_spill] sm:$0xff] %v5032_v57  ;;  %3458 = vmatprep.mubr.msk.f32.mxu1 %vm3476_vm2, %v3475_v0  ;;  %v1144_v22 = vld [vmem:[%s5516_s2 + $0x168] sm:$0xff] }
 0x189   :  { %v3126_v2 = vpop.f32.mrf.mxu1  ;;  %v5042_v1 = vpop.f32.mrf.mxu0  ;;  %3292 = vmatmul.mubr.msk.f32.gmra.mxu0 %vm82_vm1, %v1143_v36  ;;  %v1699_v36 = vld [vmem:[%s5517_s3 + $0x168] sm:$0xff] }
 0x18a   :  { %5610 = vst [vmem:[#allocation43_spill] sm:$0xff] %v5042_v1  ;;  %3294 = vmatprep.mubr.msk.f32.mxu0 %vm3476_vm2, %v3475_v0 }
 0x18b   :  { %v5050_v16 = vpop.f32.mrf.mxu1  ;;  %3459 = vmatmul.mubr.msk.f32.gmra.mxu1 %vm82_vm1, %v1698_v54  ;;  %v2962_v8 = vpop.f32.mrf.mxu0 }
 0x18c   :  { %5611 = vst [vmem:[#allocation44_spill] sm:$0xff] %v5050_v16  ;;  %3461 = vmatprep.mubr.msk.f32.mxu1 %vm3476_vm2, %v3475_v0  ;;  %v1145_v8 = vld [vmem:[%s5516_s2 + $0x170] sm:$0xff] }
 0x18d   :  { %v3129_v2 = vpop.f32.mrf.mxu1  ;;  %v5060_v50 = vpop.f32.mrf.mxu0  ;;  %3295 = vmatmul.mubr.msk.f32.gmra.mxu0 %vm82_vm1, %v1144_v22  ;;  %v1700_v22 = vld [vmem:[%s5517_s3 + $0x170] sm:$0xff] }
 0x18e   :  { %5612 = vst [vmem:[#allocation45_spill] sm:$0xff] %v5060_v50  ;;  %3297 = vmatprep.mubr.msk.f32.mxu0 %vm3476_vm2, %v3475_v0 }
 0x18f   :  { %v5068_v54 = vpop.f32.mrf.mxu1  ;;  %3462 = vmatmul.mubr.msk.f32.gmra.mxu1 %vm82_vm1, %v1699_v36  ;;  %v2965_v57 = vpop.f32.mrf.mxu0 }
 0x190   :  { %5613 = vst [vmem:[#allocation46_spill] sm:$0xff] %v5068_v54  ;;  %3464 = vmatprep.mubr.msk.f32.mxu1 %vm3476_vm2, %v3475_v0  ;;  %v1146_v57 = vld [vmem:[%s5516_s2 + $0x178] sm:$0xff] }
 0x191   :  { %v3132_v2 = vpop.f32.mrf.mxu1  ;;  %v5078_v1 = vpop.f32.mrf.mxu0  ;;  %3298 = vmatmul.mubr.msk.f32.gmra.mxu0 %vm82_vm1, %v1145_v8  ;;  %v1701_v8 = vld [vmem:[%s5517_s3 + $0x178] sm:$0xff] }
 0x192   :  { %5614 = vst [vmem:[#allocation47_spill] sm:$0xff] %v5078_v1  ;;  %3300 = vmatprep.mubr.msk.f32.mxu0 %vm3476_vm2, %v3475_v0 }
 0x193   :  { %v5086_v36 = vpop.f32.mrf.mxu1  ;;  %3465 = vmatmul.mubr.msk.f32.gmra.mxu1 %vm82_vm1, %v1700_v22  ;;  %v2968_v16 = vpop.f32.mrf.mxu0 }
 0x194   :  { %5615 = vst [vmem:[#allocation48_spill] sm:$0xff] %v5086_v36  ;;  %3467 = vmatprep.mubr.msk.f32.mxu1 %vm3476_vm2, %v3475_v0  ;;  %v1147_v16 = vld [vmem:[%s5516_s2 + $0x180] sm:$0xff] }
 0x195   :  { %v3135_v2 = vpop.f32.mrf.mxu1  ;;  %v5096_v50 = vpop.f32.mrf.mxu0  ;;  %3301 = vmatmul.mubr.msk.f32.gmra.mxu0 %vm82_vm1, %v1146_v57  ;;  %v1702_v57 = vld [vmem:[%s5517_s3 + $0x180] sm:$0xff] }
 0x196   :  { %5616 = vst [vmem:[#allocation49_spill] sm:$0xff] %v5096_v50  ;;  %3303 = vmatprep.mubr.msk.f32.mxu0 %vm3476_vm2, %v3475_v0 }
 0x197   :  { %v5104_v22 = vpop.f32.mrf.mxu1  ;;  %3468 = vmatmul.mubr.msk.f32.gmra.mxu1 %vm82_vm1, %v1701_v8  ;;  %v2971_v54 = vpop.f32.mrf.mxu0 }
 0x198   :  { %5617 = vst [vmem:[#allocation50_spill] sm:$0xff] %v5104_v22  ;;  %3470 = vmatprep.mubr.msk.f32.mxu1 %vm3476_vm2, %v3475_v0  ;;  %v5121_v54 = vld [vmem:[%s5518_s5] ss:$0 sm:$0xff] }
 0x199   :  { %v3138_v2 = vpop.f32.mrf.mxu1  ;;  %v1361_v1 = vpop.f32.mrf.mxu0  ;;  %3304 = vmatmul.mubr.msk.f32.gmra.mxu0 %vm82_vm1, %v1147_v16  ;;  %v5619_v16 = vmax.f32 %v4250_v53, %v4258_v55 }
 0x19a   :  { %v1605_v15 = vmax.f32 %v5618_v40, %v1361_v1 }
 0x19b   :  { %v1916_v8 = vpop.f32.mrf.mxu1  ;;  %3471 = vmatmul.mubr.msk.f32.gmra.mxu1 %vm82_vm1, %v1702_v57  ;;  %v3161_v0 = vpop.f32.mrf.mxu0 }
 0x19c   :  { %v2160_v36 = vmax.f32 %v1605_v15, %v1916_v8 }
 0x19d   :  { %v3328_v22 = vpop.f32.mrf.mxu1  ;;  %v1366_v50 = vpop.f32.mrf.mxu0 }
 0x19e   :  { %v2216_v2 = vadd.f32 %v5121_v54, %v2160_v36  ;;  %v1606_v17 = vmax.f32 %v5619_v16, %v1366_v50  ;;  %v5620_v36 = vmax.f32 %v4268_v60, %v4276_v62 }
 0x19f   :  { %v1921_v46 = vpop.f32.mrf.mxu1  ;;  %v3164_v48 = vpop.f32.mrf.mxu0 }
 0x1a0   :  { %v2265_v1 = vmax.f32 %v2216_v2, 0.0  ;;  %v2161_v40 = vmax.f32 %v1606_v17, %v1921_v46  ;;  %v5621_v17 = vmax.f32 %v4286_v4, %v4294_v6 }
 0x1a1   :  { %v3331_v29 = vpop.f32.mrf.mxu1  ;;  %v1371_v7 = vpop.f32.mrf.mxu0 }
 0x1a2   :  { %2315 = vst.msk [vmem:[%s5519_s6] sm:$0xff] %vm2314_vm3, %v2265_v1  ;;  %v2217_v15 = vadd.f32 %v5121_v54, %v2161_v40  ;;  %v1607_v22 = vmax.f32 %v5620_v36, %v1371_v7  ;;  %v5622_v40 = vmax.f32 %v4304_v11, %v4312_v13 }
 0x1a3   :  { %v1926_v53 = vpop.f32.mrf.mxu1  ;;  %v3167_v50 = vpop.f32.mrf.mxu0 }
 0x1a4   :  { %v2266_v55 = vmax.f32 %v2217_v15, 0.0  ;;  %v2162_v57 = vmax.f32 %v1607_v22, %v1926_v53 }
 0x1a5   :  { %v3334_v8 = vpop.f32.mrf.mxu1  ;;  %v1376_v0 = vpop.f32.mrf.mxu0 }
 0x1a6   :  { %2316 = vst.msk [vmem:[%s5519_s6 + $0x8] sm:$0xff] %vm2314_vm3, %v2266_v55  ;;  %v2218_v29 = vadd.f32 %v5121_v54, %v2162_v57  ;;  %v1608_v2 = vmax.f32 %v5621_v17, %v1376_v0  ;;  %v5623_v57 = vmax.f32 %v4322_v18, %v4330_v20 }
 0x1a7   :  { %v1931_v16 = vpop.f32.mrf.mxu1  ;;  %v3170_v60 = vpop.f32.mrf.mxu0 }
 0x1a8   :  { %v2267_v62 = vmax.f32 %v2218_v29, 0.0  ;;  %v2163_v7 = vmax.f32 %v1608_v2, %v1931_v16  ;;  %v5624_v60 = vmax.f32 %v4340_v25, %v4348_v27 }
 0x1a9   :  { %v3337_v46 = vpop.f32.mrf.mxu1  ;;  %v1381_v48 = vpop.f32.mrf.mxu0 }
 0x1aa   :  { %2317 = vst.msk [vmem:[%s5519_s6 + $0x10] sm:$0xff] %vm2314_vm3, %v2267_v62  ;;  %v2219_v1 = vadd.f32 %v5121_v54, %v2163_v7  ;;  %v1609_v15 = vmax.f32 %v5622_v40, %v1381_v48 }
 0x1ab   :  { %v1936_v36 = vpop.f32.mrf.mxu1  ;;  %v3173_v4 = vpop.f32.mrf.mxu0 }
 0x1ac   :  { %v2268_v6 = vmax.f32 %v2219_v1, 0.0  ;;  %v2164_v22 = vmax.f32 %v1609_v15, %v1936_v36  ;;  %v5625_v15 = vmax.f32 %v4358_v32, %v4366_v34 }
 0x1ad   :  { %v3340_v53 = vpop.f32.mrf.mxu1  ;;  %v1386_v50 = vpop.f32.mrf.mxu0 }
 0x1ae   :  { %2318 = vst.msk [vmem:[%s5519_s6 + $0x18] sm:$0xff] %vm2314_vm3, %v2268_v6  ;;  %v2220_v55 = vadd.f32 %v5121_v54, %v2164_v22  ;;  %v1610_v8 = vmax.f32 %v5623_v57, %v1386_v50 }
 0x1af   :  { %v1941_v0 = vpop.f32.mrf.mxu1  ;;  %v3176_v11 = vpop.f32.mrf.mxu0 }
 0x1b0   :  { %v2269_v13 = vmax.f32 %v2220_v55, 0.0  ;;  %v2165_v29 = vmax.f32 %v1610_v8, %v1941_v0  ;;  %v5626_v55 = vmax.f32 %v4376_v39, %v4384_v41 }
 0x1b1   :  { %v3343_v17 = vpop.f32.mrf.mxu1  ;;  %v1391_v2 = vpop.f32.mrf.mxu0 }
 0x1b2   :  { %2319 = vst.msk [vmem:[%s5519_s6 + $0x20] sm:$0xff] %vm2314_vm3, %v2269_v13  ;;  %v2221_v16 = vadd.f32 %v5121_v54, %v2165_v29  ;;  %v1611_v62 = vmax.f32 %v5624_v60, %v1391_v2  ;;  %v5627_v17 = vmax.f32 %v4394_v47, %v4402_v51 }
 0x1b3   :  { %v1946_v7 = vpop.f32.mrf.mxu1  ;;  %v3179_v18 = vpop.f32.mrf.mxu0 }
 0x1b4   :  { %v2270_v20 = vmax.f32 %v2221_v16, 0.0  ;;  %v2166_v46 = vmax.f32 %v1611_v62, %v1946_v7 }
 0x1b5   :  { %v3346_v48 = vpop.f32.mrf.mxu1  ;;  %v1396_v1 = vpop.f32.mrf.mxu0 }
 0x1b6   :  { %2320 = vst.msk [vmem:[%s5519_s6 + $0x28] sm:$0xff] %vm2314_vm3, %v2270_v20  ;;  %v2222_v40 = vadd.f32 %v5121_v54, %v2166_v46  ;;  %v1612_v36 = vmax.f32 %v5625_v15, %v1396_v1  ;;  %v5628_v20 = vmax.f32 %v4412_v59, %v4420_v63 }
 0x1b7   :  { %v1951_v4 = vpop.f32.mrf.mxu1  ;;  %v3182_v25 = vpop.f32.mrf.mxu0 }
 0x1b8   :  { %v2271_v27 = vmax.f32 %v2222_v40, 0.0  ;;  %v2167_v6 = vmax.f32 %v1612_v36, %v1951_v4  ;;  %v5629_v4 = vmax.f32 %v4430_v9, %v4438_v12 }
 0x1b9   :  { %v3349_v22 = vpop.f32.mrf.mxu1  ;;  %v1401_v53 = vpop.f32.mrf.mxu0 }
 0x1ba   :  { %2321 = vst.msk [vmem:[%s5519_s6 + $0x30] sm:$0xff] %vm2314_vm3, %v2271_v27  ;;  %v2223_v50 = vadd.f32 %v5121_v54, %v2167_v6  ;;  %v1613_v57 = vmax.f32 %v5626_v55, %v1401_v53  ;;  %v5630_v55 = vmax.f32 %v4448_v21, %v4456_v24 }
 0x1bb   :  { %v1956_v8 = vpop.f32.mrf.mxu1  ;;  %v3185_v32 = vpop.f32.mrf.mxu0 }
 0x1bc   :  { %v2272_v34 = vmax.f32 %v2223_v50, 0.0  ;;  %v2168_v0 = vmax.f32 %v1613_v57, %v1956_v8 }
 0x1bd   :  { %v3352_v11 = vpop.f32.mrf.mxu1  ;;  %v1406_v13 = vpop.f32.mrf.mxu0 }
 0x1be   :  { %2322 = vst.msk [vmem:[%s5519_s6 + $0x38] sm:$0xff] %vm2314_vm3, %v2272_v34  ;;  %v2224_v29 = vadd.f32 %v5121_v54, %v2168_v0  ;;  %v1614_v2 = vmax.f32 %v5627_v17, %v1406_v13  ;;  %v5631_v13 = vmax.f32 %v4466_v33, %v4474_v37 }
 0x1bf   :  { %v1961_v16 = vpop.f32.mrf.mxu1  ;;  %v3188_v39 = vpop.f32.mrf.mxu0 }
 0x1c0   :  { %v2273_v41 = vmax.f32 %v2224_v29, 0.0  ;;  %v2169_v60 = vmax.f32 %v1614_v2, %v1961_v16 }
 0x1c1   :  { %v3355_v62 = vpop.f32.mrf.mxu1  ;;  %v1411_v7 = vpop.f32.mrf.mxu0 }
 0x1c2   :  { %2323 = vst.msk [vmem:[%s5519_s6 + $0x40] sm:$0xff] %vm2314_vm3, %v2273_v41  ;;  %v2225_v18 = vadd.f32 %v5121_v54, %v2169_v60  ;;  %v1615_v46 = vmax.f32 %v5628_v20, %v1411_v7  ;;  %v5632_v60 = vmax.f32 %v4484_v45, %v4492_v52 }
 0x1c3   :  { %v1966_v48 = vpop.f32.mrf.mxu1  ;;  %v3191_v47 = vpop.f32.mrf.mxu0 }
 0x1c4   :  { %v2274_v51 = vmax.f32 %v2225_v18, 0.0  ;;  %v2170_v1 = vmax.f32 %v1615_v46, %v1966_v48  ;;  %v5633_v47 = vmax.f32 %v4502_v5, %v4510_v10 }
 0x1c5   :  { %v3358_v40 = vpop.f32.mrf.mxu1  ;;  %v1416_v15 = vpop.f32.mrf.mxu0 }
 0x1c6   :  { %2324 = vst.msk [vmem:[%s5519_s6 + $0x48] sm:$0xff] %vm2314_vm3, %v2274_v51  ;;  %v2226_v36 = vadd.f32 %v5121_v54, %v2170_v1  ;;  %v1616_v25 = vmax.f32 %v5629_v4, %v1416_v15 }
 0x1c7   :  { %v1971_v27 = vpop.f32.mrf.mxu1  ;;  %v3194_v59 = vpop.f32.mrf.mxu0 }
 0x1c8   :  { %v2275_v63 = vmax.f32 %v2226_v36, 0.0  ;;  %v2171_v6 = vmax.f32 %v1616_v25, %v1971_v27  ;;  %v5634_v25 = vmax.f32 %v4520_v26, %v4528_v31 }
 0x1c9   :  { %v3361_v22 = vpop.f32.mrf.mxu1  ;;  %v1421_v53 = vpop.f32.mrf.mxu0 }
 0x1ca   :  { %2325 = vst.msk [vmem:[%s5519_s6 + $0x50] sm:$0xff] %vm2314_vm3, %v2275_v63  ;;  %v2227_v50 = vadd.f32 %v5121_v54, %v2171_v6  ;;  %v1617_v57 = vmax.f32 %v5630_v55, %v1421_v53 }
 0x1cb   :  { %v1976_v8 = vpop.f32.mrf.mxu1  ;;  %v3197_v9 = vpop.f32.mrf.mxu0 }
 0x1cc   :  { %v2276_v12 = vmax.f32 %v2227_v50, 0.0  ;;  %v2172_v32 = vmax.f32 %v1617_v57, %v1976_v8  ;;  %v5635_v50 = vmax.f32 %v4538_v49, %v4546_v61 }
 0x1cd   :  { %v3364_v34 = vpop.f32.mrf.mxu1  ;;  %v1426_v0 = vpop.f32.mrf.mxu0 }
 0x1ce   :  { %2326 = vst.msk [vmem:[%s5519_s6 + $0x58] sm:$0xff] %vm2314_vm3, %v2276_v12  ;;  %v2228_v11 = vadd.f32 %v5121_v54, %v2172_v32  ;;  %v1618_v29 = vmax.f32 %v5631_v13, %v1426_v0  ;;  %v5636_v34 = vmax.f32 %v4556_v23, %v4564_v35 }
 0x1cf   :  { %v1981_v17 = vpop.f32.mrf.mxu1  ;;  %v3200_v21 = vpop.f32.mrf.mxu0 }
 0x1d0   :  { %v2277_v24 = vmax.f32 %v2228_v11, 0.0  ;;  %v2173_v2 = vmax.f32 %v1618_v29, %v1981_v17 }
 0x1d1   :  { %v3367_v16 = vpop.f32.mrf.mxu1  ;;  %v1431_v39 = vpop.f32.mrf.mxu0 }
 0x1d2   :  { %2327 = vst.msk [vmem:[%s5519_s6 + $0x60] sm:$0xff] %vm2314_vm3, %v2277_v24  ;;  %v2229_v41 = vadd.f32 %v5121_v54, %v2173_v2  ;;  %v1619_v62 = vmax.f32 %v5632_v60, %v1431_v39  ;;  %v5637_v24 = vmax.f32 %v4574_v19, %v4582_v42 }
 0x1d3   :  { %v1986_v7 = vpop.f32.mrf.mxu1  ;;  %v3203_v33 = vpop.f32.mrf.mxu0 }
 0x1d4   :  { %v2278_v37 = vmax.f32 %v2229_v41, 0.0  ;;  %v2174_v18 = vmax.f32 %v1619_v62, %v1986_v7  ;;  %v5638_v7 = vmax.f32 %v4592_v38, %v4600_v56 }
 0x1d5   :  { %v3370_v20 = vpop.f32.mrf.mxu1  ;;  %v1436_v46 = vpop.f32.mrf.mxu0 }
 0x1d6   :  { %2328 = vst.msk [vmem:[%s5519_s6 + $0x68] sm:$0xff] %vm2314_vm3, %v2278_v37  ;;  %v2230_v48 = vadd.f32 %v5121_v54, %v2174_v18  ;;  %v1620_v51 = vmax.f32 %v5633_v47, %v1436_v46  ;;  %v5639_v47 = vmax.f32 %v4610_v58, %v4618_v30 }
 0x1d7   :  { %v1991_v1 = vpop.f32.mrf.mxu1  ;;  %v3206_v45 = vpop.f32.mrf.mxu0 }
 0x1d8   :  { %v2279_v52 = vmax.f32 %v2230_v48, 0.0  ;;  %v2175_v40 = vmax.f32 %v1620_v51, %v1991_v1 }
 0x1d9   :  { %v3373_v15 = vpop.f32.mrf.mxu1  ;;  %v1441_v36 = vpop.f32.mrf.mxu0 }
 0x1da   :  { %2329 = vst.msk [vmem:[%s5519_s6 + $0x70] sm:$0xff] %vm2314_vm3, %v2279_v52  ;;  %v2231_v4 = vadd.f32 %v5121_v54, %v2175_v40  ;;  %v1621_v27 = vmax.f32 %v5634_v25, %v1441_v36  ;;  %v5640_v36 = vmax.f32 %v4628_v28, %v4636_v14 }
 0x1db   :  { %v1996_v59 = vpop.f32.mrf.mxu1  ;;  %v3209_v5 = vpop.f32.mrf.mxu0 }
 0x1dc   :  { %v2280_v10 = vmax.f32 %v2231_v4, 0.0  ;;  %v2176_v63 = vmax.f32 %v1621_v27, %v1996_v59 }
 0x1dd   :  { %v3376_v6 = vpop.f32.mrf.mxu1  ;;  %v1446_v22 = vpop.f32.mrf.mxu0 }
 0x1de   :  { %2330 = vst.msk [vmem:[%s5519_s6 + $0x78] sm:$0xff] %vm2314_vm3, %v2280_v10  ;;  %v2232_v53 = vadd.f32 %v5121_v54, %v2176_v63  ;;  %v1622_v55 = vmax.f32 %v5635_v50, %v1446_v22  ;;  %v5641_v63 = vmax.f32 %v4646_v3, %v4654_v44 }
 0x1df   :  { %v2001_v57 = vpop.f32.mrf.mxu1  ;;  %v3212_v26 = vpop.f32.mrf.mxu0 }
 0x1e0   :  { %v2281_v31 = vmax.f32 %v2232_v53, 0.0  ;;  %v2177_v8 = vmax.f32 %v1622_v55, %v2001_v57  ;;  %v5642_v26 = vld [vmem:[#allocation2_spill] sm:$0xff] }
 0x1e1   :  { %v3379_v9 = vpop.f32.mrf.mxu1  ;;  %v1451_v12 = vpop.f32.mrf.mxu0 }
 0x1e2   :  { %2331 = vst.msk [vmem:[%s5519_s6 + $0x80] sm:$0xff] %vm2314_vm3, %v2281_v31  ;;  %v2233_v32 = vadd.f32 %v5121_v54, %v2177_v8  ;;  %v1623_v0 = vmax.f32 %v5636_v34, %v1451_v12  ;;  %v5643_v31 = vmax.f32 %v4664_v43, %v5642_v26 }
 0x1e3   :  { %v2006_v11 = vpop.f32.mrf.mxu1  ;;  %v3215_v49 = vpop.f32.mrf.mxu0 }
 0x1e4   :  { %v2282_v61 = vmax.f32 %v2233_v32, 0.0  ;;  %v2178_v13 = vmax.f32 %v1623_v0, %v2006_v11  ;;  %v5644_v11 = vld [vmem:[#allocation3_spill] sm:$0xff]  ;;  %v5645_v49 = vld [vmem:[#allocation4_spill] sm:$0xff] }
 0x1e5   :  { %v3382_v29 = vpop.f32.mrf.mxu1  ;;  %v1456_v17 = vpop.f32.mrf.mxu0 }
 0x1e6   :  { %2332 = vst.msk [vmem:[%s5519_s6 + $0x88] sm:$0xff] %vm2314_vm3, %v2282_v61  ;;  %v2234_v21 = vadd.f32 %v5121_v54, %v2178_v13  ;;  %v1624_v2 = vmax.f32 %v5637_v24, %v1456_v17  ;;  %v5646_v61 = vmax.f32 %v5644_v11, %v5645_v49 }
 0x1e7   :  { %v2011_v16 = vpop.f32.mrf.mxu1  ;;  %v3218_v23 = vpop.f32.mrf.mxu0 }
 0x1e8   :  { %v2283_v35 = vmax.f32 %v2234_v21, 0.0  ;;  %v2179_v39 = vmax.f32 %v1624_v2, %v2011_v16  ;;  %v5647_v23 = vld [vmem:[#allocation5_spill] sm:$0xff] }
 0x1e9   :  { %v3385_v41 = vpop.f32.mrf.mxu1  ;;  %v1461_v60 = vpop.f32.mrf.mxu0 }
 0x1ea   :  { %2333 = vst.msk [vmem:[%s5519_s6 + $0x90] sm:$0xff] %vm2314_vm3, %v2283_v35  ;;  %v2235_v62 = vadd.f32 %v5121_v54, %v2179_v39  ;;  %v1625_v33 = vmax.f32 %v5638_v7, %v1461_v60  ;;  %v5648_v35 = vld [vmem:[#allocation6_spill] sm:$0xff] }
 0x1eb   :  { %v2016_v37 = vpop.f32.mrf.mxu1  ;;  %v3221_v19 = vpop.f32.mrf.mxu0  ;;  %v5649_v39 = vmax.f32 %v5647_v23, %v5648_v35 }
 0x1ec   :  { %v2284_v42 = vmax.f32 %v2235_v62, 0.0  ;;  %v2180_v18 = vmax.f32 %v1625_v33, %v2016_v37 }
 0x1ed   :  { %v3388_v20 = vpop.f32.mrf.mxu1  ;;  %v1466_v46 = vpop.f32.mrf.mxu0 }
 0x1ee   :  { %2334 = vst.msk [vmem:[%s5519_s6 + $0x98] sm:$0xff] %vm2314_vm3, %v2284_v42  ;;  %v2236_v48 = vadd.f32 %v5121_v54, %v2180_v18  ;;  %v1626_v51 = vmax.f32 %v5639_v47, %v1466_v46  ;;  %v5650_v18 = vld [vmem:[#allocation7_spill] sm:$0xff]  ;;  %v5651_v20 = vld [vmem:[#allocation8_spill] sm:$0xff] }
 0x1ef   :  { %v2021_v1 = vpop.f32.mrf.mxu1  ;;  %v3224_v38 = vpop.f32.mrf.mxu0  ;;  %v5652_v46 = vmax.f32 %v5650_v18, %v5651_v20 }
 0x1f0   :  { %v2285_v56 = vmax.f32 %v2236_v48, 0.0  ;;  %v2181_v45 = vmax.f32 %v1626_v51, %v2021_v1 }
 0x1f1   :  { %v3391_v52 = vpop.f32.mrf.mxu1  ;;  %v1471_v40 = vpop.f32.mrf.mxu0 }
 0x1f2   :  { %2335 = vst.msk [vmem:[%s5519_s6 + $0xa0] sm:$0xff] %vm2314_vm3, %v2285_v56  ;;  %v2237_v15 = vadd.f32 %v5121_v54, %v2181_v45  ;;  %v1627_v4 = vmax.f32 %v5640_v36, %v1471_v40  ;;  %v5653_v40 = vld [vmem:[#allocation9_spill] sm:$0xff] }
 0x1f3   :  { %v2026_v25 = vpop.f32.mrf.mxu1  ;;  %v3227_v58 = vpop.f32.mrf.mxu0 }
 0x1f4   :  { %v2286_v30 = vmax.f32 %v2237_v15, 0.0  ;;  %v2182_v27 = vmax.f32 %v1627_v4, %v2026_v25  ;;  %v5654_v15 = vld [vmem:[#allocation10_spill] sm:$0xff] }
 0x1f5   :  { %v3394_v59 = vpop.f32.mrf.mxu1  ;;  %v1476_v5 = vpop.f32.mrf.mxu0  ;;  %v5655_v36 = vmax.f32 %v5653_v40, %v5654_v15 }
 0x1f6   :  { %2336 = vst.msk [vmem:[%s5519_s6 + $0xa8] sm:$0xff] %vm2314_vm3, %v2286_v30  ;;  %v2238_v10 = vadd.f32 %v5121_v54, %v2182_v27  ;;  %v1628_v6 = vmax.f32 %v5641_v63, %v1476_v5  ;;  %v5656_v63 = vld [vmem:[#allocation11_spill] sm:$0xff] }
 0x1f7   :  { %v2031_v22 = vpop.f32.mrf.mxu1  ;;  %v3230_v28 = vpop.f32.mrf.mxu0 }
 0x1f8   :  { %v2287_v14 = vmax.f32 %v2238_v10, 0.0  ;;  %v2183_v53 = vmax.f32 %v1628_v6, %v2031_v22  ;;  %v5657_v6 = vld [vmem:[#allocation12_spill] sm:$0xff] }
 0x1f9   :  { %v3397_v50 = vpop.f32.mrf.mxu1  ;;  %v1481_v55 = vpop.f32.mrf.mxu0  ;;  %v5658_v22 = vmax.f32 %v5656_v63, %v5657_v6 }
 0x1fa   :  { %2337 = vst.msk [vmem:[%s5519_s6 + $0xb0] sm:$0xff] %vm2314_vm3, %v2287_v14  ;;  %v2239_v57 = vadd.f32 %v5121_v54, %v2183_v53  ;;  %v1629_v8 = vmax.f32 %v5643_v31, %v1481_v55 }
 0x1fb   :  { %v2036_v9 = vpop.f32.mrf.mxu1  ;;  %v3233_v3 = vpop.f32.mrf.mxu0 }
 0x1fc   :  { %v2288_v44 = vmax.f32 %v2239_v57, 0.0  ;;  %v2184_v12 = vmax.f32 %v1629_v8, %v2036_v9  ;;  %v5659_v8 = vld [vmem:[#allocation13_spill] sm:$0xff]  ;;  %v5660_v9 = vld [vmem:[#allocation14_spill] sm:$0xff] }
 0x1fd   :  { %v3400_v32 = vpop.f32.mrf.mxu1  ;;  %v1486_v34 = vpop.f32.mrf.mxu0  ;;  %v5661_v3 = vmax.f32 %v5659_v8, %v5660_v9 }
 0x1fe   :  { %2338 = vst.msk [vmem:[%s5519_s6 + $0xb8] sm:$0xff] %vm2314_vm3, %v2288_v44  ;;  %v2240_v0 = vadd.f32 %v5121_v54, %v2184_v12  ;;  %v1630_v13 = vmax.f32 %v5646_v61, %v1486_v34 }
 0x1ff   :  { %v2041_v29 = vpop.f32.mrf.mxu1  ;;  %v3236_v43 = vpop.f32.mrf.mxu0 }
 0x200   :  { %v2289_v17 = vmax.f32 %v2240_v0, 0.0  ;;  %v2185_v21 = vmax.f32 %v1630_v13, %v2041_v29  ;;  %v5662_v13 = vld [vmem:[#allocation15_spill] sm:$0xff]  ;;  %v5663_v29 = vld [vmem:[#allocation16_spill] sm:$0xff] }
 0x201   :  { %v3403_v24 = vpop.f32.mrf.mxu1  ;;  %v1491_v2 = vpop.f32.mrf.mxu0  ;;  %v5664_v43 = vmax.f32 %v5662_v13, %v5663_v29 }
 0x202   :  { %2339 = vst.msk [vmem:[%s5519_s6 + $0xc0] sm:$0xff] %vm2314_vm3, %v2289_v17  ;;  %v2241_v16 = vadd.f32 %v5121_v54, %v2185_v21  ;;  %v1631_v41 = vmax.f32 %v5649_v39, %v1491_v2 }
 0x203   :  { %v2046_v60 = vpop.f32.mrf.mxu1  ;;  %v3239_v62 = vpop.f32.mrf.mxu0 }
 0x204   :  { %v2290_v7 = vmax.f32 %v2241_v16, 0.0  ;;  %v2186_v33 = vmax.f32 %v1631_v41, %v2046_v60  ;;  %v5665_v41 = vld [vmem:[#allocation17_spill] sm:$0xff]  ;;  %v5666_v60 = vld [vmem:[#allocation18_spill] sm:$0xff] }
 0x205   :  { %v3406_v37 = vpop.f32.mrf.mxu1  ;;  %v1496_v19 = vpop.f32.mrf.mxu0  ;;  %v5667_v62 = vmax.f32 %v5665_v41, %v5666_v60 }
 0x206   :  { %2340 = vst.msk [vmem:[%s5519_s6 + $0xc8] sm:$0xff] %vm2314_vm3, %v2290_v7  ;;  %v2242_v42 = vadd.f32 %v5121_v54, %v2186_v33  ;;  %v1632_v48 = vmax.f32 %v5652_v46, %v1496_v19 }
 0x207   :  { %v2051_v47 = vpop.f32.mrf.mxu1  ;;  %v3242_v51 = vpop.f32.mrf.mxu0 }
 0x208   :  { %v2291_v1 = vmax.f32 %v2242_v42, 0.0  ;;  %v2187_v38 = vmax.f32 %v1632_v48, %v2051_v47  ;;  %v5668_v48 = vld [vmem:[#allocation19_spill] sm:$0xff]  ;;  %v5669_v47 = vld [vmem:[#allocation20_spill] sm:$0xff] }
 0x209   :  { %v3409_v56 = vpop.f32.mrf.mxu1  ;;  %v1501_v45 = vpop.f32.mrf.mxu0  ;;  %v5670_v51 = vmax.f32 %v5668_v48, %v5669_v47 }
 0x20a   :  { %2341 = vst.msk [vmem:[%s5519_s6 + $0xd0] sm:$0xff] %vm2314_vm3, %v2291_v1  ;;  %v2243_v52 = vadd.f32 %v5121_v54, %v2187_v38  ;;  %v1633_v4 = vmax.f32 %v5655_v36, %v1501_v45 }
 0x20b   :  { %v2056_v25 = vpop.f32.mrf.mxu1  ;;  %v3245_v58 = vpop.f32.mrf.mxu0 }
 0x20c   :  { %v2292_v30 = vmax.f32 %v2243_v52, 0.0  ;;  %v2188_v27 = vmax.f32 %v1633_v4, %v2056_v25  ;;  %v5671_v4 = vld [vmem:[#allocation21_spill] sm:$0xff]  ;;  %v5672_v25 = vld [vmem:[#allocation22_spill] sm:$0xff] }
 0x20d   :  { %v3412_v59 = vpop.f32.mrf.mxu1  ;;  %v1506_v5 = vpop.f32.mrf.mxu0  ;;  %v5673_v58 = vmax.f32 %v5671_v4, %v5672_v25 }
 0x20e   :  { %2342 = vst.msk [vmem:[%s5519_s6 + $0xd8] sm:$0xff] %vm2314_vm3, %v2292_v30  ;;  %v2244_v10 = vadd.f32 %v5121_v54, %v2188_v27  ;;  %v1634_v28 = vmax.f32 %v5658_v22, %v1506_v5 }
 0x20f   :  { %v2061_v14 = vpop.f32.mrf.mxu1  ;;  %v3248_v53 = vpop.f32.mrf.mxu0 }
 0x210   :  { %v2293_v50 = vmax.f32 %v2244_v10, 0.0  ;;  %v2189_v55 = vmax.f32 %v1634_v28, %v2061_v14  ;;  %v5674_v28 = vld [vmem:[#allocation23_spill] sm:$0xff]  ;;  %v5675_v14 = vld [vmem:[#allocation24_spill] sm:$0xff] }
 0x211   :  { %v3415_v57 = vpop.f32.mrf.mxu1  ;;  %v1511_v26 = vpop.f32.mrf.mxu0  ;;  %v5676_v53 = vmax.f32 %v5674_v28, %v5675_v14 }
 0x212   :  { %2343 = vst.msk [vmem:[%s5519_s6 + $0xe0] sm:$0xff] %vm2314_vm3, %v2293_v50  ;;  %v2245_v31 = vadd.f32 %v5121_v54, %v2189_v55  ;;  %v1635_v44 = vmax.f32 %v5661_v3, %v1511_v26 }
 0x213   :  { %v2066_v12 = vpop.f32.mrf.mxu1  ;;  %v3251_v32 = vpop.f32.mrf.mxu0 }
 0x214   :  { %v2294_v34 = vmax.f32 %v2245_v31, 0.0  ;;  %v2190_v0 = vmax.f32 %v1635_v44, %v2066_v12  ;;  %v5677_v44 = vld [vmem:[#allocation25_spill] sm:$0xff]  ;;  %v5678_v12 = vld [vmem:[#allocation26_spill] sm:$0xff] }
 0x215   :  { %v3418_v11 = vpop.f32.mrf.mxu1  ;;  %v1516_v49 = vpop.f32.mrf.mxu0  ;;  %v5679_v32 = vmax.f32 %v5677_v44, %v5678_v12 }
 0x216   :  { %2344 = vst.msk [vmem:[%s5519_s6 + $0xe8] sm:$0xff] %vm2314_vm3, %v2294_v34  ;;  %v2246_v61 = vadd.f32 %v5121_v54, %v2190_v0  ;;  %v1636_v17 = vmax.f32 %v5664_v43, %v1516_v49 }
 0x217   :  { %v2071_v21 = vpop.f32.mrf.mxu1  ;;  %v3254_v24 = vpop.f32.mrf.mxu0 }
 0x218   :  { %v2295_v2 = vmax.f32 %v2246_v61, 0.0  ;;  %v2191_v16 = vmax.f32 %v1636_v17, %v2071_v21  ;;  %v5680_v17 = vld [vmem:[#allocation27_spill] sm:$0xff]  ;;  %v5681_v21 = vld [vmem:[#allocation28_spill] sm:$0xff] }
 0x219   :  { %v3421_v23 = vpop.f32.mrf.mxu1  ;;  %v1521_v35 = vpop.f32.mrf.mxu0  ;;  %v5682_v24 = vmax.f32 %v5680_v17, %v5681_v21 }
 0x21a   :  { %2345 = vst.msk [vmem:[%s5519_s6 + $0xf0] sm:$0xff] %vm2314_vm3, %v2295_v2  ;;  %v2247_v39 = vadd.f32 %v5121_v54, %v2191_v16  ;;  %v1637_v7 = vmax.f32 %v5667_v62, %v1521_v35 }
 0x21b   :  { %v2076_v33 = vpop.f32.mrf.mxu1  ;;  %v3257_v37 = vpop.f32.mrf.mxu0 }
 0x21c   :  { %v2296_v19 = vmax.f32 %v2247_v39, 0.0  ;;  %v2192_v42 = vmax.f32 %v1637_v7, %v2076_v33  ;;  %v5683_v7 = vld [vmem:[#allocation29_spill] sm:$0xff]  ;;  %v5684_v33 = vld [vmem:[#allocation30_spill] sm:$0xff] }
 0x21d   :  { %v3424_v18 = vpop.f32.mrf.mxu1  ;;  %v1526_v20 = vpop.f32.mrf.mxu0  ;;  %v5685_v37 = vmax.f32 %v5683_v7, %v5684_v33 }
 0x21e   :  { %2346 = vst.msk [vmem:[%s5519_s6 + $0xf8] sm:$0xff] %vm2314_vm3, %v2296_v19  ;;  %v2248_v46 = vadd.f32 %v5121_v54, %v2192_v42  ;;  %v1638_v1 = vmax.f32 %v5670_v51, %v1526_v20 }
 0x21f   :  { %v2081_v38 = vpop.f32.mrf.mxu1  ;;  %v3260_v56 = vpop.f32.mrf.mxu0 }
 0x220   :  { %v2297_v45 = vmax.f32 %v2248_v46, 0.0  ;;  %v2193_v52 = vmax.f32 %v1638_v1, %v2081_v38  ;;  %v5686_v1 = vld [vmem:[#allocation31_spill] sm:$0xff]  ;;  %v5687_v38 = vld [vmem:[#allocation32_spill] sm:$0xff] }
 0x221   :  { %v3427_v40 = vpop.f32.mrf.mxu1  ;;  %v1531_v15 = vpop.f32.mrf.mxu0  ;;  %v5688_v56 = vmax.f32 %v5686_v1, %v5687_v38 }
 0x222   :  { %2347 = vst.msk [vmem:[%s5519_s6 + $0x100] sm:$0xff] %vm2314_vm3, %v2297_v45  ;;  %v2249_v36 = vadd.f32 %v5121_v54, %v2193_v52  ;;  %v1639_v30 = vmax.f32 %v5673_v58, %v1531_v15 }
 0x223   :  { %v2086_v27 = vpop.f32.mrf.mxu1  ;;  %v3263_v59 = vpop.f32.mrf.mxu0 }
 0x224   :  { %v2298_v5 = vmax.f32 %v2249_v36, 0.0  ;;  %v2194_v10 = vmax.f32 %v1639_v30, %v2086_v27  ;;  %v5689_v30 = vld [vmem:[#allocation33_spill] sm:$0xff]  ;;  %v5690_v27 = vld [vmem:[#allocation34_spill] sm:$0xff] }
 0x225   :  { %v3430_v63 = vpop.f32.mrf.mxu1  ;;  %v1536_v6 = vpop.f32.mrf.mxu0  ;;  %v5691_v59 = vmax.f32 %v5689_v30, %v5690_v27 }
 0x226   :  { %2348 = vst.msk [vmem:[%s5519_s6 + $0x108] sm:$0xff] %vm2314_vm3, %v2298_v5  ;;  %v2250_v22 = vadd.f32 %v5121_v54, %v2194_v10  ;;  %v1640_v50 = vmax.f32 %v5676_v53, %v1536_v6 }
 0x227   :  { %v2091_v55 = vpop.f32.mrf.mxu1  ;;  %v3266_v57 = vpop.f32.mrf.mxu0 }
 0x228   :  { %v2299_v26 = vmax.f32 %v2250_v22, 0.0  ;;  %v2195_v31 = vmax.f32 %v1640_v50, %v2091_v55  ;;  %v5692_v50 = vld [vmem:[#allocation35_spill] sm:$0xff]  ;;  %v5693_v55 = vld [vmem:[#allocation36_spill] sm:$0xff] }
 0x229   :  { %v3433_v8 = vpop.f32.mrf.mxu1  ;;  %v1541_v9 = vpop.f32.mrf.mxu0  ;;  %v5694_v57 = vmax.f32 %v5692_v50, %v5693_v55 }
 0x22a   :  { %2349 = vst.msk [vmem:[%s5519_s6 + $0x110] sm:$0xff] %vm2314_vm3, %v2299_v26  ;;  %v2251_v3 = vadd.f32 %v5121_v54, %v2195_v31  ;;  %v1641_v34 = vmax.f32 %v5679_v32, %v1541_v9 }
 0x22b   :  { %v2096_v0 = vpop.f32.mrf.mxu1  ;;  %v3269_v11 = vpop.f32.mrf.mxu0 }
 0x22c   :  { %v2300_v49 = vmax.f32 %v2251_v3, 0.0  ;;  %v2196_v61 = vmax.f32 %v1641_v34, %v2096_v0  ;;  %v5695_v34 = vld [vmem:[#allocation37_spill] sm:$0xff]  ;;  %v5696_v0 = vld [vmem:[#allocation38_spill] sm:$0xff] }
 0x22d   :  { %v3436_v13 = vpop.f32.mrf.mxu1  ;;  %v1546_v29 = vpop.f32.mrf.mxu0  ;;  %v5697_v11 = vmax.f32 %v5695_v34, %v5696_v0 }
 0x22e   :  { %2350 = vst.msk [vmem:[%s5519_s6 + $0x118] sm:$0xff] %vm2314_vm3, %v2300_v49  ;;  %v2252_v43 = vadd.f32 %v5121_v54, %v2196_v61  ;;  %v1642_v2 = vmax.f32 %v5682_v24, %v1546_v29 }
 0x22f   :  { %v2101_v16 = vpop.f32.mrf.mxu1  ;;  %v3272_v23 = vpop.f32.mrf.mxu0 }
 0x230   :  { %v2301_v35 = vmax.f32 %v2252_v43, 0.0  ;;  %v2197_v39 = vmax.f32 %v1642_v2, %v2101_v16  ;;  %v5698_v2 = vld [vmem:[#allocation39_spill] sm:$0xff]  ;;  %v5699_v16 = vld [vmem:[#allocation40_spill] sm:$0xff] }
 0x231   :  { %v3439_v41 = vpop.f32.mrf.mxu1  ;;  %v1551_v60 = vpop.f32.mrf.mxu0  ;;  %v5700_v23 = vmax.f32 %v5698_v2, %v5699_v16 }
 0x232   :  { %2351 = vst.msk [vmem:[%s5519_s6 + $0x120] sm:$0xff] %vm2314_vm3, %v2301_v35  ;;  %v2253_v62 = vadd.f32 %v5121_v54, %v2197_v39  ;;  %v1643_v19 = vmax.f32 %v5685_v37, %v1551_v60 }
 0x233   :  { %v2106_v42 = vpop.f32.mrf.mxu1  ;;  %v3275_v18 = vpop.f32.mrf.mxu0 }
 0x234   :  { %v2302_v20 = vmax.f32 %v2253_v62, 0.0  ;;  %v2198_v46 = vmax.f32 %v1643_v19, %v2106_v42  ;;  %v5701_v19 = vld [vmem:[#allocation41_spill] sm:$0xff]  ;;  %v5702_v42 = vld [vmem:[#allocation42_spill] sm:$0xff] }
 0x235   :  { %v3442_v48 = vpop.f32.mrf.mxu1  ;;  %v1556_v47 = vpop.f32.mrf.mxu0  ;;  %v5703_v18 = vmax.f32 %v5701_v19, %v5702_v42 }
 0x236   :  { %2352 = vst.msk [vmem:[%s5519_s6 + $0x128] sm:$0xff] %vm2314_vm3, %v2302_v20  ;;  %v2254_v51 = vadd.f32 %v5121_v54, %v2198_v46  ;;  %v1644_v45 = vmax.f32 %v5688_v56, %v1556_v47 }
 0x237   :  { %v2111_v52 = vpop.f32.mrf.mxu1  ;;  %v3278_v40 = vpop.f32.mrf.mxu0 }
 0x238   :  { %v2303_v15 = vmax.f32 %v2254_v51, 0.0  ;;  %v2199_v36 = vmax.f32 %v1644_v45, %v2111_v52  ;;  %v5704_v45 = vld [vmem:[#allocation43_spill] sm:$0xff]  ;;  %v5705_v52 = vld [vmem:[#allocation44_spill] sm:$0xff] }
 0x239   :  { %v3445_v4 = vpop.f32.mrf.mxu1  ;;  %v1561_v25 = vpop.f32.mrf.mxu0  ;;  %v5706_v40 = vmax.f32 %v5704_v45, %v5705_v52 }
 0x23a   :  { %2353 = vst.msk [vmem:[%s5519_s6 + $0x130] sm:$0xff] %vm2314_vm3, %v2303_v15  ;;  %v2255_v58 = vadd.f32 %v5121_v54, %v2199_v36  ;;  %v1645_v5 = vmax.f32 %v5691_v59, %v1561_v25 }
 0x23b   :  { %v2116_v10 = vpop.f32.mrf.mxu1  ;;  %v3281_v63 = vpop.f32.mrf.mxu0 }
 0x23c   :  { %v2304_v6 = vmax.f32 %v2255_v58, 0.0  ;;  %v2200_v22 = vmax.f32 %v1645_v5, %v2116_v10  ;;  %v5707_v5 = vld [vmem:[#allocation45_spill] sm:$0xff]  ;;  %v5708_v10 = vld [vmem:[#allocation46_spill] sm:$0xff] }
 0x23d   :  { %v3448_v28 = vpop.f32.mrf.mxu1  ;;  %v1566_v14 = vpop.f32.mrf.mxu0  ;;  %v5709_v63 = vmax.f32 %v5707_v5, %v5708_v10 }
 0x23e   :  { %2354 = vst.msk [vmem:[%s5519_s6 + $0x138] sm:$0xff] %vm2314_vm3, %v2304_v6  ;;  %v2256_v53 = vadd.f32 %v5121_v54, %v2200_v22  ;;  %v1646_v26 = vmax.f32 %v5694_v57, %v1566_v14 }
 0x23f   :  { %v2121_v31 = vpop.f32.mrf.mxu1  ;;  %v3284_v8 = vpop.f32.mrf.mxu0 }
 0x240   :  { %v2305_v9 = vmax.f32 %v2256_v53, 0.0  ;;  %v2201_v3 = vmax.f32 %v1646_v26, %v2121_v31  ;;  %v5710_v26 = vld [vmem:[#allocation47_spill] sm:$0xff]  ;;  %v5711_v31 = vld [vmem:[#allocation48_spill] sm:$0xff] }
 0x241   :  { %v3451_v44 = vpop.f32.mrf.mxu1  ;;  %v1571_v12 = vpop.f32.mrf.mxu0  ;;  %v5712_v8 = vmax.f32 %v5710_v26, %v5711_v31 }
 0x242   :  { %2355 = vst.msk [vmem:[%s5519_s6 + $0x140] sm:$0xff] %vm2314_vm3, %v2305_v9  ;;  %v2257_v32 = vadd.f32 %v5121_v54, %v2201_v3  ;;  %v1647_v49 = vmax.f32 %v5697_v11, %v1571_v12 }
 0x243   :  { %v2126_v61 = vpop.f32.mrf.mxu1  ;;  %v3287_v13 = vpop.f32.mrf.mxu0 }
 0x244   :  { %v2306_v29 = vmax.f32 %v2257_v32, 0.0  ;;  %v2202_v43 = vmax.f32 %v1647_v49, %v2126_v61  ;;  %v5713_v49 = vld [vmem:[#allocation49_spill] sm:$0xff]  ;;  %v5714_v61 = vld [vmem:[#allocation50_spill] sm:$0xff] }
 0x245   :  { %v3454_v17 = vpop.f32.mrf.mxu1  ;;  %v1576_v21 = vpop.f32.mrf.mxu0  ;;  %v5715_v13 = vmax.f32 %v5713_v49, %v5714_v61 }
 0x246   :  { %2356 = vst.msk [vmem:[%s5519_s6 + $0x148] sm:$0xff] %vm2314_vm3, %v2306_v29  ;;  %v2258_v24 = vadd.f32 %v5121_v54, %v2202_v43  ;;  %v1648_v35 = vmax.f32 %v5700_v23, %v1576_v21 }
 0x247   :  { %v2131_v39 = vpop.f32.mrf.mxu1  ;;  %v3290_v41 = vpop.f32.mrf.mxu0 }
 0x248   :  { %v2307_v60 = vmax.f32 %v2258_v24, 0.0  ;;  %v2203_v62 = vmax.f32 %v1648_v35, %v2131_v39 }
 0x249   :  { %v3457_v7 = vpop.f32.mrf.mxu1  ;;  %v1581_v33 = vpop.f32.mrf.mxu0 }
 0x24a   :  { %2357 = vst.msk [vmem:[%s5519_s6 + $0x150] sm:$0xff] %vm2314_vm3, %v2307_v60  ;;  %v2259_v37 = vadd.f32 %v5121_v54, %v2203_v62  ;;  %v1649_v20 = vmax.f32 %v5703_v18, %v1581_v33 }
 0x24b   :  { %v2136_v46 = vpop.f32.mrf.mxu1  ;;  %v3293_v48 = vpop.f32.mrf.mxu0 }
 0x24c   :  { %v2308_v47 = vmax.f32 %v2259_v37, 0.0  ;;  %v2204_v51 = vmax.f32 %v1649_v20, %v2136_v46 }
 0x24d   :  { %v3460_v1 = vpop.f32.mrf.mxu1  ;;  %v1586_v38 = vpop.f32.mrf.mxu0 }
 0x24e   :  { %2358 = vst.msk [vmem:[%s5519_s6 + $0x158] sm:$0xff] %vm2314_vm3, %v2308_v47  ;;  %v2260_v56 = vadd.f32 %v5121_v54, %v2204_v51  ;;  %v1650_v15 = vmax.f32 %v5706_v40, %v1586_v38 }
 0x24f   :  { %v2141_v36 = vpop.f32.mrf.mxu1  ;;  %v3296_v4 = vpop.f32.mrf.mxu0 }
 0x250   :  { %v2309_v25 = vmax.f32 %v2260_v56, 0.0  ;;  %v2205_v58 = vmax.f32 %v1650_v15, %v2141_v36 }
 0x251   :  { %v3463_v30 = vpop.f32.mrf.mxu1  ;;  %v1591_v27 = vpop.f32.mrf.mxu0 }
 0x252   :  { %2359 = vst.msk [vmem:[%s5519_s6 + $0x160] sm:$0xff] %vm2314_vm3, %v2309_v25  ;;  %v2261_v59 = vadd.f32 %v5121_v54, %v2205_v58  ;;  %v1651_v6 = vmax.f32 %v5709_v63, %v1591_v27 }
 0x253   :  { %v2146_v22 = vpop.f32.mrf.mxu1  ;;  %v3299_v28 = vpop.f32.mrf.mxu0 }
 0x254   :  { %v2310_v14 = vmax.f32 %v2261_v59, 0.0  ;;  %v2206_v53 = vmax.f32 %v1651_v6, %v2146_v22 }
 0x255   :  { %v3466_v50 = vpop.f32.mrf.mxu1  ;;  %v1596_v55 = vpop.f32.mrf.mxu0 }
 0x256   :  { %2360 = vst.msk [vmem:[%s5519_s6 + $0x168] sm:$0xff] %vm2314_vm3, %v2310_v14  ;;  %v2262_v57 = vadd.f32 %v5121_v54, %v2206_v53  ;;  %v1652_v9 = vmax.f32 %v5712_v8, %v1596_v55 }
 0x257   :  { %v2151_v3 = vpop.f32.mrf.mxu1  ;;  %v3302_v44 = vpop.f32.mrf.mxu0 }
 0x258   :  { %v2311_v12 = vmax.f32 %v2262_v57, 0.0  ;;  %v2207_v32 = vmax.f32 %v1652_v9, %v2151_v3 }
 0x259   :  { %v3469_v34 = vpop.f32.mrf.mxu1  ;;  %v1601_v0 = vpop.f32.mrf.mxu0 }
 0x25a   :  { %2361 = vst.msk [vmem:[%s5519_s6 + $0x170] sm:$0xff] %vm2314_vm3, %v2311_v12  ;;  %v2263_v11 = vadd.f32 %v5121_v54, %v2207_v32  ;;  %v1653_v29 = vmax.f32 %v5715_v13, %v1601_v0 }
 0x25b   :  { %v2156_v43 = vpop.f32.mrf.mxu1  ;;  %v3305_v17 = vpop.f32.mrf.mxu0 }
 0x25c   :  { %v2312_v21 = vmax.f32 %v2263_v11, 0.0  ;;  %v2208_v24 = vmax.f32 %v1653_v29, %v2156_v43 }
 0x25d   :  { %v3472_v2 = vpop.f32.mrf.mxu1 }
 0x25e   :  { %2362 = vst.msk [vmem:[%s5519_s6 + $0x178] sm:$0xff] %vm2314_vm3, %v2312_v21  ;;  %v2264_v16 = vadd.f32 %v5121_v54, %v2208_v24 }
 0x260   :  { %v2313_v23 = vmax.f32 %v2264_v16, 0.0 }
 0x262   :  { %2363 = vst.msk [vmem:[%s5519_s6 + $0x180] sm:$0xff] %vm2314_vm3, %v2313_v23 }

// kernel: net_forward.4
= control target key start
LH: loop header
LB: loop body
LE: loop exit
PB: predicated region body
PF: predicated region fallthrough
CT: control target
= control target key end

     0   :  { %v676_v0 = vmov 0.0   ;;  %vm78_vm0 = vcmask 1045504   ;;  %vm56_vm1 = vcmask 179200   ;;  %vm629_vm2 = vcmask 130048   ;;  %s1207_s4 = inlined_call_operand.vmem [shape: f32[150,16], index: 4, kind: input, shape index: {}]   ;;  %s1208_s0 = inlined_call_operand.vmem [shape: f32[50,150], index: 0, kind: input, shape index: {}]   ;;  %s1209_s1 = inlined_call_operand.vmem [shape: f32[50,150], index: 1, kind: input, shape index: {}]   ;;  %s1210_s2 = inlined_call_operand.vmem [shape: f32[50,150], index: 2, kind: input, shape index: {}]   ;;  %s1211_s3 = inlined_call_operand.vmem [shape: f32[50,150], index: 3, kind: input, shape index: {}]   ;;  %s1212_s5 = inlined_call_operand.vmem [shape: f32[1,16], index: 5, kind: input, shape index: {}]   ;;  %s1213_s6 = inlined_call_operand.vmem [shape: f32[50,16], index: 6, kind: output, shape index: {}]  }
   0x1   :  { %82 = vmatprep.subr.mxu0 %v676_v0  ;;  %217 = vmatprep.subr.mxu1 %v676_v0  ;;  %v717_v1 = vld [vmem:[%s1207_s4 + $0x78] sm:$0xff]  ;;  %v722_v2 = vld [vmem:[%s1207_s4 + $0x70] sm:$0xff]  ;;  %v731_v3 = vld [vmem:[%s1207_s4 + $0x68] sm:$0xff]  ;;  %vm636_vm3 = vcmask 123904  }
   0x2   :  { %83 = vmatpush1.msra.mxu0 %v717_v1  ;;  %218 = vmatpush1.msra.mxu1 %v717_v1  ;;  %v740_v4 = vld [vmem:[%s1207_s4 + $0x60] sm:$0xff]  ;;  %v749_v5 = vld [vmem:[%s1207_s4 + $0x58] sm:$0xff]  ;;  %v758_v6 = vld [vmem:[%s1207_s4 + $0x50] sm:$0xff] }
   0x3   :  { %84 = vmatprep.subr.mxu0 %v676_v0  ;;  %219 = vmatprep.subr.mxu1 %v676_v0  ;;  %v767_v7 = vld [vmem:[%s1207_s4 + $0x48] sm:$0xff]  ;;  %v776_v8 = vld [vmem:[%s1207_s4 + $0x40] sm:$0xff]  ;;  %v785_v9 = vld [vmem:[%s1207_s4 + $0x38] sm:$0xff] }
   0x4   :  { %85 = vmatpush1.msra.mxu0 %v722_v2  ;;  %220 = vmatpush1.msra.mxu1 %v722_v2  ;;  %v794_v10 = vld [vmem:[%s1207_s4 + $0x30] sm:$0xff]  ;;  %v803_v11 = vld [vmem:[%s1207_s4 + $0x28] sm:$0xff]  ;;  %v812_v12 = vld [vmem:[%s1207_s4 + $0x20] sm:$0xff] }
   0x5   :  { %86 = vmatprep.subr.mxu0 %v676_v0  ;;  %221 = vmatprep.subr.mxu1 %v676_v0  ;;  %v821_v13 = vld [vmem:[%s1207_s4 + $0x18] sm:$0xff]  ;;  %v830_v14 = vld [vmem:[%s1207_s4 + $0x10] sm:$0xff]  ;;  %v839_v15 = vld [vmem:[%s1207_s4 + $0x8] sm:$0xff] }
   0x6   :  { %87 = vmatpush1.msra.mxu0 %v731_v3  ;;  %222 = vmatpush1.msra.mxu1 %v731_v3  ;;  %v848_v16 = vld [vmem:[%s1207_s4] sm:$0xff]  ;;  %v857_v17 = vld [vmem:[%s1207_s4 + $0x90] sm:$0x3f]  ;;  %v866_v18 = vld [vmem:[%s1207_s4 + $0x88] sm:$0xff] }
   0x7   :  { %88 = vmatprep.subr.mxu0 %v676_v0  ;;  %223 = vmatprep.subr.mxu1 %v676_v0  ;;  %v877_v19 = vld [vmem:[%s1207_s4 + $0x80] sm:$0xff]  ;;  %v43_v20 = vld [vmem:[%s1208_s0 + $0x8] sm:$0xff]  ;;  %v45_v24 = vld [vmem:[%s1208_s0 + $0x18] sm:$0xff] }
   0x8   :  { %89 = vmatpush1.msra.mxu0 %v740_v4  ;;  %224 = vmatpush1.msra.mxu1 %v740_v4  ;;  %v42_v21 = vld [vmem:[%s1208_s0] sm:$0xff]  ;;  %v183_v22 = vld [vmem:[%s1209_s1 + $0x8] sm:$0xff]  ;;  %v44_v25 = vld [vmem:[%s1208_s0 + $0x10] sm:$0xff] }
   0x9   :  { %90 = vmatprep.subr.mxu0 %v676_v0  ;;  %225 = vmatprep.subr.mxu1 %v676_v0  ;;  %v182_v23 = vld [vmem:[%s1209_s1] sm:$0xff]  ;;  %v185_v26 = vld [vmem:[%s1209_s1 + $0x18] sm:$0xff]  ;;  %v184_v27 = vld [vmem:[%s1209_s1 + $0x10] sm:$0xff] }
   0xa   :  { %91 = vmatpush1.msra.mxu0 %v749_v5  ;;  %226 = vmatpush1.msra.mxu1 %v749_v5  ;;  %v47_v28 = vld [vmem:[%s1208_s0 + $0x28] sm:$0xff]  ;;  %v46_v29 = vld [vmem:[%s1208_s0 + $0x20] sm:$0xff]  ;;  %v49_v32 = vld [vmem:[%s1208_s0 + $0x38] sm:$0xff] }
   0xb   :  { %92 = vmatprep.subr.mxu0 %v676_v0  ;;  %227 = vmatprep.subr.mxu1 %v676_v0  ;;  %v187_v30 = vld [vmem:[%s1209_s1 + $0x28] sm:$0xff]  ;;  %v186_v31 = vld [vmem:[%s1209_s1 + $0x20] sm:$0xff]  ;;  %v48_v33 = vld [vmem:[%s1208_s0 + $0x30] sm:$0xff] }
   0xc   :  { %93 = vmatpush1.msra.mxu0 %v758_v6  ;;  %228 = vmatpush1.msra.mxu1 %v758_v6  ;;  %v189_v34 = vld [vmem:[%s1209_s1 + $0x38] sm:$0xff]  ;;  %v188_v35 = vld [vmem:[%s1209_s1 + $0x30] sm:$0xff]  ;;  %v51_v36 = vld [vmem:[%s1208_s0 + $0x48] sm:$0xff] }
   0xd   :  { %94 = vmatprep.subr.mxu0 %v676_v0  ;;  %229 = vmatprep.subr.mxu1 %v676_v0  ;;  %v50_v37 = vld [vmem:[%s1208_s0 + $0x40] sm:$0xff]  ;;  %v191_v38 = vld [vmem:[%s1209_s1 + $0x48] sm:$0xff]  ;;  %v53_v40 = vld [vmem:[%s1208_s0 + $0x58] sm:$0xff] }
   0xe   :  { %95 = vmatpush1.msra.mxu0 %v767_v7  ;;  %230 = vmatpush1.msra.mxu1 %v767_v7  ;;  %v190_v39 = vld [vmem:[%s1209_s1 + $0x40] sm:$0xff]  ;;  %v52_v41 = vld [vmem:[%s1208_s0 + $0x50] sm:$0xff]  ;;  %v193_v42 = vld [vmem:[%s1209_s1 + $0x58] sm:$0xff] }
   0xf   :  { %96 = vmatprep.subr.mxu0 %v676_v0  ;;  %231 = vmatprep.subr.mxu1 %v676_v0  ;;  %v192_v43 = vld [vmem:[%s1209_s1 + $0x50] sm:$0xff]  ;;  %v55_v44 = vld [vmem:[%s1208_s0 + $0x68] sm:$0x3]  ;;  %v54_v45 = vld [vmem:[%s1208_s0 + $0x60] sm:$0x3] }
  0x10   :  { %97 = vmatpush1.msra.mxu0 %v776_v8  ;;  %232 = vmatpush1.msra.mxu1 %v776_v8  ;;  %v195_v46 = vld [vmem:[%s1209_s1 + $0x68] sm:$0x3]  ;;  %v194_v47 = vld [vmem:[%s1209_s1 + $0x60] sm:$0x3]  ;;  %v327_v52 = vld [vmem:[%s1210_s2 + $0x18] sm:$0xff] }
  0x11   :  { %98 = vmatprep.subr.mxu0 %v676_v0  ;;  %233 = vmatprep.subr.mxu1 %v676_v0  ;;  %v325_v48 = vld [vmem:[%s1210_s2 + $0x8] sm:$0xff]  ;;  %v324_v50 = vld [vmem:[%s1210_s2] sm:$0xff]  ;;  %v469_v53 = vld [vmem:[%s1211_s3 + $0x18] sm:$0xff] }
  0x12   :  { %99 = vmatpush1.msra.mxu0 %v785_v9  ;;  %234 = vmatpush1.msra.mxu1 %v785_v9  ;;  %v467_v49 = vld [vmem:[%s1211_s3 + $0x8] sm:$0xff]  ;;  %v466_v51 = vld [vmem:[%s1211_s3] sm:$0xff]  ;;  %v326_v54 = vld [vmem:[%s1210_s2 + $0x10] sm:$0xff] }
  0x13   :  { %100 = vmatprep.subr.mxu0 %v676_v0  ;;  %235 = vmatprep.subr.mxu1 %v676_v0  ;;  %v468_v55 = vld [vmem:[%s1211_s3 + $0x10] sm:$0xff]  ;;  %v329_v56 = vld [vmem:[%s1210_s2 + $0x28] sm:$0xff]  ;;  %v328_v58 = vld [vmem:[%s1210_s2 + $0x20] sm:$0xff] }
  0x14   :  { %101 = vmatpush1.msra.mxu0 %v794_v10  ;;  %236 = vmatpush1.msra.mxu1 %v794_v10  ;;  %v471_v57 = vld [vmem:[%s1211_s3 + $0x28] sm:$0xff]  ;;  %v470_v59 = vld [vmem:[%s1211_s3 + $0x20] sm:$0xff]  ;;  %v331_v60 = vld [vmem:[%s1210_s2 + $0x38] sm:$0xff] }
  0x15   :  { %102 = vmatprep.subr.mxu0 %v676_v0  ;;  %237 = vmatprep.subr.mxu1 %v676_v0  ;;  %v473_v61 = vld [vmem:[%s1211_s3 + $0x38] sm:$0xff]  ;;  %v330_v62 = vld [vmem:[%s1210_s2 + $0x30] sm:$0xff] }
  0x16   :  { %103 = vmatpush1.msra.mxu0 %v803_v11  ;;  %238 = vmatpush1.msra.mxu1 %v803_v11  ;;  %v472_v63 = vld [vmem:[%s1211_s3 + $0x30] sm:$0xff] }
  0x17   :  { %104 = vmatprep.subr.mxu0 %v676_v0  ;;  %239 = vmatprep.subr.mxu1 %v676_v0 }
  0x18   :  { %105 = vmatpush1.msra.mxu0 %v812_v12  ;;  %240 = vmatpush1.msra.mxu1 %v812_v12 }
  0x19   :  { %106 = vmatprep.subr.mxu0 %v676_v0  ;;  %241 = vmatprep.subr.mxu1 %v676_v0 }
  0x1a   :  { %107 = vmatpush1.msra.mxu0 %v821_v13  ;;  %242 = vmatpush1.msra.mxu1 %v821_v13 }
  0x1b   :  { %108 = vmatprep.subr.mxu0 %v676_v0  ;;  %243 = vmatprep.subr.mxu1 %v676_v0 }
  0x1c   :  { %109 = vmatpush1.msra.mxu0 %v830_v14  ;;  %244 = vmatpush1.msra.mxu1 %v830_v14 }
  0x1d   :  { %110 = vmatprep.subr.mxu0 %v676_v0  ;;  %245 = vmatprep.subr.mxu1 %v676_v0 }
  0x1e   :  { %111 = vmatpush1.msra.mxu0 %v839_v15  ;;  %246 = vmatpush1.msra.mxu1 %v839_v15 }
  0x1f   :  { %112 = vmatprep.subr.mxu0 %v676_v0  ;;  %247 = vmatprep.subr.mxu1 %v676_v0 }
  0x20   :  { %113 = vmatpush1.msra.mxu0 %v848_v16  ;;  %248 = vmatpush1.msra.mxu1 %v848_v16 }
  0x21   :  { %140 = vmatprep.subr.mxu0 %v676_v0  ;;  %275 = vmatprep.subr.mxu1 %v676_v0 }
  0x22   :  { %642 = vmatpush2.msk.msra.mxu0 %vm78_vm0, %v857_v17  ;;  %650 = vmatpush2.msk.msra.mxu1 %vm78_vm0, %v857_v17 }
  0x23   :  { %142 = vmatprep.subr.mxu0 %v676_v0  ;;  %277 = vmatprep.subr.mxu1 %v676_v0 }
  0x24   :  { %143 = vmatpush2.msra.mxu0 %v866_v18  ;;  %278 = vmatpush2.msra.mxu1 %v866_v18 }
  0x25   :  { %144 = vmatprep.subr.mxu0 %v676_v0  ;;  %279 = vmatprep.subr.mxu1 %v676_v0 }
  0x26   :  { %145 = vmatpush2.msra.mxu0 %v877_v19  ;;  %643 = vmatprep.mubr.msk.f32.mxu0 %vm56_vm1, %v43_v20 }
  0x27   :  { %280 = vmatpush2.msra.mxu1 %v877_v19  ;;  %147 = vmatmul.mubr.f32.vlgmr.msra.gmra.mxu0 %v42_v21 }
  0x28   :  { %651 = vmatprep.mubr.msk.f32.mxu1 %vm56_vm1, %v183_v22  ;;  %359 = vmatprep.subr.mxu0 %v676_v0 }
  0x29   :  { %501 = vmatprep.subr.mxu1 %v676_v0  ;;  %282 = vmatmul.mubr.f32.vlgmr.msra.gmra.mxu1 %v182_v23 }
  0x2a   :  { %360 = vmatpush1.msra.mxu0 %v717_v1  ;;  %502 = vmatpush1.msra.mxu1 %v717_v1  ;;  %v475_v1 = vld [vmem:[%s1211_s3 + $0x48] sm:$0xff] }
  0x2b   :  { %361 = vmatprep.subr.mxu0 %v676_v0  ;;  %503 = vmatprep.subr.mxu1 %v676_v0 }
  0x2c   :  { %362 = vmatpush1.msra.mxu0 %v722_v2  ;;  %504 = vmatpush1.msra.mxu1 %v722_v2  ;;  %v332_v2 = vld [vmem:[%s1210_s2 + $0x40] sm:$0xff] }
  0x2d   :  { %363 = vmatprep.subr.mxu0 %v676_v0  ;;  %505 = vmatprep.subr.mxu1 %v676_v0 }
  0x2e   :  { %364 = vmatpush1.msra.mxu0 %v731_v3  ;;  %506 = vmatpush1.msra.mxu1 %v731_v3  ;;  %v474_v3 = vld [vmem:[%s1211_s3 + $0x40] sm:$0xff] }
  0x2f   :  { %365 = vmatprep.subr.mxu0 %v676_v0  ;;  %507 = vmatprep.subr.mxu1 %v676_v0 }
  0x30   :  { %366 = vmatpush1.msra.mxu0 %v740_v4  ;;  %508 = vmatpush1.msra.mxu1 %v740_v4  ;;  %v335_v4 = vld [vmem:[%s1210_s2 + $0x58] sm:$0xff] }
  0x31   :  { %367 = vmatprep.subr.mxu0 %v676_v0  ;;  %509 = vmatprep.subr.mxu1 %v676_v0 }
  0x32   :  { %368 = vmatpush1.msra.mxu0 %v749_v5  ;;  %510 = vmatpush1.msra.mxu1 %v749_v5  ;;  %v477_v5 = vld [vmem:[%s1211_s3 + $0x58] sm:$0xff] }
  0x33   :  { %369 = vmatprep.subr.mxu0 %v676_v0  ;;  %511 = vmatprep.subr.mxu1 %v676_v0 }
  0x34   :  { %644 = vmatprep.mubr.msk.f32.mxu0 %vm56_vm1, %v45_v24  ;;  %370 = vmatpush1.msra.mxu0 %v758_v6 }
  0x35   :  { %512 = vmatpush1.msra.mxu1 %v758_v6  ;;  %152 = vmatmul.mubr.f32.gmra.mxu0 %v44_v25  ;;  %v334_v6 = vld [vmem:[%s1210_s2 + $0x50] sm:$0xff] }
  0x36   :  { %371 = vmatprep.subr.mxu0 %v676_v0  ;;  %513 = vmatprep.subr.mxu1 %v676_v0 }
  0x37   :  { %652 = vmatprep.mubr.msk.f32.mxu1 %vm56_vm1, %v185_v26  ;;  %372 = vmatpush1.msra.mxu0 %v767_v7 }
  0x38   :  { %514 = vmatpush1.msra.mxu1 %v767_v7  ;;  %373 = vmatprep.subr.mxu0 %v676_v0  ;;  %v476_v7 = vld [vmem:[%s1211_s3 + $0x50] sm:$0xff] }
  0x39   :  { %287 = vmatmul.mubr.f32.gmra.mxu1 %v184_v27  ;;  %515 = vmatprep.subr.mxu1 %v676_v0 }
  0x3a   :  { %645 = vmatprep.mubr.msk.f32.mxu0 %vm56_vm1, %v47_v28  ;;  %374 = vmatpush1.msra.mxu0 %v776_v8 }
  0x3b   :  { %516 = vmatpush1.msra.mxu1 %v776_v8  ;;  %157 = vmatmul.mubr.f32.gmra.mxu0 %v46_v29  ;;  %v337_v8 = vld [vmem:[%s1210_s2 + $0x68] sm:$0x3] }
  0x3c   :  { %375 = vmatprep.subr.mxu0 %v676_v0  ;;  %517 = vmatprep.subr.mxu1 %v676_v0 }
  0x3d   :  { %653 = vmatprep.mubr.msk.f32.mxu1 %vm56_vm1, %v187_v30  ;;  %376 = vmatpush1.msra.mxu0 %v785_v9 }
  0x3e   :  { %518 = vmatpush1.msra.mxu1 %v785_v9  ;;  %377 = vmatprep.subr.mxu0 %v676_v0  ;;  %v479_v9 = vld [vmem:[%s1211_s3 + $0x68] sm:$0x3] }
  0x3f   :  { %292 = vmatmul.mubr.f32.gmra.mxu1 %v186_v31  ;;  %519 = vmatprep.subr.mxu1 %v676_v0 }
  0x40   :  { %646 = vmatprep.mubr.msk.f32.mxu0 %vm56_vm1, %v49_v32  ;;  %378 = vmatpush1.msra.mxu0 %v794_v10 }
  0x41   :  { %520 = vmatpush1.msra.mxu1 %v794_v10  ;;  %162 = vmatmul.mubr.f32.gmra.mxu0 %v48_v33  ;;  %v336_v10 = vld [vmem:[%s1210_s2 + $0x60] sm:$0x3] }
  0x42   :  { %379 = vmatprep.subr.mxu0 %v676_v0  ;;  %521 = vmatprep.subr.mxu1 %v676_v0 }
  0x43   :  { %654 = vmatprep.mubr.msk.f32.mxu1 %vm56_vm1, %v189_v34  ;;  %380 = vmatpush1.msra.mxu0 %v803_v11 }
  0x44   :  { %522 = vmatpush1.msra.mxu1 %v803_v11  ;;  %381 = vmatprep.subr.mxu0 %v676_v0  ;;  %v478_v11 = vld [vmem:[%s1211_s3 + $0x60] sm:$0x3] }
  0x45   :  { %297 = vmatmul.mubr.f32.gmra.mxu1 %v188_v35  ;;  %523 = vmatprep.subr.mxu1 %v676_v0 }
  0x46   :  { %647 = vmatprep.mubr.msk.f32.mxu0 %vm56_vm1, %v51_v36  ;;  %382 = vmatpush1.msra.mxu0 %v812_v12 }
  0x47   :  { %524 = vmatpush1.msra.mxu1 %v812_v12  ;;  %167 = vmatmul.mubr.f32.gmra.mxu0 %v50_v37 }
  0x48   :  { %383 = vmatprep.subr.mxu0 %v676_v0  ;;  %525 = vmatprep.subr.mxu1 %v676_v0 }
  0x49   :  { %655 = vmatprep.mubr.msk.f32.mxu1 %vm56_vm1, %v191_v38  ;;  %384 = vmatpush1.msra.mxu0 %v821_v13 }
  0x4a   :  { %526 = vmatpush1.msra.mxu1 %v821_v13  ;;  %385 = vmatprep.subr.mxu0 %v676_v0 }
  0x4b   :  { %302 = vmatmul.mubr.f32.gmra.mxu1 %v190_v39  ;;  %527 = vmatprep.subr.mxu1 %v676_v0 }
  0x4c   :  { %648 = vmatprep.mubr.msk.f32.mxu0 %vm56_vm1, %v53_v40  ;;  %386 = vmatpush1.msra.mxu0 %v830_v14 }
  0x4d   :  { %528 = vmatpush1.msra.mxu1 %v830_v14  ;;  %172 = vmatmul.mubr.f32.gmra.mxu0 %v52_v41 }
  0x4e   :  { %387 = vmatprep.subr.mxu0 %v676_v0  ;;  %529 = vmatprep.subr.mxu1 %v676_v0 }
  0x4f   :  { %656 = vmatprep.mubr.msk.f32.mxu1 %vm56_vm1, %v193_v42  ;;  %388 = vmatpush1.msra.mxu0 %v839_v15 }
  0x50   :  { %530 = vmatpush1.msra.mxu1 %v839_v15  ;;  %389 = vmatprep.subr.mxu0 %v676_v0 }
  0x51   :  { %307 = vmatmul.mubr.f32.gmra.mxu1 %v192_v43  ;;  %531 = vmatprep.subr.mxu1 %v676_v0 }
  0x52   :  { %649 = vmatprep.mubr.msk.f32.mxu0 %vm56_vm1, %v55_v44  ;;  %390 = vmatpush1.msra.mxu0 %v848_v16  ;;  %v1168_v44 = vld [vmem:[%s1212_s5] ss:$0 sm:$0xff] }
  0x53   :  { %532 = vmatpush1.msra.mxu1 %v848_v16  ;;  %177 = vmatmul.mubr.f32.gmra.mxu0 %v54_v45 }
  0x54   :  { %417 = vmatprep.subr.mxu0 %v676_v0  ;;  %559 = vmatprep.subr.mxu1 %v676_v0 }
  0x55   :  { %657 = vmatprep.mubr.msk.f32.mxu1 %vm56_vm1, %v195_v46  ;;  %658 = vmatpush2.msk.msra.mxu0 %vm78_vm0, %v857_v17 }
  0x56   :  { %666 = vmatpush2.msk.msra.mxu1 %vm78_vm0, %v857_v17  ;;  %419 = vmatprep.subr.mxu0 %v676_v0 }
  0x57   :  { %312 = vmatmul.mubr.f32.gmra.mxu1 %v194_v47  ;;  %561 = vmatprep.subr.mxu1 %v676_v0 }
  0x58   :  { %420 = vmatpush2.msra.mxu0 %v866_v18  ;;  %562 = vmatpush2.msra.mxu1 %v866_v18 }
  0x59   :  { %421 = vmatprep.subr.mxu0 %v676_v0  ;;  %563 = vmatprep.subr.mxu1 %v676_v0  ;;  %v333_v0 = vld [vmem:[%s1210_s2 + $0x48] sm:$0xff] }
  0x5a   :  { %422 = vmatpush2.msra.mxu0 %v877_v19  ;;  %659 = vmatprep.mubr.msk.f32.mxu0 %vm56_vm1, %v325_v48 }
  0x5b   :  { %564 = vmatpush2.msra.mxu1 %v877_v19  ;;  %667 = vmatprep.mubr.msk.f32.mxu1 %vm56_vm1, %v467_v49 }
  0x5c   :  { %424 = vmatmul.mubr.f32.vlgmr.msra.gmra.mxu0 %v324_v50  ;;  %566 = vmatmul.mubr.f32.vlgmr.msra.gmra.mxu1 %v466_v51 }
  0x5d   :  { %660 = vmatprep.mubr.msk.f32.mxu0 %vm56_vm1, %v327_v52  ;;  %668 = vmatprep.mubr.msk.f32.mxu1 %vm56_vm1, %v469_v53 }
  0x60   :  { %429 = vmatmul.mubr.f32.gmra.mxu0 %v326_v54  ;;  %571 = vmatmul.mubr.f32.gmra.mxu1 %v468_v55 }
  0x61   :  { %661 = vmatprep.mubr.msk.f32.mxu0 %vm56_vm1, %v329_v56  ;;  %669 = vmatprep.mubr.msk.f32.mxu1 %vm56_vm1, %v471_v57 }
  0x64   :  { %434 = vmatmul.mubr.f32.gmra.mxu0 %v328_v58  ;;  %576 = vmatmul.mubr.f32.gmra.mxu1 %v470_v59 }
  0x65   :  { %662 = vmatprep.mubr.msk.f32.mxu0 %vm56_vm1, %v331_v60  ;;  %670 = vmatprep.mubr.msk.f32.mxu1 %vm56_vm1, %v473_v61 }
  0x68   :  { %439 = vmatmul.mubr.f32.gmra.mxu0 %v330_v62  ;;  %581 = vmatmul.mubr.f32.gmra.mxu1 %v472_v63 }
  0x69   :  { %663 = vmatprep.mubr.msk.f32.mxu0 %vm56_vm1, %v333_v0  ;;  %671 = vmatprep.mubr.msk.f32.mxu1 %vm56_vm1, %v475_v1 }
  0x6c   :  { %444 = vmatmul.mubr.f32.gmra.mxu0 %v332_v2  ;;  %586 = vmatmul.mubr.f32.gmra.mxu1 %v474_v3 }
  0x6d   :  { %664 = vmatprep.mubr.msk.f32.mxu0 %vm56_vm1, %v335_v4  ;;  %672 = vmatprep.mubr.msk.f32.mxu1 %vm56_vm1, %v477_v5 }
  0x70   :  { %449 = vmatmul.mubr.f32.gmra.mxu0 %v334_v6  ;;  %591 = vmatmul.mubr.f32.gmra.mxu1 %v476_v7 }
  0x71   :  { %665 = vmatprep.mubr.msk.f32.mxu0 %vm56_vm1, %v337_v8  ;;  %673 = vmatprep.mubr.msk.f32.mxu1 %vm56_vm1, %v479_v9 }
  0x74   :  { %454 = vmatmul.mubr.f32.gmra.mxu0 %v336_v10  ;;  %596 = vmatmul.mubr.f32.gmra.mxu1 %v478_v11 }
  0xe7   :  { %v148_v12 = vpop.f32.mrf.mxu0 }
  0xe9   :  { %v283_v13 = vpop.f32.mrf.mxu1  ;;  %v150_v14 = vpop.f32.mrf.mxu0 }
  0xea   :  { %v317_v40 = vmax.f32 %v148_v12, %v283_v13 }
  0xeb   :  { %v285_v15 = vpop.f32.mrf.mxu1 }
  0xf5   :  { %v153_v16 = vpop.f32.mrf.mxu0 }
  0xf7   :  { %v155_v17 = vpop.f32.mrf.mxu0 }
  0xf9   :  { %v288_v18 = vpop.f32.mrf.mxu1 }
  0xfa   :  { %v318_v47 = vmax.f32 %v153_v16, %v288_v18 }
  0xfb   :  { %v158_v19 = vpop.f32.mrf.mxu0  ;;  %v290_v20 = vpop.f32.mrf.mxu1 }
  0xfd   :  { %v160_v21 = vpop.f32.mrf.mxu0 }
  0xff   :  { %v293_v22 = vpop.f32.mrf.mxu1 }
 0x100   :  { %v319_v55 = vmax.f32 %v158_v19, %v293_v22 }
 0x101   :  { %v163_v23 = vpop.f32.mrf.mxu0  ;;  %v295_v24 = vpop.f32.mrf.mxu1 }
 0x103   :  { %v165_v25 = vpop.f32.mrf.mxu0 }
 0x105   :  { %v298_v26 = vpop.f32.mrf.mxu1 }
 0x106   :  { %v320_v0 = vmax.f32 %v163_v23, %v298_v26 }
 0x107   :  { %v168_v27 = vpop.f32.mrf.mxu0  ;;  %v300_v28 = vpop.f32.mrf.mxu1 }
 0x109   :  { %v170_v29 = vpop.f32.mrf.mxu0 }
 0x10b   :  { %v303_v30 = vpop.f32.mrf.mxu1 }
 0x10c   :  { %v321_v9 = vmax.f32 %v168_v27, %v303_v30 }
 0x10d   :  { %v1159_v31 = vpop.f32.mrf.mxu0  ;;  %v305_v32 = vpop.f32.mrf.mxu1 }
 0x10f   :  { %v175_v33 = vpop.f32.mrf.mxu0 }
 0x111   :  { %v308_v34 = vpop.f32.mrf.mxu1 }
 0x112   :  { %v322_v18 = vmax.f32 %v1159_v31, %v308_v34 }
 0x113   :  { %v1161_v35 = vpop.f32.mrf.mxu0  ;;  %v310_v36 = vpop.f32.mrf.mxu1 }
 0x115   :  { %v180_v37 = vpop.f32.mrf.mxu0 }
 0x117   :  { %v1163_v38 = vpop.f32.mrf.mxu1 }
 0x118   :  { %v323_v27 = vmax.f32 %v1161_v35, %v1163_v38 }
 0x119   :  { %v315_v39 = vpop.f32.mrf.mxu1 }
 0x11c   :  { %v425_v41 = vpop.f32.mrf.mxu0  ;;  %v567_v42 = vpop.f32.mrf.mxu1 }
 0x11d   :  { %v459_v43 = vmax.f32 %v317_v40, %v425_v41 }
 0x11e   :  { %v427_v45 = vpop.f32.mrf.mxu0  ;;  %v569_v46 = vpop.f32.mrf.mxu1 }
 0x11f   :  { %v601_v48 = vmax.f32 %v459_v43, %v567_v42 }
 0x120   :  { %v430_v49 = vpop.f32.mrf.mxu0  ;;  %v572_v50 = vpop.f32.mrf.mxu1 }
 0x121   :  { %v615_v51 = vadd.f32 %v1168_v44, %v601_v48  ;;  %v460_v52 = vmax.f32 %v318_v47, %v430_v49 }
 0x122   :  { %v432_v53 = vpop.f32.mrf.mxu0  ;;  %v574_v54 = vpop.f32.mrf.mxu1 }
 0x123   :  { %v622_v56 = vmax.f32 %v615_v51, 0.0  ;;  %v602_v57 = vmax.f32 %v460_v52, %v572_v50 }
 0x124   :  { %v435_v58 = vpop.f32.mrf.mxu0  ;;  %v577_v59 = vpop.f32.mrf.mxu1 }
 0x125   :  { %630 = vst.msk [vmem:[%s1213_s6] sm:$0xff] %vm629_vm2, %v622_v56  ;;  %v616_v60 = vadd.f32 %v1168_v44, %v602_v57  ;;  %v461_v61 = vmax.f32 %v319_v55, %v435_v58 }
 0x126   :  { %v437_v62 = vpop.f32.mrf.mxu0  ;;  %v579_v63 = vpop.f32.mrf.mxu1 }
 0x127   :  { %v623_v1 = vmax.f32 %v616_v60, 0.0  ;;  %v603_v2 = vmax.f32 %v461_v61, %v577_v59 }
 0x128   :  { %v440_v3 = vpop.f32.mrf.mxu0  ;;  %v582_v4 = vpop.f32.mrf.mxu1 }
 0x129   :  { %631 = vst.msk [vmem:[%s1213_s6 + $0x8] sm:$0xff] %vm629_vm2, %v623_v1  ;;  %v617_v5 = vadd.f32 %v1168_v44, %v603_v2  ;;  %v462_v6 = vmax.f32 %v320_v0, %v440_v3 }
 0x12a   :  { %v442_v7 = vpop.f32.mrf.mxu0  ;;  %v584_v8 = vpop.f32.mrf.mxu1 }
 0x12b   :  { %v624_v10 = vmax.f32 %v617_v5, 0.0  ;;  %v604_v11 = vmax.f32 %v462_v6, %v582_v4 }
 0x12c   :  { %v445_v12 = vpop.f32.mrf.mxu0  ;;  %v587_v13 = vpop.f32.mrf.mxu1 }
 0x12d   :  { %632 = vst.msk [vmem:[%s1213_s6 + $0x10] sm:$0xff] %vm629_vm2, %v624_v10  ;;  %v618_v14 = vadd.f32 %v1168_v44, %v604_v11  ;;  %v463_v15 = vmax.f32 %v321_v9, %v445_v12 }
 0x12e   :  { %v447_v16 = vpop.f32.mrf.mxu0  ;;  %v589_v17 = vpop.f32.mrf.mxu1 }
 0x12f   :  { %v625_v19 = vmax.f32 %v618_v14, 0.0  ;;  %v605_v20 = vmax.f32 %v463_v15, %v587_v13 }
 0x130   :  { %v450_v21 = vpop.f32.mrf.mxu0  ;;  %v592_v22 = vpop.f32.mrf.mxu1 }
 0x131   :  { %633 = vst.msk [vmem:[%s1213_s6 + $0x18] sm:$0xff] %vm629_vm2, %v625_v19  ;;  %v619_v23 = vadd.f32 %v1168_v44, %v605_v20  ;;  %v464_v24 = vmax.f32 %v322_v18, %v450_v21 }
 0x132   :  { %v452_v25 = vpop.f32.mrf.mxu0  ;;  %v594_v26 = vpop.f32.mrf.mxu1 }
 0x133   :  { %v626_v28 = vmax.f32 %v619_v23, 0.0  ;;  %v606_v29 = vmax.f32 %v464_v24, %v592_v22 }
 0x134   :  { %v455_v30 = vpop.f32.mrf.mxu0  ;;  %v597_v31 = vpop.f32.mrf.mxu1 }
 0x135   :  { %634 = vst.msk [vmem:[%s1213_s6 + $0x20] sm:$0xff] %vm629_vm2, %v626_v28  ;;  %v620_v32 = vadd.f32 %v1168_v44, %v606_v29  ;;  %v465_v33 = vmax.f32 %v323_v27, %v455_v30 }
 0x136   :  { %v457_v34 = vpop.f32.mrf.mxu0  ;;  %v599_v36 = vpop.f32.mrf.mxu1 }
 0x137   :  { %v627_v37 = vmax.f32 %v620_v32, 0.0  ;;  %v607_v39 = vmax.f32 %v465_v33, %v597_v31 }
 0x139   :  { %635 = vst.msk [vmem:[%s1213_s6 + $0x28] sm:$0xff] %vm629_vm2, %v627_v37  ;;  %v621_v35 = vadd.f32 %v1168_v44, %v607_v39 }
 0x13b   :  { %v628_v38 = vmax.f32 %v621_v35, 0.0 }
 0x13d   :  { %637 = vst.msk [vmem:[%s1213_s6 + $0x30] sm:$0x3] %vm636_vm3, %v628_v38 }

// kernel: net_forward.5
= control target key start
LH: loop header
LB: loop body
LE: loop exit
PB: predicated region body
PF: predicated region fallthrough
CT: control target
= control target key end

     0   :  { %v614_v3 = vmov 0.0   ;;  %v615_v23 = vmov 1983009808   ;;  %v90_v25 = vlaneseq  ;;  %s947_s0 = inlined_call_operand.vmem [shape: f32[2,400], index: 0, kind: input, shape index: {}]   ;;  %s948_s1 = inlined_call_operand.vmem [shape: f32[400,120], index: 1, kind: input, shape index: {}]   ;;  %s949_s2 = inlined_call_operand.vmem [shape: f32[1,120], index: 2, kind: input, shape index: {}]   ;;  %s950_s3 = inlined_call_operand.vmem [shape: f32[120,84], index: 3, kind: input, shape index: {}]   ;;  %s951_s4 = inlined_call_operand.vmem [shape: f32[1,84], index: 4, kind: input, shape index: {}]   ;;  %s952_s5 = inlined_call_operand.vmem [shape: f32[84,10], index: 5, kind: input, shape index: {}]   ;;  %s953_s6 = inlined_call_operand.vmem [shape: f32[1,10], index: 6, kind: input, shape index: {}]   ;;  %s954_s7 = inlined_call_operand.hbm [shape: f32[2,10], index: 7, kind: output, shape index: {}]  }
   0x1   :  { %v59_v0 = vld [vmem:[%s948_s1 + $0xf8] sm:$0xff]  ;;  %179 = vmatprep.subr.mxu1 %v614_v3  ;;  %v58_v4 = vld [vmem:[%s948_s1 + $0xf0] sm:$0xff]  ;;  %v57_v7 = vld [vmem:[%s948_s1 + $0xe8] sm:$0xff]  ;;  %v88_v24 = vunpack.c.l.s4 %v615_v23 }
   0x2   :  { %v43_v1 = vld [vmem:[%s948_s1 + $0x78] sm:$0xff]  ;;  %466 = vmatprep.subr.mxu0 %v59_v0  ;;  %v42_v5 = vld [vmem:[%s948_s1 + $0x70] sm:$0xff]  ;;  %v41_v8 = vld [vmem:[%s948_s1 + $0x68] sm:$0xff]  ;;  %v91_v33 = vshrl.u32 %v90_v25, 7 }
   0x3   :  { %v75_v2 = vld [vmem:[%s948_s1 + $0x178] sm:$0xff]  ;;  %v74_v6 = vld [vmem:[%s948_s1 + $0x170] sm:$0xff]  ;;  %467 = vmatpush3.msra.mxu0 %v43_v1  ;;  %v73_v9 = vld [vmem:[%s948_s1 + $0x168] sm:$0xff]  ;;  %v89_v32 = vunpack.c.0.s8 %v88_v24 }
   0x4   :  { %180 = vmatpush1.msra.mxu1 %v75_v2  ;;  %468 = vmatprep.subr.mxu0 %v58_v4  ;;  %v56_v10 = vld [vmem:[%s948_s1 + $0xe0] sm:$0xff]  ;;  %v55_v13 = vld [vmem:[%s948_s1 + $0xd8] sm:$0xff]  ;;  %v54_v16 = vld [vmem:[%s948_s1 + $0xd0] sm:$0xff] }
   0x5   :  { %181 = vmatprep.subr.mxu1 %v614_v3  ;;  %469 = vmatpush3.msra.mxu0 %v42_v5  ;;  %v40_v11 = vld [vmem:[%s948_s1 + $0x60] sm:$0xff]  ;;  %v39_v14 = vld [vmem:[%s948_s1 + $0x58] sm:$0xff]  ;;  %v38_v17 = vld [vmem:[%s948_s1 + $0x50] sm:$0xff]  ;;  %v92_v40 = vsub.s32 %v89_v32, %v91_v33 }
   0x6   :  { %182 = vmatpush1.msra.mxu1 %v74_v6  ;;  %470 = vmatprep.subr.mxu0 %v57_v7  ;;  %v72_v12 = vld [vmem:[%s948_s1 + $0x160] sm:$0xff]  ;;  %v71_v15 = vld [vmem:[%s948_s1 + $0x158] sm:$0xff]  ;;  %v70_v18 = vld [vmem:[%s948_s1 + $0x150] sm:$0xff] }
   0x7   :  { %183 = vmatprep.subr.mxu1 %v614_v3  ;;  %471 = vmatpush3.msra.mxu0 %v41_v8  ;;  %v53_v19 = vld [vmem:[%s948_s1 + $0xc8] sm:$0xff]  ;;  %v52_v22 = vld [vmem:[%s948_s1 + $0xc0] sm:$0xff]  ;;  %v51_v28 = vld [vmem:[%s948_s1 + $0xb8] sm:$0xff] }
   0x8   :  { %184 = vmatpush1.msra.mxu1 %v73_v9  ;;  %472 = vmatprep.subr.mxu0 %v56_v10  ;;  %v37_v20 = vld [vmem:[%s948_s1 + $0x48] sm:$0xff]  ;;  %v36_v26 = vld [vmem:[%s948_s1 + $0x40] sm:$0xff]  ;;  %v35_v29 = vld [vmem:[%s948_s1 + $0x38] sm:$0xff] }
   0x9   :  { %185 = vmatprep.subr.mxu1 %v614_v3  ;;  %473 = vmatpush3.msra.mxu0 %v40_v11  ;;  %v69_v21 = vld [vmem:[%s948_s1 + $0x148] sm:$0xff]  ;;  %v68_v27 = vld [vmem:[%s948_s1 + $0x140] sm:$0xff]  ;;  %v67_v30 = vld [vmem:[%s948_s1 + $0x138] sm:$0xff] }
   0xa   :  { %186 = vmatpush1.msra.mxu1 %v72_v12  ;;  %474 = vmatprep.subr.mxu0 %v55_v13  ;;  %v50_v31 = vld [vmem:[%s948_s1 + $0xb0] sm:$0xff]  ;;  %v49_v36 = vld [vmem:[%s948_s1 + $0xa8] sm:$0xff]  ;;  %v48_v39 = vld [vmem:[%s948_s1 + $0xa0] sm:$0xff] }
   0xb   :  { %187 = vmatprep.subr.mxu1 %v614_v3  ;;  %475 = vmatpush3.msra.mxu0 %v39_v14  ;;  %v34_v34 = vld [vmem:[%s948_s1 + $0x30] sm:$0xff]  ;;  %v33_v37 = vld [vmem:[%s948_s1 + $0x28] sm:$0xff] }
   0xc   :  { %188 = vmatpush1.msra.mxu1 %v71_v15  ;;  %476 = vmatprep.subr.mxu0 %v54_v16  ;;  %v66_v35 = vld [vmem:[%s948_s1 + $0x130] sm:$0xff]  ;;  %v65_v38 = vld [vmem:[%s948_s1 + $0x128] sm:$0xff] }
   0xd   :  { %189 = vmatprep.subr.mxu1 %v614_v3  ;;  %477 = vmatpush3.msra.mxu0 %v38_v17 }
   0xe   :  { %190 = vmatpush1.msra.mxu1 %v70_v18  ;;  %478 = vmatprep.subr.mxu0 %v53_v19 }
   0xf   :  { %191 = vmatprep.subr.mxu1 %v614_v3  ;;  %479 = vmatpush3.msra.mxu0 %v37_v20 }
  0x10   :  { %192 = vmatpush1.msra.mxu1 %v69_v21  ;;  %480 = vmatprep.subr.mxu0 %v52_v22 }
  0x11   :  { %193 = vmatprep.subr.mxu1 %v614_v3  ;;  %481 = vmatpush3.msra.mxu0 %v36_v26 }
  0x12   :  { %194 = vmatpush1.msra.mxu1 %v68_v27  ;;  %482 = vmatprep.subr.mxu0 %v51_v28 }
  0x13   :  { %195 = vmatprep.subr.mxu1 %v614_v3  ;;  %483 = vmatpush3.msra.mxu0 %v35_v29 }
  0x14   :  { %196 = vmatpush1.msra.mxu1 %v67_v30  ;;  %484 = vmatprep.subr.mxu0 %v50_v31 }
  0x15   :  { %197 = vmatprep.subr.mxu1 %v614_v3  ;;  %485 = vmatpush3.msra.mxu0 %v34_v34 }
  0x16   :  { %198 = vmatpush1.msra.mxu1 %v66_v35 }
  0x17   :  { %12 = vsyncpa [#allocation3], 0  ;;  %486 = vmatprep.subr.mxu0 %v49_v36  ;;  %199 = vmatprep.subr.mxu1 %v614_v3  ;;  %v32_v41 = vld [vmem:[%s948_s1 + $0x20] sm:$0xff]  ;;  %v47_v44 = vld [vmem:[%s948_s1 + $0x98] sm:$0xff]  ;;  %vm106_vm0 = vcmask 130048   ;;  %vm616_vm1 = vmmov 0  }
  0x18   :  { %v64_v42 = vld [vmem:[%s948_s1 + $0x120] sm:$0xff]  ;;  %487 = vmatpush3.msra.mxu0 %v33_v37  ;;  %200 = vmatpush1.msra.mxu1 %v65_v38  ;;  %v31_v46 = vld [vmem:[%s948_s1 + $0x18] sm:$0xff]  ;;  %v46_v48 = vld [vmem:[%s948_s1 + $0x90] sm:$0xff]  ;;  %vm369_vm2 = vcmask 1043456   ;;  %vm272_vm3 = vcmask 982016   ;;  %vm365_vm4 = vcmask 687104  }
  0x19   :  { %v27_v43 = vld [vmem:[%s947_s0] sm:$0xff]  ;;  %488 = vmatprep.subr.mxu0 %v48_v39  ;;  %201 = vmatprep.subr.mxu1 %v614_v3  ;;  %v63_v47 = vld [vmem:[%s948_s1 + $0x118] sm:$0xff]  ;;  %v30_v50 = vld [vmem:[%s948_s1 + $0x10] sm:$0xff]  ;;  %vm443_vm5 = vcmask 74752  }
  0x1a   :  { %v86_v45 = vcombine.high %v27_v43, %v27_v43  ;;  %489 = vmatpush3.msra.mxu0 %v32_v41  ;;  %202 = vmatpush1.msra.mxu1 %v64_v42  ;;  %v93_v49 = vrot.slane %v27_v43, %v92_v40  ;;  %v62_v51 = vld [vmem:[%s948_s1 + $0x110] sm:$0xff]  ;;  %v45_v52 = vld [vmem:[%s948_s1 + $0x88] sm:$0xff]  ;;  %v44_v56 = vld [vmem:[%s948_s1 + $0x80] sm:$0xff] }
  0x1b   :  { %490 = vmatprep.subr.mxu0 %v47_v44  ;;  %203 = vmatprep.subr.mxu1 %v614_v3  ;;  %v29_v54 = vld [vmem:[%s948_s1 + $0x8] sm:$0xff]  ;;  %v28_v58 = vld [vmem:[%s948_s1] sm:$0xff]  ;;  %v264_v62 = vld [vmem:[%s950_s3 + $0x70] sm:$0xff] }
  0x1c   :  { %491 = vmatpush3.msra.mxu0 %v31_v46  ;;  %204 = vmatpush1.msra.mxu1 %v63_v47  ;;  %v100_v53 = vrot.slane %v86_v45, %v92_v40  ;;  %v61_v55 = vld [vmem:[%s948_s1 + $0x108] sm:$0xff]  ;;  %v101_v57 = vcombine.high %v93_v49, %v93_v49  ;;  %v60_v59 = vld [vmem:[%s948_s1 + $0x100] sm:$0xff]  ;;  %v261_v2 = vld [vmem:[%s950_s3 + $0x58] sm:$0xff] }
  0x1d   :  { %492 = vmatprep.subr.mxu0 %v46_v48  ;;  %205 = vmatprep.subr.mxu1 %v614_v3  ;;  %v77_v61 = vld [vmem:[%s948_s1 + $0x188] sm:$0xff]  ;;  %v76_v63 = vld [vmem:[%s948_s1 + $0x180] sm:$0xff]  ;;  %v260_v4 = vld [vmem:[%s950_s3 + $0x50] sm:$0xff]  ;;  %s617_s1 = smov [#allocation2]  }
  0x1e   :  { %493 = vmatpush3.msra.mxu0 %v30_v50  ;;  %206 = vmatpush1.msra.mxu1 %v62_v51  ;;  %v102_v60 = vcombine.high %v100_v53, %v100_v53  ;;  %v263_v0 = vld [vmem:[%s950_s3 + $0x68] sm:$0xff]  ;;  %v262_v1 = vld [vmem:[%s950_s3 + $0x60] sm:$0xff]  ;;  %v257_v7 = vld [vmem:[%s950_s3 + $0x38] sm:$0xff]  ;;  %s451_s15 = sshll.u32 %s617_s1, 4  ;;  %s452_s15 = int_to_ptr.vmem [resolvable:$true] %s451_s15 }
  0x1f   :  { %494 = vmatprep.subr.mxu0 %v45_v52  ;;  %207 = vmatprep.subr.mxu1 %v614_v3  ;;  %v259_v5 = vld [vmem:[%s950_s3 + $0x48] sm:$0xff]  ;;  %v258_v6 = vld [vmem:[%s950_s3 + $0x40] sm:$0xff]  ;;  %v256_v8 = vld [vmem:[%s950_s3 + $0x30] sm:$0xff]  ;;  %p597_p1 = scmp.lt.s32.totalorder %s452_s15, %s452_s15 }
  0x20   :  { %495 = vmatpush3.msra.mxu0 %v29_v54  ;;  %208 = vmatpush1.msra.mxu1 %v61_v55  ;;  %v255_v9 = vld [vmem:[%s950_s3 + $0x28] sm:$0xff]  ;;  %v254_v10 = vld [vmem:[%s950_s3 + $0x20] sm:$0xff]  ;;  %v253_v11 = vld [vmem:[%s950_s3 + $0x18] sm:$0xff] }
  0x21   :  { %496 = vmatprep.subr.mxu0 %v44_v56  ;;  %209 = vmatprep.subr.mxu1 %v614_v3  ;;  %v252_v12 = vld [vmem:[%s950_s3 + $0x10] sm:$0xff]  ;;  %v251_v13 = vld [vmem:[%s950_s3 + $0x8] sm:$0xff]  ;;  %v250_v14 = vld [vmem:[%s950_s3] sm:$0xff] }
  0x22   :  { %497 = vmatpush3.msra.mxu0 %v28_v58  ;;  %173 = vmatprep.mubr.f32.mxu0 %v101_v57  ;;  %v357_v15 = vld [vmem:[%s952_s5 + $0x50] sm:$0xf]  ;;  %v356_v16 = vld [vmem:[%s952_s5 + $0x48] sm:$0xff]  ;;  %v355_v17 = vld [vmem:[%s952_s5 + $0x40] sm:$0xff] }
  0x23   :  { %210 = vmatpush1.msra.mxu1 %v60_v59  ;;  %174 = vmatmul.mubr.f32.vlgmr.msra.gmra.mxu0 %v93_v49  ;;  %v354_v18 = vld [vmem:[%s952_s5 + $0x38] sm:$0xff]  ;;  %v353_v19 = vld [vmem:[%s952_s5 + $0x30] sm:$0xff]  ;;  %v352_v20 = vld [vmem:[%s952_s5 + $0x28] sm:$0xff] }
  0x24   :  { %239 = vmatprep.subr.mxu1 %v614_v3  ;;  %460 = vmatprep.mubr.msk.f32.mxu1 %vm106_vm0, %v102_v60  ;;  %v351_v21 = vld [vmem:[%s952_s5 + $0x20] sm:$0xff]  ;;  %v350_v22 = vld [vmem:[%s952_s5 + $0x18] sm:$0xff]  ;;  %v349_v32 = vld [vmem:[%s952_s5 + $0x10] sm:$0xff] }
  0x25   :  { %240 = vmatpush2.msra.mxu1 %v77_v61  ;;  %529 = vmatprep.subr.mxu0 %v614_v3  ;;  %v459_v25 = vld [vmem:[%s949_s2] ss:$0 sm:$0xff]  ;;  %v348_v33 = vld [vmem:[%s952_s5 + $0x8] sm:$0xff] }
  0x26   :  { %241 = vmatprep.subr.mxu1 %v614_v3  ;;  %530 = vmatpush3.msra.mxu0 %v264_v62  ;;  %v347_v34 = vld [vmem:[%s952_s5] sm:$0xff]  ;;  %s592_s5 = scalar_lea.vmem %s452_s15, 32 }
  0x27   :  { %242 = vmatpush2.msra.mxu1 %v76_v63  ;;  %531 = vmatprep.subr.mxu0 %v614_v3  ;;  %v461_v35 = vld [vmem:[%s951_s4] ss:$0 sm:$0xff]  ;;  %p593_p0 = scmp.ne.s32.totalorder %s452_s15, %s592_s5  ;;  %p598_p2 = scmp.lt.s32.totalorder %s592_s5, %s592_s5 }
  0x28   :  { %244 = vmatmul.mubr.f32.vlgmr.msra.gmra.mxu1 %v100_v53  ;;  %532 = vmatpush3.msra.mxu0 %v263_v0  ;;  %v463_v40 = vld [vmem:[%s953_s6] ss:$0 sm:$0xff] }
  0x29   :  { %533 = vmatprep.subr.mxu0 %v614_v3  ;;  %562 = vmatprep.subr.mxu1 %v614_v3  ;;  %p599_p3 = por %p598_p2, %p597_p1 }
  0x2a   :  { %534 = vmatpush3.msra.mxu0 %v262_v1  ;;  %559 = vmatprep.mubr.msk.f32.mxu0 %vm616_vm1, %v614_v3 }
  0x2b   :  { %535 = vmatprep.subr.mxu0 %v614_v3  ;;  %584 = vmatprep.mubr.msk.f32.mxu1 %vm616_vm1, %v614_v3  ;;  %p600_p4 = pnand %p599_p3, %p593_p0 }
  0x2c   :  { %536 = vmatpush3.msra.mxu0 %v261_v2  ;;  %563 = vmatpush3.msk.msra.mxu1 %vm369_vm2, %v357_v15 }
  0x2d   :  { %537 = vmatprep.subr.mxu0 %v614_v3  ;;  %564 = vmatprep.subr.mxu1 %v614_v3 }
  0x2e   :  { %538 = vmatpush3.msra.mxu0 %v260_v4  ;;  %565 = vmatpush3.msra.mxu1 %v356_v16 }
  0x2f   :  { %539 = vmatprep.subr.mxu0 %v614_v3  ;;  %566 = vmatprep.subr.mxu1 %v614_v3 }
  0x30   :  { %540 = vmatpush3.msra.mxu0 %v259_v5  ;;  %567 = vmatpush3.msra.mxu1 %v355_v17 }
  0x31   :  { %541 = vmatprep.subr.mxu0 %v614_v3  ;;  %568 = vmatprep.subr.mxu1 %v614_v3 }
  0x32   :  { %542 = vmatpush3.msra.mxu0 %v258_v6  ;;  %569 = vmatpush3.msra.mxu1 %v354_v18 }
  0x33   :  { %543 = vmatprep.subr.mxu0 %v614_v3  ;;  %570 = vmatprep.subr.mxu1 %v614_v3 }
  0x34   :  { %544 = vmatpush3.msra.mxu0 %v257_v7  ;;  %571 = vmatpush3.msra.mxu1 %v353_v19 }
  0x35   :  { %545 = vmatprep.subr.mxu0 %v614_v3  ;;  %572 = vmatprep.subr.mxu1 %v614_v3 }
  0x36   :  { %546 = vmatpush3.msra.mxu0 %v256_v8  ;;  %573 = vmatpush3.msra.mxu1 %v352_v20 }
  0x37   :  { %547 = vmatprep.subr.mxu0 %v614_v3  ;;  %574 = vmatprep.subr.mxu1 %v614_v3 }
  0x38   :  { %548 = vmatpush3.msra.mxu0 %v255_v9  ;;  %575 = vmatpush3.msra.mxu1 %v351_v21 }
  0x39   :  { %549 = vmatprep.subr.mxu0 %v614_v3  ;;  %576 = vmatprep.subr.mxu1 %v614_v3 }
  0x3a   :  { %550 = vmatpush3.msra.mxu0 %v254_v10  ;;  %577 = vmatpush3.msra.mxu1 %v350_v22 }
  0x3b   :  { %551 = vmatprep.subr.mxu0 %v614_v3  ;;  %578 = vmatprep.subr.mxu1 %v614_v3 }
  0x3c   :  { %552 = vmatpush3.msra.mxu0 %v253_v11  ;;  %579 = vmatpush3.msra.mxu1 %v349_v32 }
  0x3d   :  { %553 = vmatprep.subr.mxu0 %v614_v3  ;;  %580 = vmatprep.subr.mxu1 %v614_v3 }
  0x3e   :  { %554 = vmatpush3.msra.mxu0 %v252_v12  ;;  %581 = vmatpush3.msra.mxu1 %v348_v33 }
  0x3f   :  { %555 = vmatprep.subr.mxu0 %v614_v3  ;;  %582 = vmatprep.subr.mxu1 %v614_v3 }
  0x40   :  { %556 = vmatpush3.msra.mxu0 %v251_v13  ;;  %583 = vmatpush3.msra.mxu1 %v347_v34 }
  0x41   :  { %557 = vmatprep.subr.mxu0 %v614_v3 }
  0x42   :  { %558 = vmatpush3.msra.mxu0 %v250_v14 }
  0xe3   :  { %v498_v23 = vpop.f32.mrf.mxu0 }
  0xe5   :  { %v499_v24 = vpop.f32.mrf.mxu0 }
  0xe6   :  { %v500_v26 = vadd.f32 %v499_v24, %v498_v23 }
  0xe8   :  { %v176_v27 = vadd.f32 %v500_v26, %v459_v25  ;;  %v245_v28 = vpop.f32.mrf.mxu1 }
  0xea   :  { %v246_v29 = vadd.f32 %v245_v28, %v176_v27  ;;  %v247_v30 = vpop.f32.mrf.mxu1 }
  0xec   :  { %v249_v31 = vmax.f32 %v246_v29, 0.0 }
  0xee   :  { %560 = vmatmul.mubr.msk.f32.vlgmr.msra.gmra.mxu0 %vm272_vm3, %v249_v31 }
 0x1ae   :  { %v342_v36 = vpop.f32.mrf.mxu0 }
 0x1af   :  { %v343_v37 = vadd.f32 %v461_v35, %v342_v36 }
 0x1b0   :  { %v561_v38 = vpop.f32.mrf.mxu0 }
 0x1b1   :  { %v346_v39 = vmax.f32 %v343_v37, 0.0 }
 0x1b3   :  { %585 = vmatmul.mubr.msk.f32.vlgmr.msra.gmra.mxu1 %vm365_vm4, %v346_v39 }
 0x273   :  { %v439_v41 = vpop.f32.mrf.mxu1 }
 0x274   :  { %v440_v3 = vadd.f32 %v463_v40, %v439_v41 }
 0x275   :  { %v586_v42 = vpop.f32.mrf.mxu1 }
 0x276   :  { %444 = vst.msk [vmem:[#allocation2] sm:$0x3] %vm443_vm5, %v440_v3 }
 0x277   :  { %603 = shalt.err (!%p600_p4)
}
 0x278   :  { %454 = dma.vmem_to_hbm [thread:$0]  %s452_s15, 32, %s954_s7, [#allocation3]  }
 0x279   :  { %612 = dma.done.wait [#allocation3], 32  }
 0x27a   :  { %613 = vsyncadd [#allocation3], 4294967264 }
 0x27b   :  { %458 = vsyncpa [#allocation3], 1 }

</bundles_post_ra>
